<compile_context>
chip_gen: v5e
topology: v5e:2x2
jax: 0.10.0
libtpu: 0.0.40
codegen_flags: <defaults>
</compile_context>

<pallas_src>
import functools

import jax
import jax.numpy as jnp
from jax import lax
from jax.experimental import pallas as pl
from jax.experimental.pallas import tpu as pltpu

EPS = 1e-8            # torch.cosine_similarity default eps
DENOM_FLOOR = 1e-30   # guards log() against cancellation in pathological rows
NSPLIT = 2            # leading parallel grid axis (v7x has 2 TensorCores)


def _round_up(x, m):
    return ((x + m - 1) // m) * m


def _facor_cl_kernel(x12_ref, beta_ref, out_ref, xn_scr, rhs_scr, *,
                     s, bsz, n_real, n_pad, tile_m, panels_per_split,
                     mxu_dtype):
    cid = pl.program_id(0)      # parallel split (TensorCore) index
    pid = pl.program_id(1)      # sequential row-panel index within the split
    pad_cols = n_pad - n_real

    # ---- once-per-core prep: scaled MXU operands into resident scratch -----
    @pl.when(pid == 0)
    def _prep():
        out_ref[...] = jnp.zeros_like(out_ref)

        xall = x12_ref[...].astype(jnp.float32)                  # (n_pad, Dp)
        normsq = jnp.sum(xall * xall, axis=1, keepdims=True)     # (n_pad, 1)
        inv_norm = lax.rsqrt(jnp.maximum(normsq, EPS * EPS))     # (n_pad, 1)

        beta = beta_ref[...].astype(jnp.float32)                 # (B, Sp)
        # 1 / m(beta) = s / sum(beta^2); unclamped to match the PyTorch ref.
        inv_bsum = s / jnp.sum(beta * beta, axis=1, keepdims=True)  # (B, 1)
        pieces = [inv_bsum, inv_bsum]
        if n_pad > n_real:
            pieces.append(jnp.ones((n_pad - n_real, 1), jnp.float32))
        inv_beta = jnp.concatenate(pieces, axis=0)               # (n_pad, 1)

        xn = xall * inv_norm                                     # x / ||x||
        xn_scr[...] = xn.astype(mxu_dtype)
        rhs_scr[...] = (xn * inv_beta).astype(mxu_dtype)         # x/(||x||*m)

        # Numerator: -sum_i cos(x1x2_i, x2x1_i)/m(beta)_i  (exp/log cancel);
        # rows i and B+i contribute identical terms -> factor 2.  Core 0 only.
        @pl.when(cid == 0)
        def _numerator():
            dotp = jnp.sum(xall[0:bsz, :] * xall[bsz:n_real, :],
                           axis=1, keepdims=True)                # (B, 1)
            t = dotp * inv_norm[0:bsz, :] * inv_norm[bsz:n_real, :] * inv_bsum
            num = 2.0 * jnp.sum(t, keepdims=True)                # (1, 1)
            out_ref[...] -= jnp.broadcast_to(num, out_ref.shape)

    # ---- per-panel: one MXU dot + stabilized row log-sum-exp ---------------
    r0 = pl.multiple_of((cid * panels_per_split + pid) * tile_m, tile_m)
    lhs = xn_scr[pl.ds(r0, tile_m), :]                           # (TM, Dp)
    rhs_panel = rhs_scr[pl.ds(r0, tile_m), :]                    # (TM, Dp)

    # scores[i, j] = cos(x_{r0+i}, x_j) / m(beta)_j  (pad columns exactly 0)
    scores = lax.dot_general(lhs, rhs_scr[...], (((1,), (1,)), ((), ())),
                             preferred_element_type=jnp.float32)  # (TM, n_pad)

    # Diagonal from the SAME cast operands the MXU used -> no cancellation.
    diag = jnp.sum(lhs.astype(jnp.float32) * rhs_panel.astype(jnp.float32),
                   axis=1, keepdims=True)                        # (TM, 1)

    m_row = jnp.max(scores, axis=1, keepdims=True)               # (TM, 1)
    scores = jnp.exp(scores - m_row)                             # reuse buffer
    row_sum = jnp.sum(scores, axis=1, keepdims=True)             # (TM, 1)

    denom = row_sum - jnp.exp(diag - m_row)
    if pad_cols > 0:
        denom = denom - float(pad_cols) * jnp.exp(-m_row)
    denom = jnp.maximum(denom, DENOM_FLOOR)
    log_denom = m_row + jnp.log(denom)                           # (TM, 1)

    row_idx = r0 + lax.broadcasted_iota(jnp.int32, (tile_m, 1), 0)
    row_mask = (row_idx < n_real).astype(jnp.float32)
    panel_sum = jnp.sum(row_mask * log_denom, keepdims=True)     # (1, 1)
    out_ref[...] += jnp.broadcast_to(panel_sum, out_ref.shape)


def facor_contrastive_loss(x1, x2, beta, s=500.0, use_bf16_mxu=True):
    """Pallas TPU implementation of FaCoRNetCL.forward (contrastive loss)."""
    B, D = x1.shape
    n = 2 * B

    tile_m = 128
    # Lane/MXU-dense padding: zero rows/cols change no dot, norm, or sum-sq,
    # and the analytic pad-column correction removes their exp contribution.
    Dp = _round_up(max(D, 128), 128)
    n_pad = _round_up(max(n, NSPLIT * tile_m), NSPLIT * tile_m)
    panels_per_split = n_pad // (NSPLIT * tile_m)

    beta2 = beta.reshape(B, -1)
    Sp = _round_up(max(beta2.shape[1], 128), 128)

    # single concat only; x2x1 carries no new information and is never built
    x12 = jnp.concatenate([x1, x2], axis=0)
    x12 = jnp.pad(x12, ((0, n_pad - n), (0, Dp - D)))
    beta2 = jnp.pad(beta2, ((0, 0), (0, Sp - beta2.shape[1])))

    mxu_dtype = (jnp.bfloat16 if (use_bf16_mxu or x1.dtype == jnp.bfloat16)
                 else jnp.float32)
    mxu_bytes = jnp.dtype(mxu_dtype).itemsize
    x_bytes = jnp.dtype(x12.dtype).itemsize

    kernel = functools.partial(
        _facor_cl_kernel, s=float(s), bsz=B, n_real=n, n_pad=n_pad,
        tile_m=tile_m, panels_per_split=panels_per_split, mxu_dtype=mxu_dtype)

    # Footprint-derived VMEM limit: single-buffered residents + the two
    # operand scratches + per-panel f32 temporaries; capped under v7x's 64MiB.
    footprint = (n_pad * Dp * x_bytes            # resident x1x2 (1 buffer)
                 + B * Sp * 4                    # resident beta
                 + 2 * n_pad * Dp * mxu_bytes    # xn_scr + rhs_scr
                 + 2 * tile_m * n_pad * 4        # scores / exp temporaries
                 + 2 * tile_m * Dp * 4)          # panel slices, row vectors
    vmem_limit = min(int(footprint * 1.4) + (2 << 20), 60 << 20)

    cost = pl.CostEstimate(
        flops=2 * n_pad * n_pad * Dp,
        transcendentals=n_pad * n_pad,
        bytes_accessed=n_pad * Dp * x_bytes + B * Sp * 4
                       + NSPLIT * 8 * 128 * 4)

    def run(single_buffer_residents):
        extra = ({"pipeline_mode": pl.Buffered(1)}
                 if single_buffer_residents else {})
        grid_spec = pltpu.PrefetchScalarGridSpec(
            num_scalar_prefetch=0,
            grid=(NSPLIT, panels_per_split),
            in_specs=[
                pl.BlockSpec((n_pad, Dp), lambda c, i: (0, 0), **extra),
                pl.BlockSpec((B, Sp), lambda c, i: (0, 0), **extra),
            ],
            out_specs=pl.BlockSpec((8, 128), lambda c, i: (c, 0)),
            scratch_shapes=[
                pltpu.VMEM((n_pad, Dp), mxu_dtype),   # xn_scr
                pltpu.VMEM((n_pad, Dp), mxu_dtype),   # rhs_scr
            ],
        )
        return pl.pallas_call(
            kernel,
            out_shape=jax.ShapeDtypeStruct((NSPLIT * 8, 128), jnp.float32),
            grid_spec=grid_spec,
            compiler_params=pltpu.CompilerParams(
                dimension_semantics=("parallel", "arbitrary"),
                vmem_limit_bytes=vmem_limit),
            cost_estimate=cost,
        )(x12, beta2)

    try:
        out = run(True)
    except Exception:
        # pl.Buffered(1) (single-buffering) unsupported on this JAX build.
        out = run(False)

    # one accumulated partial per core split (every element of a block holds
    # the same value); core 0's partial already includes the -numerator term
    total = jnp.sum(out[::8, 0])
    return total / float(n)


def facor_contrastive_loss_ref(x1, x2, beta, s=500.0):
    """Pure-JAX reference mirroring the PyTorch forward."""
    x1x2 = jnp.concatenate([x1, x2], axis=0)
    x2x1 = jnp.concatenate([x2, x1], axis=0)
    bsum = jnp.sum(beta ** 2, axis=(1, 2)) / s
    bvec = jnp.concatenate([bsum, bsum]).reshape(-1)

    def cos(a, b, axis):
        num = jnp.sum(a * b, axis=axis)
        na = jnp.sqrt(jnp.sum(a * a, axis=axis))
        nb = jnp.sqrt(jnp.sum(b * b, axis=axis))
        return num / jnp.maximum(na * nb, EPS)

    cosine_mat = cos(x1x2[:, None, :], x1x2[None, :, :], axis=2) / bvec
    nrows = x1x2.shape[0]
    mask = 1.0 - jnp.eye(nrows)
    numerators = jnp.exp(cos(x1x2, x2x1, axis=1) / bvec)
    denominators = jnp.sum(jnp.exp(cosine_mat) * mask, axis=1)
    return -jnp.mean(jnp.log(numerators / denominators))


if __name__ == "__main__":
    key = jax.random.PRNGKey(0)
    k1, k2, k3 = jax.random.split(key, 3)

    B, D, S1, S2 = 4, 64, 8, 8   # module has no weights (only s=500)
    x1 = jax.random.normal(k1, (B, D), dtype=jnp.float32)
    x2 = jax.random.normal(k2, (B, D), dtype=jnp.float32)
    beta = jax.random.normal(k3, (B, S1, S2), dtype=jnp.float32)

    ref = facor_contrastive_loss_ref(x1, x2, beta)

    out = facor_contrastive_loss(x1, x2, beta)   # default: bf16 MXU operands
    out = jax.block_until_ready(out)

    assert bool(jnp.isfinite(out)), out
    # tolerance sized for the bf16 MXU path (set use_bf16_mxu=False for f32)
    assert jnp.allclose(out, ref, rtol=3e-2, atol=3e-2), (out, ref)

    print("KERNEL_OK")
</pallas_src>

<mosaic_0001>
module attributes {stable_mosaic.version = 11 : i64} {
  func.func @_facor_cl_kernel(%arg0: i32, %arg1: i32, %arg2: memref<256x128xf32, #tpu.memory_space<vmem>>, %arg3: memref<4x128xf32, #tpu.memory_space<vmem>>, %arg4: memref<8x128xf32, #tpu.memory_space<vmem>>, %arg5: memref<256x128xbf16, #tpu.memory_space<vmem>>, %arg6: memref<256x128xbf16, #tpu.memory_space<vmem>>) attributes {dimension_semantics = [#tpu.dimension_semantics<parallel>, #tpu.dimension_semantics<arbitrary>], iteration_bounds = array<i64: 2, 1>, scalar_prefetch = 0 : i64, scratch_operands = 2 : i64, tpu.core_type = #tpu.core_type<tc>, window_params = [{pipeline_mode = #tpu.pipeline_mode<synchronous>, transform_indices = @transform_0, window_bounds = array<i64: 256, 128>}, {pipeline_mode = #tpu.pipeline_mode<synchronous>, transform_indices = @transform_1, window_bounds = array<i64: 4, 128>}, {transform_indices = @transform_2, window_bounds = array<i64: 8, 128>}]} {
    %c0_i32 = arith.constant 0 : i32
    %0 = arith.cmpi eq, %arg1, %c0_i32 : i32
    %1 = arith.extui %0 : i1 to i32
    %c0_i32_0 = arith.constant 0 : i32
    %2 = arith.cmpi ne, %1, %c0_i32_0 : i32
    scf.if %2 {
      %cst_15 = arith.constant 0.000000e+00 : f32
      %56 = vector.broadcast %cst_15 : f32 to vector<8x128xf32>
      %c0_16 = arith.constant 0 : index
      %c0_17 = arith.constant 0 : index
      %57 = vector.load %arg4[%c0_16, %c0_17] : memref<8x128xf32, #tpu.memory_space<vmem>>, vector<8x128xf32>
      tpu.vector_store %arg4[%c0_16, %c0_17], %56 {strides = array<i32>} : memref<8x128xf32, #tpu.memory_space<vmem>>, vector<8x128xf32>,
      %c0_18 = arith.constant 0 : index
      %c0_19 = arith.constant 0 : index
      %58 = vector.load %arg2[%c0_18, %c0_19] : memref<256x128xf32, #tpu.memory_space<vmem>>, vector<256x128xf32>
      %59 = arith.mulf %58, %58 : vector<256x128xf32>
      %cst_20 = arith.constant dense<0.000000e+00> : vector<256xf32>
      %60 = vector.multi_reduction <add>, %59, %cst_20 [1] : vector<256x128xf32> to vector<256xf32>
      %61 = vector.shape_cast %60 : vector<256xf32> to vector<256x1xf32>
      %cst_21 = arith.constant 1.000000e-16 : f32
      %62 = vector.broadcast %cst_21 : f32 to vector<256x1xf32>
      %63 = arith.maximumf %61, %62 : vector<256x1xf32>
      %64 = math.rsqrt %63 : vector<256x1xf32>
      %c0_22 = arith.constant 0 : index
      %c0_23 = arith.constant 0 : index
      %65 = vector.load %arg3[%c0_22, %c0_23] : memref<4x128xf32, #tpu.memory_space<vmem>>, vector<4x128xf32>
      %66 = arith.mulf %65, %65 : vector<4x128xf32>
      %cst_24 = arith.constant dense<0.000000e+00> : vector<4xf32>
      %67 = vector.multi_reduction <add>, %66, %cst_24 [1] : vector<4x128xf32> to vector<4xf32>
      %68 = vector.shape_cast %67 : vector<4xf32> to vector<4x1xf32>
      %cst_25 = arith.constant 5.000000e+02 : f32
      %69 = vector.broadcast %cst_25 : f32 to vector<4x1xf32>
      %70 = arith.divf %69, %68 : vector<4x1xf32>
      %cst_26 = arith.constant 1.000000e+00 : f32
      %71 = vector.broadcast %cst_26 : f32 to vector<248x1xf32>
      %72 = tpu.concatenate %70, %70, %71 in 0 : vector<4x1xf32>, vector<4x1xf32>, vector<248x1xf32> -> vector<256x1xf32>
      %73 = vector.broadcast %64 : vector<256x1xf32> to vector<256x128xf32>
      %74 = arith.mulf %58, %73 : vector<256x128xf32>
      %75 = arith.truncf %74 : vector<256x128xf32> to vector<256x128xbf16>
      %c0_27 = arith.constant 0 : index
      %c0_28 = arith.constant 0 : index
      %76 = vector.load %arg5[%c0_27, %c0_28] : memref<256x128xbf16, #tpu.memory_space<vmem>>, vector<256x128xbf16>
      tpu.vector_store %arg5[%c0_27, %c0_28], %75 {strides = array<i32>} : memref<256x128xbf16, #tpu.memory_space<vmem>>, vector<256x128xbf16>,
      %77 = vector.broadcast %72 : vector<256x1xf32> to vector<256x128xf32>
      %78 = arith.mulf %74, %77 : vector<256x128xf32>
      %79 = arith.truncf %78 : vector<256x128xf32> to vector<256x128xbf16>
      %c0_29 = arith.constant 0 : index
      %c0_30 = arith.constant 0 : index
      %80 = vector.load %arg6[%c0_29, %c0_30] : memref<256x128xbf16, #tpu.memory_space<vmem>>, vector<256x128xbf16>
      tpu.vector_store %arg6[%c0_29, %c0_30], %79 {strides = array<i32>} : memref<256x128xbf16, #tpu.memory_space<vmem>>, vector<256x128xbf16>,
      %c0_i32_31 = arith.constant 0 : i32
      %81 = arith.cmpi eq, %arg0, %c0_i32_31 : i32
      %82 = arith.extui %81 : i1 to i32
      %c0_i32_32 = arith.constant 0 : i32
      %83 = arith.cmpi ne, %82, %c0_i32_32 : i32
      scf.if %83 {
        %84 = vector.extract_strided_slice %58 {offsets = [0, 0], sizes = [4, 128], strides = [1, 1]} : vector<256x128xf32> to vector<4x128xf32>
        %85 = vector.extract_strided_slice %58 {offsets = [4, 0], sizes = [4, 128], strides = [1, 1]} : vector<256x128xf32> to vector<4x128xf32>
        %86 = arith.mulf %84, %85 : vector<4x128xf32>
        %cst_33 = arith.constant dense<0.000000e+00> : vector<4xf32>
        %87 = vector.multi_reduction <add>, %86, %cst_33 [1] : vector<4x128xf32> to vector<4xf32>
        %88 = vector.shape_cast %87 : vector<4xf32> to vector<4x1xf32>
        %89 = vector.extract_strided_slice %64 {offsets = [0, 0], sizes = [4, 1], strides = [1, 1]} : vector<256x1xf32> to vector<4x1xf32>
        %90 = arith.mulf %88, %89 : vector<4x1xf32>
        %91 = vector.extract_strided_slice %64 {offsets = [4, 0], sizes = [4, 1], strides = [1, 1]} : vector<256x1xf32> to vector<4x1xf32>
        %92 = arith.mulf %90, %91 : vector<4x1xf32>
        %93 = arith.mulf %92, %70 : vector<4x1xf32>
        %94 = vector.shape_cast %93 : vector<4x1xf32> to vector<1x4x1xf32>
        %cst_34 = arith.constant dense<0.000000e+00> : vector<1xf32>
        %95 = vector.multi_reduction <add>, %94, %cst_34 [1, 2] : vector<1x4x1xf32> to vector<1xf32>
        %96 = vector.shape_cast %95 : vector<1xf32> to vector<1x1x1xf32>
        %97 = vector.extract %96[0, 0, 0] : f32 from vector<1x1x1xf32>
        %98 = vector.broadcast %97 : f32 to vector<1x1xf32>
        %cst_35 = arith.constant 2.000000e+00 : f32
        %99 = vector.broadcast %cst_35 : f32 to vector<1x1xf32>
        %100 = arith.mulf %99, %98 : vector<1x1xf32>
        %c0_36 = arith.constant 0 : index
        %c0_37 = arith.constant 0 : index
        %101 = vector.load %arg4[%c0_36, %c0_37] : memref<8x128xf32, #tpu.memory_space<vmem>>, vector<8x128xf32>
        %102 = vector.shape_cast %100 : vector<1x1xf32> to vector<1x1xf32>
        %103 = vector.broadcast %102 : vector<1x1xf32> to vector<8x128xf32>
        %104 = arith.subf %101, %103 : vector<8x128xf32>
        %c0_38 = arith.constant 0 : index
        %c0_39 = arith.constant 0 : index
        %105 = vector.load %arg4[%c0_38, %c0_39] : memref<8x128xf32, #tpu.memory_space<vmem>>, vector<8x128xf32>
        tpu.vector_store %arg4[%c0_38, %c0_39], %104 {strides = array<i32>} : memref<8x128xf32, #tpu.memory_space<vmem>>, vector<8x128xf32>,
      } else {
      }
    } else {
    }
    %c1_i32 = arith.constant 1 : i32
    %3 = arith.muli %arg0, %c1_i32 : i32
    %4 = arith.addi %3, %arg1 : i32
    %c128_i32 = arith.constant 128 : i32
    %5 = arith.muli %4, %c128_i32 : i32
    %6 = tpu.assume_multiple %5, 128 : i32
    %7 = arith.index_cast %6 : i32 to index
    %c0 = arith.constant 0 : index
    %8 = vector.load %arg5[%7, %c0] : memref<256x128xbf16, #tpu.memory_space<vmem>>, vector<128x128xbf16>
    %9 = arith.index_cast %6 : i32 to index
    %c0_1 = arith.constant 0 : index
    %10 = vector.load %arg6[%9, %c0_1] : memref<256x128xbf16, #tpu.memory_space<vmem>>, vector<128x128xbf16>
    %c0_2 = arith.constant 0 : index
    %c0_3 = arith.constant 0 : index
    %11 = vector.load %arg6[%c0_2, %c0_3] : memref<256x128xbf16, #tpu.memory_space<vmem>>, vector<256x128xbf16>
    %cst = arith.constant dense<0.000000e+00> : vector<128x256xf32>
    %12 = tpu.matmul %8, %11, %cst {dimension_numbers = #tpu.dot_dimension_numbers<[1], [1], [0], [0], [0, 0, 1, 0], [], []>} : vector<128x128xbf16>, vector<256x128xbf16>, vector<128x256xf32> -> vector<128x256xf32>
    %13 = arith.extf %8 : vector<128x128xbf16> to vector<128x128xf32>
    %14 = arith.extf %10 : vector<128x128xbf16> to vector<128x128xf32>
    %15 = arith.mulf %13, %14 : vector<128x128xf32>
    %cst_4 = arith.constant dense<0.000000e+00> : vector<128xf32>
    %16 = vector.multi_reduction <add>, %15, %cst_4 [1] : vector<128x128xf32> to vector<128xf32>
    %17 = vector.shape_cast %16 : vector<128xf32> to vector<128x1xf32>
    %cst_5 = arith.constant dense<0xFF800000> : vector<128xf32>
    %18 = vector.multi_reduction <maximumf>, %12, %cst_5 [1] : vector<128x256xf32> to vector<128xf32>
    %19 = vector.shape_cast %18 : vector<128xf32> to vector<128x1xf32>
    %20 = vector.broadcast %19 : vector<128x1xf32> to vector<128x256xf32>
    %21 = arith.subf %12, %20 : vector<128x256xf32>
    %22 = math.exp %21 : vector<128x256xf32>
    %cst_6 = arith.constant dense<0.000000e+00> : vector<128xf32>
    %23 = vector.multi_reduction <add>, %22, %cst_6 [1] : vector<128x256xf32> to vector<128xf32>
    %24 = vector.shape_cast %23 : vector<128xf32> to vector<128x1xf32>
    %25 = arith.subf %17, %19 : vector<128x1xf32>
    %26 = math.exp %25 : vector<128x1xf32>
    %27 = arith.subf %24, %26 : vector<128x1xf32>
    %cst_7 = arith.constant 0.000000e+00 : f32
    %28 = vector.broadcast %cst_7 : f32 to vector<128x1xf32>
    %29 = arith.subf %28, %19 : vector<128x1xf32>
    %30 = math.exp %29 : vector<128x1xf32>
    %cst_8 = arith.constant 2.480000e+02 : f32
    %31 = vector.broadcast %cst_8 : f32 to vector<128x1xf32>
    %32 = arith.mulf %31, %30 : vector<128x1xf32>
    %33 = arith.subf %27, %32 : vector<128x1xf32>
    %cst_9 = arith.constant 1.000000e-30 : f32
    %34 = vector.broadcast %cst_9 : f32 to vector<128x1xf32>
    %35 = arith.maximumf %33, %34 : vector<128x1xf32>
    %36 = math.log %35 : vector<128x1xf32>
    %37 = arith.addf %19, %36 : vector<128x1xf32>
    %38 = tpu.iota {dimensions = array<i32: 0>} : vector<128x1xi32>
    %39 = vector.broadcast %6 : i32 to vector<128x1xi32>
    %40 = arith.addi %39, %38 : vector<128x1xi32>
    %c8_i32 = arith.constant 8 : i32
    %41 = vector.broadcast %c8_i32 : i32 to vector<128x1xi32>
    %42 = arith.cmpi slt, %40, %41 : vector<128x1xi32>
    %43 = arith.extui %42 : vector<128x1xi1> to vector<128x1xi32>
    %44 = arith.sitofp %43 : vector<128x1xi32> to vector<128x1xf32>
    %45 = arith.mulf %44, %37 : vector<128x1xf32>
    %46 = vector.shape_cast %45 : vector<128x1xf32> to vector<1x128x1xf32>
    %cst_10 = arith.constant dense<0.000000e+00> : vector<1xf32>
    %47 = vector.multi_reduction <add>, %46, %cst_10 [1, 2] : vector<1x128x1xf32> to vector<1xf32>
    %48 = vector.shape_cast %47 : vector<1xf32> to vector<1x1x1xf32>
    %49 = vector.extract %48[0, 0, 0] : f32 from vector<1x1x1xf32>
    %50 = vector.broadcast %49 : f32 to vector<1x1xf32>
    %c0_11 = arith.constant 0 : index
    %c0_12 = arith.constant 0 : index
    %51 = vector.load %arg4[%c0_11, %c0_12] : memref<8x128xf32, #tpu.memory_space<vmem>>, vector<8x128xf32>
    %52 = vector.shape_cast %50 : vector<1x1xf32> to vector<1x1xf32>
    %53 = vector.broadcast %52 : vector<1x1xf32> to vector<8x128xf32>
    %54 = arith.addf %51, %53 : vector<8x128xf32>
    %c0_13 = arith.constant 0 : index
    %c0_14 = arith.constant 0 : index
    %55 = vector.load %arg4[%c0_13, %c0_14] : memref<8x128xf32, #tpu.memory_space<vmem>>, vector<8x128xf32>
    tpu.vector_store %arg4[%c0_13, %c0_14], %54 {strides = array<i32>} : memref<8x128xf32, #tpu.memory_space<vmem>>, vector<8x128xf32>,
    return
  }
  func.func @transform_0(%arg0: i32, %arg1: i32) -> (i32, i32) {
    %c0_i32 = arith.constant 0 : i32
    %c0_i32_0 = arith.constant 0 : i32
    %c0_i32_1 = arith.constant 0 : i32
    return %c0_i32, %c0_i32_0 : i32, i32
  }
  func.func @transform_1(%arg0: i32, %arg1: i32) -> (i32, i32) {
    %c0_i32 = arith.constant 0 : i32
    %c0_i32_0 = arith.constant 0 : i32
    %c0_i32_1 = arith.constant 0 : i32
    return %c0_i32, %c0_i32_0 : i32, i32
  }
  func.func @transform_2(%arg0: i32, %arg1: i32) -> (i32, i32) {
    %c0_i32 = arith.constant 0 : i32
    %c0_i32_0 = arith.constant 0 : i32
    return %arg0, %c0_i32 : i32, i32
  }
}

module attributes {stable_mosaic.version = 11 : i64} {
  func.func @_facor_cl_kernel(%arg0: i32, %arg1: i32, %arg2: memref<256x128xf32, #tpu.memory_space<vmem>>, %arg3: memref<4x128xf32, #tpu.memory_space<vmem>>, %arg4: memref<8x128xf32, #tpu.memory_space<vmem>>, %arg5: memref<256x128xbf16, #tpu.memory_space<vmem>>, %arg6: memref<256x128xbf16, #tpu.memory_space<vmem>>) attributes {dimension_semantics = [#tpu.dimension_semantics<parallel>, #tpu.dimension_semantics<arbitrary>], iteration_bounds = array<i64: 2, 1>, scalar_prefetch = 0 : i64, scratch_operands = 2 : i64, tpu.core_type = #tpu.core_type<tc>, window_params = [{pipeline_mode = #tpu.pipeline_mode<synchronous>, transform_indices = @transform_0, window_bounds = array<i64: 256, 128>}, {pipeline_mode = #tpu.pipeline_mode<synchronous>, transform_indices = @transform_1, window_bounds = array<i64: 4, 128>}, {transform_indices = @transform_2, window_bounds = array<i64: 8, 128>}]} {
    %c0_i32 = arith.constant 0 : i32
    %0 = arith.cmpi eq, %arg1, %c0_i32 : i32
    %1 = arith.extui %0 : i1 to i32
    %c0_i32_0 = arith.constant 0 : i32
    %2 = arith.cmpi ne, %1, %c0_i32_0 : i32
    scf.if %2 {
      %cst_15 = arith.constant 0.000000e+00 : f32
      %56 = vector.broadcast %cst_15 : f32 to vector<8x128xf32>
      %c0_16 = arith.constant 0 : index
      %c0_17 = arith.constant 0 : index
      %57 = vector.load %arg4[%c0_16, %c0_17] : memref<8x128xf32, #tpu.memory_space<vmem>>, vector<8x128xf32>
      tpu.vector_store %arg4[%c0_16, %c0_17], %56 {strides = array<i32>} : memref<8x128xf32, #tpu.memory_space<vmem>>, vector<8x128xf32>,
      %c0_18 = arith.constant 0 : index
      %c0_19 = arith.constant 0 : index
      %58 = vector.load %arg2[%c0_18, %c0_19] : memref<256x128xf32, #tpu.memory_space<vmem>>, vector<256x128xf32>
      %59 = arith.mulf %58, %58 : vector<256x128xf32>
      %cst_20 = arith.constant dense<0.000000e+00> : vector<256xf32>
      %60 = vector.multi_reduction <add>, %59, %cst_20 [1] : vector<256x128xf32> to vector<256xf32>
      %61 = vector.shape_cast %60 : vector<256xf32> to vector<256x1xf32>
      %cst_21 = arith.constant 1.000000e-16 : f32
      %62 = vector.broadcast %cst_21 : f32 to vector<256x1xf32>
      %63 = arith.maximumf %61, %62 : vector<256x1xf32>
      %64 = math.rsqrt %63 : vector<256x1xf32>
      %c0_22 = arith.constant 0 : index
      %c0_23 = arith.constant 0 : index
      %65 = vector.load %arg3[%c0_22, %c0_23] : memref<4x128xf32, #tpu.memory_space<vmem>>, vector<4x128xf32>
      %66 = arith.mulf %65, %65 : vector<4x128xf32>
      %cst_24 = arith.constant dense<0.000000e+00> : vector<4xf32>
      %67 = vector.multi_reduction <add>, %66, %cst_24 [1] : vector<4x128xf32> to vector<4xf32>
      %68 = vector.shape_cast %67 : vector<4xf32> to vector<4x1xf32>
      %cst_25 = arith.constant 5.000000e+02 : f32
      %69 = vector.broadcast %cst_25 : f32 to vector<4x1xf32>
      %70 = arith.divf %69, %68 : vector<4x1xf32>
      %cst_26 = arith.constant 1.000000e+00 : f32
      %71 = vector.broadcast %cst_26 : f32 to vector<248x1xf32>
      %72 = tpu.concatenate %70, %70, %71 in 0 : vector<4x1xf32>, vector<4x1xf32>, vector<248x1xf32> -> vector<256x1xf32>
      %73 = vector.broadcast %64 : vector<256x1xf32> to vector<256x128xf32>
      %74 = arith.mulf %58, %73 : vector<256x128xf32>
      %75 = arith.truncf %74 : vector<256x128xf32> to vector<256x128xbf16>
      %c0_27 = arith.constant 0 : index
      %c0_28 = arith.constant 0 : index
      %76 = vector.load %arg5[%c0_27, %c0_28] : memref<256x128xbf16, #tpu.memory_space<vmem>>, vector<256x128xbf16>
      tpu.vector_store %arg5[%c0_27, %c0_28], %75 {strides = array<i32>} : memref<256x128xbf16, #tpu.memory_space<vmem>>, vector<256x128xbf16>,
      %77 = vector.broadcast %72 : vector<256x1xf32> to vector<256x128xf32>
      %78 = arith.mulf %74, %77 : vector<256x128xf32>
      %79 = arith.truncf %78 : vector<256x128xf32> to vector<256x128xbf16>
      %c0_29 = arith.constant 0 : index
      %c0_30 = arith.constant 0 : index
      %80 = vector.load %arg6[%c0_29, %c0_30] : memref<256x128xbf16, #tpu.memory_space<vmem>>, vector<256x128xbf16>
      tpu.vector_store %arg6[%c0_29, %c0_30], %79 {strides = array<i32>} : memref<256x128xbf16, #tpu.memory_space<vmem>>, vector<256x128xbf16>,
      %c0_i32_31 = arith.constant 0 : i32
      %81 = arith.cmpi eq, %arg0, %c0_i32_31 : i32
      %82 = arith.extui %81 : i1 to i32
      %c0_i32_32 = arith.constant 0 : i32
      %83 = arith.cmpi ne, %82, %c0_i32_32 : i32
      scf.if %83 {
        %84 = vector.extract_strided_slice %58 {offsets = [0, 0], sizes = [4, 128], strides = [1, 1]} : vector<256x128xf32> to vector<4x128xf32>
        %85 = vector.extract_strided_slice %58 {offsets = [4, 0], sizes = [4, 128], strides = [1, 1]} : vector<256x128xf32> to vector<4x128xf32>
        %86 = arith.mulf %84, %85 : vector<4x128xf32>
        %cst_33 = arith.constant dense<0.000000e+00> : vector<4xf32>
        %87 = vector.multi_reduction <add>, %86, %cst_33 [1] : vector<4x128xf32> to vector<4xf32>
        %88 = vector.shape_cast %87 : vector<4xf32> to vector<4x1xf32>
        %89 = vector.extract_strided_slice %64 {offsets = [0, 0], sizes = [4, 1], strides = [1, 1]} : vector<256x1xf32> to vector<4x1xf32>
        %90 = arith.mulf %88, %89 : vector<4x1xf32>
        %91 = vector.extract_strided_slice %64 {offsets = [4, 0], sizes = [4, 1], strides = [1, 1]} : vector<256x1xf32> to vector<4x1xf32>
        %92 = arith.mulf %90, %91 : vector<4x1xf32>
        %93 = arith.mulf %92, %70 : vector<4x1xf32>
        %94 = vector.shape_cast %93 : vector<4x1xf32> to vector<1x4x1xf32>
        %cst_34 = arith.constant dense<0.000000e+00> : vector<1xf32>
        %95 = vector.multi_reduction <add>, %94, %cst_34 [1, 2] : vector<1x4x1xf32> to vector<1xf32>
        %96 = vector.shape_cast %95 : vector<1xf32> to vector<1x1x1xf32>
        %97 = vector.extract %96[0, 0, 0] : f32 from vector<1x1x1xf32>
        %98 = vector.broadcast %97 : f32 to vector<1x1xf32>
        %cst_35 = arith.constant 2.000000e+00 : f32
        %99 = vector.broadcast %cst_35 : f32 to vector<1x1xf32>
        %100 = arith.mulf %99, %98 : vector<1x1xf32>
        %c0_36 = arith.constant 0 : index
        %c0_37 = arith.constant 0 : index
        %101 = vector.load %arg4[%c0_36, %c0_37] : memref<8x128xf32, #tpu.memory_space<vmem>>, vector<8x128xf32>
        %102 = vector.shape_cast %100 : vector<1x1xf32> to vector<1x1xf32>
        %103 = vector.broadcast %102 : vector<1x1xf32> to vector<8x128xf32>
        %104 = arith.subf %101, %103 : vector<8x128xf32>
        %c0_38 = arith.constant 0 : index
        %c0_39 = arith.constant 0 : index
        %105 = vector.load %arg4[%c0_38, %c0_39] : memref<8x128xf32, #tpu.memory_space<vmem>>, vector<8x128xf32>
        tpu.vector_store %arg4[%c0_38, %c0_39], %104 {strides = array<i32>} : memref<8x128xf32, #tpu.memory_space<vmem>>, vector<8x128xf32>,
      } else {
      }
    } else {
    }
    %c1_i32 = arith.constant 1 : i32
    %3 = arith.muli %arg0, %c1_i32 : i32
    %4 = arith.addi %3, %arg1 : i32
    %c128_i32 = arith.constant 128 : i32
    %5 = arith.muli %4, %c128_i32 : i32
    %6 = tpu.assume_multiple %5, 128 : i32
    %7 = arith.index_cast %6 : i32 to index
    %c0 = arith.constant 0 : index
    %8 = vector.load %arg5[%7, %c0] : memref<256x128xbf16, #tpu.memory_space<vmem>>, vector<128x128xbf16>
    %9 = arith.index_cast %6 : i32 to index
    %c0_1 = arith.constant 0 : index
    %10 = vector.load %arg6[%9, %c0_1] : memref<256x128xbf16, #tpu.memory_space<vmem>>, vector<128x128xbf16>
    %c0_2 = arith.constant 0 : index
    %c0_3 = arith.constant 0 : index
    %11 = vector.load %arg6[%c0_2, %c0_3] : memref<256x128xbf16, #tpu.memory_space<vmem>>, vector<256x128xbf16>
    %cst = arith.constant dense<0.000000e+00> : vector<128x256xf32>
    %12 = tpu.matmul %8, %11, %cst {dimension_numbers = #tpu.dot_dimension_numbers<[1], [1], [0], [0], [0, 0, 1, 0], [], []>} : vector<128x128xbf16>, vector<256x128xbf16>, vector<128x256xf32> -> vector<128x256xf32>
    %13 = arith.extf %8 : vector<128x128xbf16> to vector<128x128xf32>
    %14 = arith.extf %10 : vector<128x128xbf16> to vector<128x128xf32>
    %15 = arith.mulf %13, %14 : vector<128x128xf32>
    %cst_4 = arith.constant dense<0.000000e+00> : vector<128xf32>
    %16 = vector.multi_reduction <add>, %15, %cst_4 [1] : vector<128x128xf32> to vector<128xf32>
    %17 = vector.shape_cast %16 : vector<128xf32> to vector<128x1xf32>
    %cst_5 = arith.constant dense<0xFF800000> : vector<128xf32>
    %18 = vector.multi_reduction <maximumf>, %12, %cst_5 [1] : vector<128x256xf32> to vector<128xf32>
    %19 = vector.shape_cast %18 : vector<128xf32> to vector<128x1xf32>
    %20 = vector.broadcast %19 : vector<128x1xf32> to vector<128x256xf32>
    %21 = arith.subf %12, %20 : vector<128x256xf32>
    %22 = math.exp %21 : vector<128x256xf32>
    %cst_6 = arith.constant dense<0.000000e+00> : vector<128xf32>
    %23 = vector.multi_reduction <add>, %22, %cst_6 [1] : vector<128x256xf32> to vector<128xf32>
    %24 = vector.shape_cast %23 : vector<128xf32> to vector<128x1xf32>
    %25 = arith.subf %17, %19 : vector<128x1xf32>
    %26 = math.exp %25 : vector<128x1xf32>
    %27 = arith.subf %24, %26 : vector<128x1xf32>
    %cst_7 = arith.constant 0.000000e+00 : f32
    %28 = vector.broadcast %cst_7 : f32 to vector<128x1xf32>
    %29 = arith.subf %28, %19 : vector<128x1xf32>
    %30 = math.exp %29 : vector<128x1xf32>
    %cst_8 = arith.constant 2.480000e+02 : f32
    %31 = vector.broadcast %cst_8 : f32 to vector<128x1xf32>
    %32 = arith.mulf %31, %30 : vector<128x1xf32>
    %33 = arith.subf %27, %32 : vector<128x1xf32>
    %cst_9 = arith.constant 1.000000e-30 : f32
    %34 = vector.broadcast %cst_9 : f32 to vector<128x1xf32>
    %35 = arith.maximumf %33, %34 : vector<128x1xf32>
    %36 = math.log %35 : vector<128x1xf32>
    %37 = arith.addf %19, %36 : vector<128x1xf32>
    %38 = tpu.iota {dimensions = array<i32: 0>} : vector<128x1xi32>
    %39 = vector.broadcast %6 : i32 to vector<128x1xi32>
    %40 = arith.addi %39, %38 : vector<128x1xi32>
    %c8_i32 = arith.constant 8 : i32
    %41 = vector.broadcast %c8_i32 : i32 to vector<128x1xi32>
    %42 = arith.cmpi slt, %40, %41 : vector<128x1xi32>
    %43 = arith.extui %42 : vector<128x1xi1> to vector<128x1xi32>
    %44 = arith.sitofp %43 : vector<128x1xi32> to vector<128x1xf32>
    %45 = arith.mulf %44, %37 : vector<128x1xf32>
    %46 = vector.shape_cast %45 : vector<128x1xf32> to vector<1x128x1xf32>
    %cst_10 = arith.constant dense<0.000000e+00> : vector<1xf32>
    %47 = vector.multi_reduction <add>, %46, %cst_10 [1, 2] : vector<1x128x1xf32> to vector<1xf32>
    %48 = vector.shape_cast %47 : vector<1xf32> to vector<1x1x1xf32>
    %49 = vector.extract %48[0, 0, 0] : f32 from vector<1x1x1xf32>
    %50 = vector.broadcast %49 : f32 to vector<1x1xf32>
    %c0_11 = arith.constant 0 : index
    %c0_12 = arith.constant 0 : index
    %51 = vector.load %arg4[%c0_11, %c0_12] : memref<8x128xf32, #tpu.memory_space<vmem>>, vector<8x128xf32>
    %52 = vector.shape_cast %50 : vector<1x1xf32> to vector<1x1xf32>
    %53 = vector.broadcast %52 : vector<1x1xf32> to vector<8x128xf32>
    %54 = arith.addf %51, %53 : vector<8x128xf32>
    %c0_13 = arith.constant 0 : index
    %c0_14 = arith.constant 0 : index
    %55 = vector.load %arg4[%c0_13, %c0_14] : memref<8x128xf32, #tpu.memory_space<vmem>>, vector<8x128xf32>
    tpu.vector_store %arg4[%c0_13, %c0_14], %54 {strides = array<i32>} : memref<8x128xf32, #tpu.memory_space<vmem>>, vector<8x128xf32>,
    return
  }
  func.func @transform_0(%arg0: i32, %arg1: i32) -> (i32, i32) {
    %c0_i32 = arith.constant 0 : i32
    %c0_i32_0 = arith.constant 0 : i32
    %c0_i32_1 = arith.constant 0 : i32
    return %c0_i32, %c0_i32_0 : i32, i32
  }
  func.func @transform_1(%arg0: i32, %arg1: i32) -> (i32, i32) {
    %c0_i32 = arith.constant 0 : i32
    %c0_i32_0 = arith.constant 0 : i32
    %c0_i32_1 = arith.constant 0 : i32
    return %c0_i32, %c0_i32_0 : i32, i32
  }
  func.func @transform_2(%arg0: i32, %arg1: i32) -> (i32, i32) {
    %c0_i32 = arith.constant 0 : i32
    %c0_i32_0 = arith.constant 0 : i32
    return %arg0, %c0_i32 : i32, i32
  }
}

</mosaic_0001>

<bundles_post_ra>
// kernel: tpu_custom_call.1
= control target key start
LH: loop header
LB: loop body
LE: loop exit
PB: predicated region body
PF: predicated region fallthrough
CT: control target
= control target key end

     0   :  { %7 = vsyncpa [#allocation5], 0  ;;  %s4161_s0 = inlined_call_operand.hbm [shape: f32[256,128], index: 0, kind: input, shape index: {}]   ;;  %s4162_s1 = inlined_call_operand.hbm [shape: f32[4,128], index: 1, kind: input, shape index: {}]   ;;  %s4163_s2 = inlined_call_operand.hbm [shape: f32[16,128], index: 2, kind: output, shape index: {}]  }
   0x1   :  { %8 = vsyncpa [#allocation8], 0 }
   0x2   :  { %9 = vsyncpa [#allocation6], 0 }
   0x3   :  { %11 = vsyncpa [#allocation6 + $0x1], 0  ;;  %s2826_s9 = smov 0   ;;  %s2828_s10 = smov 0  }
   0x4   :  { %s2830_s11 = smov 0   ;;  %s2832_s12 = smov 0  }
   0x5   :  { %s2834_s13 = smov 0   ;;  %s2836_s14 = smov 0  }
   0x6 LB: > { %s1945_s15 = sadd.s32 4294967295, %s2803_s14   ;;  %s1946_s16 = sadd.s32 4294967294, %s2803_s14   ;;  %s2803_s14 = sphi %s2836_s14, %s17_s14   ;;  %s2799_s13 = sphi %s2834_s13, %s4230_s13   ;;  %s2795_s12 = sphi %s2832_s12, %s4229_s12   ;;  %s2791_s11 = sphi %s2830_s11, %s4228_s11   ;;  %s2787_s10 = sphi %s2828_s10, %s4227_s10   ;;  %s2783_s9 = sphi %s2826_s9, %s4226_s9  }
   0x7   : > { %s29_s17 = sadd.s32 1, %s2799_s13  ;;  %s78_s18 = sadd.s32 1, %s2791_s11 }
   0x8   : > { %p31_p0 = scmp.ge.s32.totalorder %s29_s17, 2  ;;  %p88_p1 = scmp.ne.s32.totalorder %s2791_s11, %s2787_s10 }
   0x9   : > { %p89_p2 = scmp.eq.s32.totalorder %s1945_s15, 1  ;;  %p94_p3 = scmp.ne.s32.totalorder %s2787_s10, %s2783_s9 }
   0xa   : > { %s4232_s17 = smov (%p31_p0, %s29_s17), 0  ;;  %p95_p5 = scmp.eq.s32.totalorder %s1946_s16, 1 }
   0xb   : > { %p2866_p4 = por %p89_p2, %p88_p1  ;;  %s75_s20 = ssub.s32 %s2799_s13, %s4232_s17 }
   0xc   : > { %p1947_p6 = scmp.ge.s32.totalorder %s2803_s14, 1  ;;  %p76_p7 = scmp.eq.s32.totalorder %s75_s20, 0 }
   0xd   : > { %p2873_p8 = por %p95_p5, %p94_p3  ;;  %p102_p9 = scmp.lt.s32.totalorder %s2803_s14, 3 }
   0xe   : > { %s2879_s22 = scalar_select %p76_p7, %s2791_s11, %s78_s18  }
   0xf   : > { %p2881_p10 = pnand %p1947_p6, %p102_p9  ;;  %p2885_p11 = scmp.eq.s32.totalorder %s1945_s15, 0 }
  0x10   : > { %s113_s27 = sshll.u32 %s4161_s0, 4  ;;  %s2805_s28 = smov [#allocation4]   ;;  %s114_s27 = int_to_ptr.hbm [resolvable:$true] %s113_s27 }
  0x11   : > { %p2357_p12 = pneg %p2881_p10  ;;  %s115_s29 = sshll.u32 %s2805_s28, 4  ;;  %s116_s29 = int_to_ptr.vmem [resolvable:$true] %s115_s29 }
  0x12   : > { %s128_s4 = sshll.u32 %s4162_s1, 4  ;;  %s2806_s5 = smov 128   ;;  %s129_s4 = int_to_ptr.hbm [resolvable:$true] %s128_s4 }
  0x13   : > { %p2358_p13 = pnand %p2885_p11, %p2357_p12  ;;  %s2807_s6 = smov 8  }
  0x14   : > { %s2808_s7 = smov [#allocation7]   ;;  %143 = sbr.rel (%p2881_p10) target bundleno = 1330 (0x532), region = 28 }
  0x15   : > { %2360 = dma.hbm_to_vmem [thread:$0]  (!%p2358_p13), %s114_s27, 4096, %s116_s29, [#allocation5], %s2806_s5, %s2806_s5, %s2807_s6  }
  0x16   : > { %s130_s8 = sshll.u32 %s2808_s7, 4  ;;  %s131_s8 = int_to_ptr.vmem [resolvable:$true] %s130_s8 }
  0x17   : > { %2363 = dma.hbm_to_vmem [thread:$0]  (!%p2358_p13), %s129_s4, 64, %s131_s8, [#allocation8]  }
  0x19   : > { %2770 = dma.done.wait (%p2885_p11), [#allocation5], 4096  }
  0x1a   : > { %2772 = vsyncadd (%p2885_p11), [#allocation5], 4294963200 }
  0x1b   : > { %2774 = dma.done.wait (%p2885_p11), [#allocation8], 64  }
  0x1c   : > { %2776 = vsyncadd (%p2885_p11), [#allocation8], 4294967232  ;;  %s163_s15 = sand.u32 1, %s2787_s10   ;;  %v2809_v0 = vmov 0.0   ;;  %v2916_v1 = vld [vmem:[#allocation4 + $0x18] sm:$0xff]  ;;  %v2918_v2 = vld [vmem:[#allocation4 + $0x10] sm:$0xff] }
  0x1d   : > { %s1953_s16 = sshll.u32 %s163_s15, 3  ;;  %v206_v3 = vmul.f32 %v2916_v1, %v2916_v1  ;;  %v205_v4 = vmul.f32 %v2918_v2, %v2918_v2  ;;  %v651_v5 = vld [vmem:[#allocation7] sm:$0xf]  ;;  %vm653_vm0 = vcmask 1043456   ;;  %v2930_v10 = vld [vmem:[#allocation4 + $0x8] sm:$0xff]  ;;  %v2937_v14 = vld [vmem:[#allocation4 + $0x38] sm:$0xff] }
  0x1e   : > { %s2912_s18 = scalar_lea.vmem [#allocation9], %s1953_s16  ;;  %v2924_v6 = vld [vmem:[#allocation4] sm:$0xff]  ;;  %v652_v8 = vmul.f32 %v651_v5, %v651_v5  ;;  %v204_v13 = vmul.f32 %v2930_v10, %v2930_v10  ;;  %v2939_v15 = vld [vmem:[#allocation4 + $0x30] sm:$0xff]  ;;  %v2941_v16 = vld [vmem:[#allocation4 + $0x28] sm:$0xff]  ;;  %v210_v17 = vmul.f32 %v2937_v14, %v2937_v14  ;;  %p1954_p0 = scmp.ne.s32.totalorder %s2795_s12, 0 }
  0x1f   : > { %170 = vst [vmem:[%s2912_s18] sm:$0xff] %v2809_v0  ;;  %v203_v7 = vmul.f32 %v2924_v6, %v2924_v6  ;;  %241 = vadd.xlane.f32.xlu2 %v206_v3  ;;  %239 = vadd.xlane.f32.xlu1 %v205_v4  ;;  %v2928_v9 = vld [vmem:[#allocation4 + $0x20] sm:$0xff]  ;;  %v209_v18 = vmul.f32 %v2939_v15, %v2939_v15  ;;  %v2949_v20 = vld [vmem:[#allocation4 + $0x50] sm:$0xff]  ;;  %v2951_v21 = vld [vmem:[#allocation4 + $0x48] sm:$0xff] }
  0x20   : > { %v207_v11 = vmul.f32 %v2928_v9, %v2928_v9  ;;  %v654_v12 = vsel %vm653_vm0, %v652_v8, 0.0  ;;  %v208_v19 = vmul.f32 %v2941_v16, %v2941_v16  ;;  %v2953_v22 = vld [vmem:[#allocation4 + $0x40] sm:$0xff]  ;;  %v213_v23 = vmul.f32 %v2949_v20, %v2949_v20  ;;  %v2961_v26 = vld [vmem:[#allocation4 + $0x68] sm:$0xff]  ;;  %v2965_v28 = vld [vmem:[#allocation4 + $0x58] sm:$0xff] }
  0x21   : > { %235 = vadd.xlane.f32.xlu0 %v203_v7  ;;  %v212_v24 = vmul.f32 %v2951_v21, %v2951_v21  ;;  %v211_v25 = vmul.f32 %v2953_v22, %v2953_v22  ;;  %v2963_v27 = vld [vmem:[#allocation4 + $0x60] sm:$0xff]  ;;  %v216_v29 = vmul.f32 %v2961_v26, %v2961_v26  ;;  %v214_v31 = vmul.f32 %v2965_v28, %v2965_v28  ;;  %v2975_v33 = vld [vmem:[#allocation4 + $0x78] sm:$0xff]  ;;  %v2977_v34 = vld [vmem:[#allocation4 + $0x70] sm:$0xff] }
  0x22   : > { %v215_v30 = vmul.f32 %v2963_v27, %v2963_v27  ;;  %v2973_v32 = vld [vmem:[#allocation4 + $0x80] sm:$0xff]  ;;  %v218_v36 = vmul.f32 %v2975_v33, %v2975_v33  ;;  %v217_v37 = vmul.f32 %v2977_v34, %v2977_v34  ;;  %v2985_v38 = vld [vmem:[#allocation4 + $0x98] sm:$0xff]  ;;  %v2987_v39 = vld [vmem:[#allocation4 + $0x90] sm:$0xff]  ;;  %v2810_v8 = vmov 0  }
  0x23   : > { %v219_v35 = vmul.f32 %v2973_v32, %v2973_v32  ;;  %v2989_v40 = vld [vmem:[#allocation4 + $0x88] sm:$0xff]  ;;  %v222_v41 = vmul.f32 %v2985_v38, %v2985_v38  ;;  %v221_v42 = vmul.f32 %v2987_v39, %v2987_v39  ;;  %v2997_v44 = vld [vmem:[#allocation4 + $0xb0] sm:$0xff]  ;;  %v3001_v46 = vld [vmem:[#allocation4 + $0xa0] sm:$0xff]  ;;  %2427 = vset.pattern.permute.xlu0 %v2810_v8 }
  0x24   : > { %v220_v43 = vmul.f32 %v2989_v40, %v2989_v40  ;;  %v2999_v45 = vld [vmem:[#allocation4 + $0xa8] sm:$0xff]  ;;  %v225_v47 = vmul.f32 %v2997_v44, %v2997_v44  ;;  %v223_v49 = vmul.f32 %v3001_v46, %v3001_v46  ;;  %v3011_v51 = vld [vmem:[#allocation4 + $0xc0] sm:$0xff]  ;;  %v3013_v52 = vld [vmem:[#allocation4 + $0xb8] sm:$0xff] }
  0x25   : > { %v224_v48 = vmul.f32 %v2999_v45, %v2999_v45  ;;  %v3009_v50 = vld [vmem:[#allocation4 + $0xc8] sm:$0xff]  ;;  %v227_v54 = vmul.f32 %v3011_v51, %v3011_v51  ;;  %v226_v55 = vmul.f32 %v3013_v52, %v3013_v52  ;;  %v199_v56 = vld [vmem:[#allocation4 + $0xe0] sm:$0xff]  ;;  %v3021_v57 = vld [vmem:[#allocation4 + $0xd8] sm:$0xff] }
  0x26   : > { %v228_v53 = vmul.f32 %v3009_v50, %v3009_v50  ;;  %v3023_v58 = vld [vmem:[#allocation4 + $0xd0] sm:$0xff]  ;;  %v231_v59 = vmul.f32 %v199_v56, %v199_v56  ;;  %v230_v60 = vmul.f32 %v3021_v57, %v3021_v57  ;;  %v202_v62 = vld [vmem:[#allocation4 + $0xf8] sm:$0xff]  ;;  %v3029_v3 = vld [vmem:[#allocation4 + $0xe8] sm:$0xff] }
  0x27   : > { %655 = vadd.xlane.f32.xlu1 %v654_v12  ;;  %243 = vadd.xlane.f32.xlu2 %v207_v11  ;;  %v229_v61 = vmul.f32 %v3023_v58, %v3023_v58  ;;  %v201_v63 = vld [vmem:[#allocation4 + $0xf0] sm:$0xff]  ;;  %v234_v4 = vmul.f32 %v202_v62, %v202_v62  ;;  %v232_v7 = vmul.f32 %v3029_v3, %v3029_v3 }
  0x28   : > { %v233_v5 = vmul.f32 %v201_v63, %v201_v63 }
  0x29   : > { %237 = vadd.xlane.f32.xlu0 %v204_v13 }
  0x2f   : > { %249 = vadd.xlane.f32.xlu2 %v210_v17  ;;  %247 = vadd.xlane.f32.xlu1 %v209_v18 }
  0x31   : > { %245 = vadd.xlane.f32.xlu0 %v208_v19 }
  0x37   : > { %255 = vadd.xlane.f32.xlu2 %v213_v23  ;;  %253 = vadd.xlane.f32.xlu1 %v212_v24 }
  0x39   : > { %251 = vadd.xlane.f32.xlu0 %v211_v25 }
  0x3f   : > { %261 = vadd.xlane.f32.xlu2 %v216_v29  ;;  %259 = vadd.xlane.f32.xlu1 %v215_v30 }
  0x41   : > { %257 = vadd.xlane.f32.xlu0 %v214_v31 }
  0x47   : > { %267 = vadd.xlane.f32.xlu2 %v219_v35  ;;  %265 = vadd.xlane.f32.xlu1 %v218_v36 }
  0x49   : > { %263 = vadd.xlane.f32.xlu0 %v217_v37 }
  0x4f   : > { %273 = vadd.xlane.f32.xlu2 %v222_v41  ;;  %271 = vadd.xlane.f32.xlu1 %v221_v42 }
  0x51   : > { %269 = vadd.xlane.f32.xlu0 %v220_v43 }
  0x57   : > { %279 = vadd.xlane.f32.xlu2 %v225_v47  ;;  %277 = vadd.xlane.f32.xlu1 %v224_v48 }
  0x59   : > { %275 = vadd.xlane.f32.xlu0 %v223_v49 }
  0x5f   : > { %285 = vadd.xlane.f32.xlu2 %v228_v53  ;;  %283 = vadd.xlane.f32.xlu1 %v227_v54 }
  0x61   : > { %281 = vadd.xlane.f32.xlu0 %v226_v55 }
  0x67   : > { %291 = vadd.xlane.f32.xlu2 %v231_v59  ;;  %289 = vadd.xlane.f32.xlu1 %v230_v60 }
  0x69   : > { %287 = vadd.xlane.f32.xlu0 %v229_v61 }
  0x6f   : > { %297 = vadd.xlane.f32.xlu2 %v234_v4  ;;  %295 = vadd.xlane.f32.xlu1 %v233_v5 }
  0x71   : > { %293 = vadd.xlane.f32.xlu0 %v232_v7 }
  0x92   : > { %v242_v11 = vpop.xlane.xlu2 %241  ;;  %v240_v12 = vpop.xlane.xlu1 %239 }
  0x93   : > { %v302_v13 = vmax.f32 %v242_v11, 1e-16  ;;  %v301_v17 = vmax.f32 %v240_v12, 1e-16 }
  0x94   : > { %v236_v18 = vpop.xlane.xlu0 %235 }
  0x95   : > { %v3033_v19 = vmax.f32 %v236_v18, 1e-16  ;;  %2428 = vrsqrt.f32 %v302_v13  ;;  %vm367_vm1 = vweird.f32 %v302_v13  ;;  %vm357_vm3 = vweird.f32 %v301_v17 }
  0x96   : > { %2430 = vrsqrt.f32 %v301_v17 }
  0x97   : > { %2432 = vrsqrt.f32 %v3033_v19  ;;  %vm337_vm13 = vweird.f32 %v3033_v19 }
  0x9a   : > { %v656_v23 = vpop.xlane.xlu1 %655  ;;  %v244_v24 = vpop.xlane.xlu2 %243 }
  0x9b   : > { %v2429_v25 = vpop.eup %2428  ;;  %2434 = vrcp.f32 %v656_v23  ;;  %v3038_v36 = vmax.f32 %v244_v24, 1e-16  ;;  %v666_v56 = vand.u32 2147483647, %v656_v23  ;;  %v668_v63 = vand.u32 2147483648, %v656_v23 }
  0x9c   : > { %v238_v29 = vpop.xlane.xlu0 %237  ;;  %v2431_v30 = vpop.eup %2430  ;;  %v362_v31 = vmul.f32 %v2429_v25, %v302_v13  ;;  %vm368_vm2 = vweird.f32 %v2429_v25  ;;  %vm662_vm8 = vweird.f32 %v656_v23 }
  0x9d   : > { %v3036_v35 = vmax.f32 %v238_v29, 1e-16  ;;  %v3040_v37 = vpop.eup %2432  ;;  %v352_v41 = vmul.f32 %v2431_v30, %v301_v17  ;;  %vm3046_vm4 = vmor %vm367_vm1, %vm368_vm2  ;;  %vm358_vm5 = vweird.f32 %v2431_v30  ;;  %vm667_vm10 = vcmp.eq.f32.partialorder %v666_v56, 8.507059e+37 }
  0x9e   : > { %v363_v42 = vmul.f32 %v2429_v25, %v362_v31  ;;  %v332_v48 = vmul.f32 %v3040_v37, %v3033_v19  ;;  %vm359_vm7 = vmor %vm357_vm3, %vm358_vm5  ;;  %vm377_vm11 = vweird.f32 %v3038_v36 }
  0x9f   : > { %2436 = vrsqrt.f32 %v3036_v35  ;;  %v353_v43 = vmul.f32 %v2431_v30, %v352_v41 }
  0xa0   : > { %2438 = vrsqrt.f32 %v3038_v36  ;;  %v364_v47 = vmul.f32 0.5, %v363_v42  ;;  %v333_v12 = vmul.f32 %v3040_v37, %v332_v48 }
  0xa1   : > { %v2435_v49 = vpop.eup %2434  ;;  %v354_v53 = vmul.f32 0.5, %v353_v43 }
  0xa2   : > { %v365_v54 = vsub.f32 1.5, %v364_v47  ;;  %v658_v55 = vmul.f32 %v2435_v49, %v656_v23  ;;  %v250_v59 = vpop.xlane.xlu2 %249  ;;  %v248_v60 = vpop.xlane.xlu1 %247  ;;  %vm663_vm6 = vweird.f32 %v2435_v49 }
  0xa3   : > { %v355_v62 = vsub.f32 1.5, %v354_v53  ;;  %v3050_v5 = vmax.f32 %v250_v59, 1e-16  ;;  %v3060_v29 = vmax.f32 %v248_v60, 1e-16  ;;  %vm664_vm9 = vmor %vm662_vm8, %vm663_vm6 }
  0xa4   : > { %v246_v4 = vpop.xlane.xlu0 %245  ;;  %v366_v8 = vmul.f32 %v2429_v25, %v365_v54  ;;  %v659_v11 = vsub.f32 1.0, %v658_v55  ;;  %v669_v55 = vor.u32 1.1754944e-38, %v668_v63 }
  0xa5   : > { %v3052_v7 = vpop.eup %2436  ;;  %v3055_v13 = vmax.f32 %v246_v4, 1e-16  ;;  %v356_v24 = vmul.f32 %v2431_v30, %v355_v62  ;;  %2440 = vrsqrt.f32 %v3050_v5  ;;  %vm407_vm15 = vweird.f32 %v3050_v5 }
  0xa6   : > { %v3057_v18 = vpop.eup %2438  ;;  %v370_v31 = vsel %vm3046_vm4, %v2429_v25, %v366_v8  ;;  %v660_v41 = vmul.f32 %v2435_v49, %v659_v11  ;;  %v342_v42 = vmul.f32 %v3052_v7, %v3036_v35  ;;  %v334_v25 = vmul.f32 0.5, %v333_v12 }
  0xa7   : > { %v372_v43 = vmul.f32 %v3057_v18, %v3038_v36  ;;  %v679_v47 = vmul.f32 %v370_v31, %v2916_v1  ;;  %v360_v48 = vsel %vm359_vm7, %v2431_v30, %v356_v24  ;;  %2442 = vrsqrt.f32 %v3055_v13 }
  0xa8   : > { %v678_v53 = vmul.f32 %v360_v48, %v2918_v2  ;;  %v661_v54 = vadd.f32 %v2435_v49, %v660_v41  ;;  %2444 = vrsqrt.f32 %v3060_v29  ;;  %v343_v60 = vmul.f32 %v3052_v7, %v342_v42 }
  0xa9   : > { %v373_v17 = vmul.f32 %v3057_v18, %v372_v43  ;;  %v335_v63 = vsub.f32 1.5, %v334_v25  ;;  %vm378_vm12 = vweird.f32 %v3057_v18  ;;  %vm387_vm14 = vweird.f32 %v3055_v13 }
  0xaa   : > { %v2106_v59 = vpack.c.bf16 %v679_v47, %v678_v53  ;;  %v665_v1 = vsel %vm664_vm9, %v2435_v49, %v661_v54  ;;  %v256_v23 = vpop.xlane.xlu2 %255  ;;  %v254_v61 = vpop.xlane.xlu1 %253  ;;  %v3095_v41 = vmul.f32 0.5, %v343_v60  ;;  %vm3113_vm1 = vmor %vm377_vm11, %vm378_vm12  ;;  %vm397_vm2 = vweird.f32 %v3060_v29 }
  0xab   : > { %v374_v30 = vmul.f32 0.5, %v373_v17  ;;  %v3077_v62 = vpop.eup %2440  ;;  %v670_v2 = vsel %vm667_vm10, %v669_v55, %v665_v1  ;;  %v3080_v8 = vmax.f32 %v256_v23, 1e-16  ;;  %v3092_v31 = vmax.f32 %v254_v61, 1e-16 }
  0xac   : > { %v252_v4 = vpop.xlane.xlu0 %251  ;;  %2290 = vst [vmem:[#allocation2 + $0x8] sm:$0xff] %v2106_v59   ;;  %v3082_v56 = vmul.f32 500.0, %v670_v2  ;;  %v402_v12 = vmul.f32 %v3077_v62, %v3050_v5  ;;  %vm408_vm3 = vweird.f32 %v3077_v62  ;;  %v336_v60 = vmul.f32 %v3040_v37, %v335_v63 }
  0xad   : > { %v375_v11 = vsub.f32 1.5, %v374_v30  ;;  %v3086_v49 = vpop.eup %2442  ;;  %2305 = vst [vmem:[#allocation3 + $0x8] sm:$0xff] %v2106_v59   ;;  %v3089_v24 = vmax.f32 %v252_v4, 1e-16  ;;  %2446 = vrsqrt.f32 %v3080_v8  ;;  %v345_v36 = vsub.f32 1.5, %v3095_v41  ;;  %vm3140_vm7 = vmor %vm407_vm15, %vm408_vm3 }
  0xae   : > { %v673_v42 = vrot.slane %v3082_v56, 4  ;;  %v382_v43 = vmul.f32 %v3086_v49, %v3055_v13  ;;  %v3101_v47 = vpop.eup %2444  ;;  %v403_v53 = vmul.f32 %v3077_v62, %v402_v12  ;;  %vm388_vm4 = vweird.f32 %v3086_v49 }
  0xaf   : > { %v376_v48 = vmul.f32 %v3057_v18, %v375_v11  ;;  %2448 = vrsqrt.f32 %v3089_v24  ;;  %v392_v55 = vmul.f32 %v3101_v47, %v3060_v29  ;;  %vm417_vm5 = vweird.f32 %v3089_v24  ;;  %vm3153_vm9 = vmor %vm387_vm14, %vm388_vm4 }
  0xb0   : > { %v675_v54 = vsel %vm653_vm0, %v3082_v56, %v673_v42  ;;  %v383_v17 = vmul.f32 %v3086_v49, %v382_v43  ;;  %v404_v59 = vmul.f32 0.5, %v403_v53  ;;  %2450 = vrsqrt.f32 %v3092_v31 }
  0xb1   : > { %774 = vperm.xlu0 %2427, %v675_v54   ;;  %v393_v30 = vmul.f32 %v3101_v47, %v392_v55  ;;  %v380_v4 = vsel %vm3113_vm1, %v3057_v18, %v376_v48  ;;  %vm437_vm6 = vweird.f32 %v3080_v8  ;;  %vm398_vm8 = vweird.f32 %v3101_v47 }
  0xb2   : > { %v384_v1 = vmul.f32 0.5, %v383_v17  ;;  %v262_v23 = vpop.xlane.xlu2 %261  ;;  %v260_v61 = vpop.xlane.xlu1 %259  ;;  %v405_v11 = vsub.f32 1.5, %v404_v59  ;;  %vm427_vm10 = vweird.f32 %v3092_v31  ;;  %vm338_vm11 = vweird.f32 %v3040_v37  ;;  %vm3178_vm12 = vmor %vm397_vm2, %vm398_vm8 }
  0xb3   : > { %v3127_v2 = vpop.eup %2446  ;;  %v3134_v12 = vmax.f32 %v262_v23, 1e-16  ;;  %v394_v53 = vmul.f32 0.5, %v393_v30  ;;  %v3166_v59 = vmax.f32 %v260_v61, 1e-16  ;;  %v680_v30 = vmul.f32 %v380_v4, %v2928_v9  ;;  %vm3198_vm15 = vmor %vm337_vm13, %vm338_vm11 }
  0xb4   : > { %v258_v63 = vpop.xlane.xlu0 %257  ;;  %v385_v42 = vsub.f32 1.5, %v384_v1  ;;  %v432_v18 = vmul.f32 %v3127_v2, %v3080_v8  ;;  %v406_v5 = vmul.f32 %v3077_v62, %v405_v11  ;;  %vm438_vm14 = vweird.f32 %v3127_v2 }
  0xb5   : > { %v3147_v48 = vpop.eup %2448  ;;  %v3159_v25 = vmax.f32 %v258_v63, 1e-16  ;;  %2452 = vrsqrt.f32 %v3134_v12  ;;  %v395_v55 = vsub.f32 1.5, %v394_v53  ;;  %vm3237_vm3 = vmor %vm437_vm6, %vm438_vm14  ;;  %vm457_vm11 = vweird.f32 %v3166_v59 }
  0xb6   : > { %v386_v17 = vmul.f32 %v3086_v49, %v385_v42  ;;  %v412_v13 = vmul.f32 %v3147_v48, %v3089_v24  ;;  %v3168_v1 = vpop.eup %2450  ;;  %v410_v23 = vsel %vm3140_vm7, %v3077_v62, %v406_v5  ;;  %v433_v63 = vmul.f32 %v3127_v2, %v432_v18 }
  0xb7   : > { %2454 = vrsqrt.f32 %v3159_v25  ;;  %v396_v61 = vmul.f32 %v3101_v47, %v395_v55  ;;  %v683_v4 = vmul.f32 %v410_v23, %v2937_v14  ;;  %v422_v43 = vmul.f32 %v3168_v1, %v3092_v31 }
  0xb8   : > { %v390_v9 = vsel %vm3153_vm9, %v3086_v49, %v386_v17  ;;  %v413_v62 = vmul.f32 %v3147_v48, %v412_v13  ;;  %v434_v42 = vmul.f32 0.5, %v433_v63  ;;  %vm418_vm1 = vweird.f32 %v3147_v48 }
  0xb9   : > { %v681_v29 = vmul.f32 %v390_v9, %v2941_v16  ;;  %v400_v53 = vsel %vm3178_vm12, %v3101_v47, %v396_v61  ;;  %2456 = vrsqrt.f32 %v3166_v59  ;;  %v423_v55 = vmul.f32 %v3168_v1, %v422_v43  ;;  %vm3226_vm13 = vmor %vm417_vm5, %vm418_vm1 }
  0xba   : > { %v414_v18 = vmul.f32 0.5, %v413_v62  ;;  %v268_v14 = vpop.xlane.xlu2 %267  ;;  %v266_v16 = vpop.xlane.xlu1 %265  ;;  %v682_v19 = vmul.f32 %v400_v53, %v2939_v15  ;;  %v435_v17 = vsub.f32 1.5, %v434_v42  ;;  %v3218_v63 = vsel %vm3198_vm15, %v3040_v37, %v336_v60 }
  0xbb   : > { %v3207_v54 = vpop.eup %2452  ;;  %v2111_v5 = vpack.c.bf16 %v681_v29, %v680_v30  ;;  %v424_v62 = vmul.f32 0.5, %v423_v55  ;;  %vm428_vm2 = vweird.f32 %v3168_v1  ;;  %vm447_vm4 = vweird.f32 %v3159_v25 }
  0xbc   : > { %v264_v13 = vpop.xlane.xlu0 %263  ;;  %v415_v23 = vsub.f32 1.5, %v414_v18  ;;  %v462_v47 = vmul.f32 %v3207_v54, %v3134_v12  ;;  %v2116_v30 = vpack.c.bf16 %v683_v4, %v682_v19  ;;  %v436_v61 = vmul.f32 %v3127_v2, %v435_v17  ;;  %vm3258_vm6 = vmor %vm427_vm10, %vm428_vm2 }
  0xbd   : > { %v3213_v11 = vmax.f32 %v264_v13, 1e-16  ;;  %v3220_v9 = vpop.eup %2454  ;;  %2291 = vst [vmem:[#allocation2 + $0x10] sm:$0xff] %v2111_v5   ;;  %v3244_v4 = vmax.f32 %v268_v14, 1e-16  ;;  %v425_v42 = vsub.f32 1.5, %v424_v62  ;;  %vm467_vm5 = vweird.f32 %v3134_v12 }
  0xbe   : > { %2306 = vst [vmem:[#allocation3 + $0x10] sm:$0xff] %v2111_v5   ;;  %v416_v37 = vmul.f32 %v3147_v48, %v415_v23  ;;  %v442_v24 = vmul.f32 %v3220_v9, %v3159_v25  ;;  %v463_v29 = vmul.f32 %v3207_v54, %v462_v47  ;;  %vm468_vm7 = vweird.f32 %v3207_v54 }
  0xbf   : > { %2292 = vst [vmem:[#allocation2 + $0x18] sm:$0xff] %v2116_v30   ;;  %2458 = vrsqrt.f32 %v3213_v11  ;;  %v3249_v8 = vpop.eup %2456  ;;  %v440_v14 = vsel %vm3237_vm3, %v3127_v2, %v436_v61  ;;  %v426_v5 = vmul.f32 %v3168_v1, %v425_v42  ;;  %vm448_vm8 = vweird.f32 %v3220_v9  ;;  %vm3287_vm9 = vmor %vm467_vm5, %vm468_vm7 }
  0xc0   : > { %2307 = vst [vmem:[#allocation3 + $0x18] sm:$0xff] %v2116_v30   ;;  %v420_v43 = vsel %vm3226_vm13, %v3147_v48, %v416_v37  ;;  %v443_v53 = vmul.f32 %v3220_v9, %v442_v24  ;;  %v464_v18 = vmul.f32 0.5, %v463_v29  ;;  %v452_v31 = vmul.f32 %v3249_v8, %v3166_v59  ;;  %vm3299_vm10 = vmor %vm447_vm4, %vm448_vm8 }
  0xc1   : > { %v684_v48 = vmul.f32 %v420_v43, %v2953_v22  ;;  %2460 = vrsqrt.f32 %v3244_v4  ;;  %v430_v23 = vsel %vm3258_vm6, %v3168_v1, %v426_v5  ;;  %v3277_v47 = vmax.f32 %v266_v16, 1e-16 }
  0xc2   : > { %v444_v19 = vmul.f32 0.5, %v443_v53  ;;  %v465_v17 = vsub.f32 1.5, %v464_v18  ;;  %v274_v55 = vpop.xlane.xlu2 %273  ;;  %v272_v13 = vpop.xlane.xlu1 %271  ;;  %v453_v2 = vmul.f32 %v3249_v8, %v452_v31  ;;  %v685_v61 = vmul.f32 %v430_v23, %v2951_v21 }
  0xc3   : > { %v3279_v15 = vmax.f32 %v274_v55, 1e-16  ;;  %vm458_vm12 = vweird.f32 %v3249_v8  ;;  %2462 = vrsqrt.f32 %v3277_v47  ;;  %v3312_v25 = vmul.f32 %v3052_v7, %v345_v36 }
  0xc4   : > { %v270_v30 = vpop.xlane.xlu0 %269  ;;  %v445_v22 = vsub.f32 1.5, %v444_v19  ;;  %v466_v62 = vmul.f32 %v3207_v54, %v465_v17  ;;  %v454_v60 = vmul.f32 0.5, %v453_v2  ;;  %v2121_v12 = vpack.c.bf16 %v685_v61, %v684_v48  ;;  %vm3324_vm14 = vmor %vm457_vm11, %vm458_vm12 }
  0xc5   : > { %v3291_v1 = vmax.f32 %v270_v30, 1e-16  ;;  %v3293_v16 = vpop.eup %2458  ;;  %v686_v42 = vmul.f32 %v440_v14, %v2949_v20  ;;  %v3332_v36 = vmul.f32 %v3218_v63, %v2924_v6  ;;  %vm477_vm15 = vweird.f32 %v3213_v11 }
  0xc6   : > { %v446_v24 = vmul.f32 %v3220_v9, %v445_v22  ;;  %v472_v29 = vmul.f32 %v3293_v16, %v3213_v11  ;;  %v470_v59 = vsel %vm3287_vm9, %v3207_v54, %v466_v62  ;;  %v455_v43 = vsub.f32 1.5, %v454_v60  ;;  %2293 = vst [vmem:[#allocation2 + $0x20] sm:$0xff] %v2121_v12  }
  0xc7   : > { %2464 = vrsqrt.f32 %v3291_v1  ;;  %v3319_v49 = vpop.eup %2460  ;;  %2308 = vst [vmem:[#allocation3 + $0x20] sm:$0xff] %v2121_v12   ;;  %v689_v14 = vmul.f32 %v470_v59, %v2961_v26  ;;  %vm497_vm1 = vweird.f32 %v3244_v4  ;;  %v3341_v31 = vmax.f32 %v272_v13, 1e-16 }
  0xc8   : > { %v450_v53 = vsel %vm3299_vm10, %v3220_v9, %v446_v24  ;;  %v473_v20 = vmul.f32 %v3293_v16, %v472_v29  ;;  %2466 = vrsqrt.f32 %v3279_v15  ;;  %v456_v18 = vmul.f32 %v3249_v8, %v455_v43 }
  0xc9   : > { %v687_v54 = vmul.f32 %v450_v53, %v2965_v28  ;;  %v492_v9 = vmul.f32 %v3319_v49, %v3244_v4  ;;  %v3343_v17 = vpop.eup %2462  ;;  %vm478_vm13 = vweird.f32 %v3293_v16  ;;  %vm498_vm2 = vweird.f32 %v3319_v49 }
  0xca   : > { %v474_v5 = vmul.f32 0.5, %v473_v20  ;;  %v280_v48 = vpop.xlane.xlu2 %279  ;;  %v278_v19 = vpop.xlane.xlu1 %277  ;;  %v460_v28 = vsel %vm3324_vm14, %v3249_v8, %v456_v18  ;;  %v482_v13 = vmul.f32 %v3343_v17, %v3277_v47  ;;  %2468 = vrsqrt.f32 %v3341_v31  ;;  %vm3371_vm3 = vmor %vm477_vm15, %vm478_vm13 }
  0xcb   : > { %v2126_v55 = vpack.c.bf16 %v687_v54, %v686_v42  ;;  %v493_v23 = vmul.f32 %v3319_v49, %v492_v9  ;;  %v688_v26 = vmul.f32 %v460_v28, %v2963_v27  ;;  %v3359_v62 = vmax.f32 %v280_v48, 1e-16  ;;  %vm3387_vm7 = vmor %vm497_vm1, %vm498_vm2 }
  0xcc   : > { %v276_v2 = vpop.xlane.xlu0 %275  ;;  %v475_v30 = vsub.f32 1.5, %v474_v5  ;;  %v483_v60 = vmul.f32 %v3343_v17, %v482_v13  ;;  %vm487_vm4 = vweird.f32 %v3277_v47  ;;  %vm527_vm5 = vweird.f32 %v3279_v15 }
  0xcd   : > { %v3354_v61 = vpop.eup %2464  ;;  %2294 = vst [vmem:[#allocation2 + $0x28] sm:$0xff] %v2126_v55   ;;  %v494_v22 = vmul.f32 0.5, %v493_v23  ;;  %v3357_v8 = vmax.f32 %v276_v2, 1e-16  ;;  %v2131_v27 = vpack.c.bf16 %v689_v14, %v688_v26  ;;  %vm488_vm6 = vweird.f32 %v3343_v17 }
  0xce   : > { %v3361_v37 = vpop.eup %2466  ;;  %2309 = vst [vmem:[#allocation3 + $0x28] sm:$0xff] %v2126_v55   ;;  %v476_v21 = vmul.f32 %v3293_v16, %v475_v30  ;;  %v502_v12 = vmul.f32 %v3354_v61, %v3291_v1  ;;  %v484_v59 = vmul.f32 0.5, %v483_v60  ;;  %vm507_vm8 = vweird.f32 %v3291_v1  ;;  %vm3406_vm12 = vmor %vm487_vm4, %vm488_vm6 }
  0xcf   : > { %v495_v29 = vsub.f32 1.5, %v494_v22  ;;  %v522_v42 = vmul.f32 %v3361_v37, %v3279_v15  ;;  %2295 = vst [vmem:[#allocation2 + $0x30] sm:$0xff] %v2131_v27   ;;  %2470 = vrsqrt.f32 %v3357_v8  ;;  %vm508_vm9 = vweird.f32 %v3354_v61 }
  0xd0   : > { %v503_v43 = vmul.f32 %v3354_v61, %v502_v12  ;;  %2310 = vst [vmem:[#allocation3 + $0x30] sm:$0xff] %v2131_v27   ;;  %v480_v20 = vsel %vm3371_vm3, %v3293_v16, %v476_v21  ;;  %v485_v54 = vsub.f32 1.5, %v484_v59  ;;  %2472 = vrsqrt.f32 %v3359_v62  ;;  %v3398_v14 = vpop.eup %2468  ;;  %vm3425_vm1 = vmor %vm507_vm8, %vm508_vm9 }
  0xd1   : > { %v496_v11 = vmul.f32 %v3319_v49, %v495_v29  ;;  %v523_v41 = vmul.f32 %v3361_v37, %v522_v42  ;;  %vm347_vm10 = vweird.f32 %v3036_v35  ;;  %vm348_vm11 = vweird.f32 %v3052_v7 }
  0xd2   : > { %v504_v18 = vmul.f32 0.5, %v503_v43  ;;  %v286_v9 = vpop.xlane.xlu2 %285  ;;  %v284_v4 = vpop.xlane.xlu1 %283  ;;  %vm528_vm14 = vweird.f32 %v3361_v37  ;;  %vm517_vm15 = vweird.f32 %v3341_v31  ;;  %v3412_v48 = vmax.f32 %v278_v19, 1e-16  ;;  %vm3496_vm8 = vmor %vm347_vm10, %vm348_vm11 }
  0xd3   : > { %v524_v16 = vmul.f32 0.5, %v523_v41  ;;  %v500_v28 = vsel %vm3387_vm7, %v3319_v49, %v496_v11  ;;  %v486_v23 = vmul.f32 %v3343_v17, %v485_v54  ;;  %v512_v47 = vmul.f32 %v3398_v14, %v3341_v31  ;;  %vm3448_vm13 = vmor %vm527_vm5, %vm528_vm14 }
  0xd4   : > { %v282_v55 = vpop.xlane.xlu0 %281  ;;  %v505_v2 = vsub.f32 1.5, %v504_v18  ;;  %v690_v26 = vmul.f32 %v480_v20, %v2977_v34  ;;  %2474 = vrsqrt.f32 %v3412_v48  ;;  %v3430_v49 = vmax.f32 %v286_v9, 1e-16 }
  0xd5   : > { %v525_v30 = vsub.f32 1.5, %v524_v16  ;;  %v3432_v13 = vpop.eup %2470  ;;  %v490_v22 = vsel %vm3406_vm12, %v3343_v17, %v486_v23  ;;  %v513_v27 = vmul.f32 %v3398_v14, %v512_v47  ;;  %v3439_v1 = vmax.f32 %v282_v55, 1e-16 }
  0xd6   : > { %v506_v34 = vmul.f32 %v3354_v61, %v505_v2  ;;  %v692_v21 = vmul.f32 %v500_v28, %v2973_v32  ;;  %v691_v60 = vmul.f32 %v490_v22, %v2975_v33  ;;  %v532_v17 = vmul.f32 %v3432_v13, %v3357_v8  ;;  %v3454_v29 = vpop.eup %2472 }
  0xd7   : > { %v526_v12 = vmul.f32 %v3361_v37, %v525_v30  ;;  %v514_v33 = vmul.f32 0.5, %v513_v27  ;;  %vm518_vm2 = vweird.f32 %v3398_v14  ;;  %2476 = vrsqrt.f32 %v3439_v1 }
  0xd8   : > { %v510_v32 = vsel %vm3425_vm1, %v3354_v61, %v506_v34  ;;  %v2136_v42 = vpack.c.bf16 %v691_v60, %v690_v26  ;;  %v533_v59 = vmul.f32 %v3432_v13, %v532_v17  ;;  %vm537_vm3 = vweird.f32 %v3357_v8  ;;  %vm3474_vm5 = vmor %vm517_vm15, %vm518_vm2 }
  0xd9   : > { %v693_v15 = vmul.f32 %v510_v32, %v2989_v40  ;;  %v530_v43 = vsel %vm3448_vm13, %v3361_v37, %v526_v12  ;;  %v515_v11 = vsub.f32 1.5, %v514_v33  ;;  %v552_v61 = vmul.f32 %v3454_v29, %v3359_v62 }
  0xda   : > { %vm557_vm4 = vweird.f32 %v3359_v62  ;;  %v3470_v53 = vpop.eup %2474  ;;  %2296 = vst [vmem:[#allocation2 + $0x38] sm:$0xff] %v2136_v42   ;;  %v534_v20 = vmul.f32 0.5, %v533_v59  ;;  %vm547_vm6 = vweird.f32 %v3412_v48  ;;  %2478 = vrsqrt.f32 %v3430_v49  ;;  %v292_v54 = vpop.xlane.xlu2 %291 }
  0xdb   : > { %v2141_v41 = vpack.c.bf16 %v693_v15, %v692_v21  ;;  %2311 = vst [vmem:[#allocation3 + $0x38] sm:$0xff] %v2136_v42   ;;  %v516_v18 = vmul.f32 %v3398_v14, %v515_v11  ;;  %vm538_vm7 = vweird.f32 %v3432_v13  ;;  %v553_v9 = vmul.f32 %v3454_v29, %v552_v61  ;;  %v290_v5 = vpop.xlane.xlu1 %289 }
  0xdc   : > { %v288_v37 = vpop.xlane.xlu0 %287  ;;  %v542_v31 = vmul.f32 %v3470_v53, %v3412_v48  ;;  %v695_v16 = vmul.f32 %v530_v43, %v2985_v38  ;;  %v535_v55 = vsub.f32 1.5, %v534_v20  ;;  %v3486_v28 = vmax.f32 %v284_v4, 1e-16  ;;  %vm3511_vm10 = vmor %vm537_vm3, %vm538_vm7 }
  0xdd   : > { %2297 = vst [vmem:[#allocation2 + $0x40] sm:$0xff] %v2141_v41   ;;  %v3488_v23 = vmax.f32 %v288_v37, 1e-16  ;;  %v3490_v2 = vpop.eup %2476  ;;  %v520_v38 = vsel %vm3474_vm5, %v3398_v14, %v516_v18  ;;  %v554_v26 = vmul.f32 0.5, %v553_v9  ;;  %vm558_vm9 = vweird.f32 %v3454_v29 }
  0xde   : > { %2312 = vst [vmem:[#allocation3 + $0x40] sm:$0xff] %v2141_v41   ;;  %v543_v4 = vmul.f32 %v3470_v53, %v542_v31  ;;  %v694_v19 = vmul.f32 %v520_v38, %v2987_v39  ;;  %v536_v30 = vmul.f32 %v3432_v13, %v535_v55  ;;  %v562_v14 = vmul.f32 %v3490_v2, %v3439_v1  ;;  %vm3525_vm12 = vmor %vm557_vm4, %vm558_vm9 }
  0xdf   : > { %v3517_v22 = vmax.f32 %v292_v54, 1e-16  ;;  %v555_v34 = vsub.f32 1.5, %v554_v26  ;;  %vm548_vm11 = vweird.f32 %v3470_v53  ;;  %2480 = vrsqrt.f32 %v3486_v28 }
  0xe0   : > { %v544_v27 = vmul.f32 0.5, %v543_v4  ;;  %v3521_v39 = vpop.eup %2478  ;;  %v2146_v21 = vpack.c.bf16 %v695_v16, %v694_v19  ;;  %v563_v60 = vmul.f32 %v3490_v2, %v562_v14  ;;  %2482 = vrsqrt.f32 %v3488_v23  ;;  %vm3543_vm14 = vmor %vm547_vm6, %vm548_vm11 }
  0xe1   : > { %v350_v12 = vsel %vm3496_vm8, %v3052_v7, %v3312_v25  ;;  %v540_v24 = vsel %vm3511_vm10, %v3432_v13, %v536_v30  ;;  %v556_v17 = vmul.f32 %v3454_v29, %v555_v34  ;;  %v582_v32 = vmul.f32 %v3521_v39, %v3430_v49 }
  0xe2   : > { %v545_v62 = vsub.f32 1.5, %v544_v27  ;;  %2298 = vst [vmem:[#allocation2 + $0x48] sm:$0xff] %v2146_v21   ;;  %v564_v42 = vmul.f32 0.5, %v563_v60  ;;  %vm567_vm15 = vweird.f32 %v3439_v1  ;;  %vm568_vm1 = vweird.f32 %v3490_v2  ;;  %v298_v11 = vpop.xlane.xlu2 %297 }
  0xe3   : > { %2484 = vrsqrt.f32 %v3517_v22  ;;  %2313 = vst [vmem:[#allocation3 + $0x48] sm:$0xff] %v2146_v21   ;;  %v560_v7 = vsel %vm3525_vm12, %v3454_v29, %v556_v17  ;;  %v583_v48 = vmul.f32 %v3521_v39, %v582_v32  ;;  %vm587_vm13 = vweird.f32 %v3430_v49  ;;  %vm3570_vm2 = vmor %vm567_vm15, %vm568_vm1 }
  0xe4   : > { %v546_v25 = vmul.f32 %v3470_v53, %v545_v62  ;;  %v294_v13 = vpop.xlane.xlu0 %293  ;;  %v696_v15 = vmul.f32 %v540_v24, %v3001_v46  ;;  %v565_v59 = vsub.f32 1.5, %v564_v42  ;;  %v3557_v43 = vmax.f32 %v290_v5, 1e-16 }
  0xe5   : > { %v3560_v61 = vmul.f32 %v350_v12, %v2930_v10  ;;  %v2481_v41 = vpop.eup %2480  ;;  %v698_v40 = vmul.f32 %v560_v7, %v2997_v44  ;;  %v584_v20 = vmul.f32 0.5, %v583_v48  ;;  %vm588_vm3 = vweird.f32 %v3521_v39  ;;  %v296_v10 = vpop.xlane.xlu1 %295 }
  0xe6   : > { %v550_v29 = vsel %vm3543_vm14, %v3470_v53, %v546_v25  ;;  %v3575_v37 = vpop.eup %2482  ;;  %v566_v54 = vmul.f32 %v3490_v2, %v565_v59  ;;  %v572_v53 = vmul.f32 %v2481_v41, %v3486_v28  ;;  %v3580_v18 = vmax.f32 %v294_v13, 1e-16  ;;  %vm3600_vm4 = vmor %vm587_vm13, %vm588_vm3 }
  0xe7   : > { %v697_v44 = vmul.f32 %v550_v29, %v2999_v45  ;;  %v585_v9 = vsub.f32 1.5, %v584_v20  ;;  %v592_v1 = vmul.f32 %v3575_v37, %v3488_v23  ;;  %2486 = vrsqrt.f32 %v3557_v43 }
  0xe8   : > { %v3585_v31 = vmax.f32 %v298_v11, 1e-16  ;;  %v570_v45 = vsel %vm3570_vm2, %v3490_v2, %v566_v54  ;;  %v573_v55 = vmul.f32 %v2481_v41, %v572_v53  ;;  %v3592_v47 = vmax.f32 %v296_v10, 1e-16 }
  0xe9   : > { %v3587_v5 = vpop.eup %2484  ;;  %v2151_v16 = vpack.c.bf16 %v697_v44, %v696_v15  ;;  %v699_v38 = vmul.f32 %v570_v45, %v3013_v52  ;;  %v586_v26 = vmul.f32 %v3521_v39, %v585_v9  ;;  %v593_v19 = vmul.f32 %v3575_v37, %v592_v1 }
  0xea   : > { %v612_v2 = vmul.f32 %v3587_v5, %v3517_v22  ;;  %v574_v30 = vmul.f32 0.5, %v573_v55  ;;  %vm577_vm5 = vweird.f32 %v3486_v28  ;;  %vm578_vm6 = vweird.f32 %v2481_v41 }
  0xeb   : > { %2299 = vst [vmem:[#allocation2 + $0x50] sm:$0xff] %v2151_v16   ;;  %2488 = vrsqrt.f32 %v3580_v18  ;;  %v2156_v52 = vpack.c.bf16 %v699_v38, %v698_v40  ;;  %v594_v35 = vmul.f32 0.5, %v593_v19  ;;  %vm597_vm7 = vweird.f32 %v3488_v23  ;;  %vm3616_vm9 = vmor %vm577_vm5, %vm578_vm6  ;;  %v2494_v38 = vld [vmem:[#allocation4 + $0xe0] sm:$0xff] }
  0xec   : > { %2314 = vst [vmem:[#allocation3 + $0x50] sm:$0xff] %v2151_v16   ;;  %v613_v49 = vmul.f32 %v3587_v5, %v612_v2  ;;  %v590_v14 = vsel %vm3600_vm4, %v3521_v39, %v586_v26  ;;  %v575_v34 = vsub.f32 1.5, %v574_v30  ;;  %vm598_vm8 = vweird.f32 %v3575_v37 }
  0xed   : > { %2490 = vrsqrt.f32 %v3585_v31  ;;  %v2487_v28 = vpop.eup %2486  ;;  %2300 = vst [vmem:[#allocation2 + $0x58] sm:$0xff] %v2156_v52   ;;  %v595_v21 = vsub.f32 1.5, %v594_v35  ;;  %v2101_v39 = vpack.c.bf16 %v3560_v61, %v3332_v36  ;;  %v701_v24 = vmul.f32 %v590_v14, %v3009_v50  ;;  %vm3628_vm10 = vmor %vm597_vm7, %vm598_vm8  ;;  %v2495_v35 = vld [vmem:[#allocation4 + $0xf8] sm:$0xff] }
  0xee   : > { %v614_v8 = vmul.f32 0.5, %v613_v49  ;;  %2492 = vrsqrt.f32 %v3592_v47  ;;  %2315 = vst [vmem:[#allocation3 + $0x58] sm:$0xff] %v2156_v52   ;;  %v576_v60 = vmul.f32 %v2481_v41, %v575_v34  ;;  %v602_v12 = vmul.f32 %v2487_v28, %v3557_v43  ;;  %v2496_v34 = vld [vmem:[#allocation4 + $0xf0] sm:$0xff] }
  0xef   : > { %v596_v17 = vmul.f32 %v3575_v37, %v595_v21  ;;  %2102 = vst [vmem:[#allocation2] sm:$0xff] %v2101_v39   ;;  %vm617_vm11 = vweird.f32 %v3517_v22  ;;  %vm618_vm12 = vweird.f32 %v3587_v5  ;;  %vm607_vm14 = vweird.f32 %v3557_v43 }
  0xf0   : > { %v615_v32 = vsub.f32 1.5, %v614_v8  ;;  %v580_v42 = vsel %vm3616_vm9, %v2481_v41, %v576_v60  ;;  %v603_v7 = vmul.f32 %v2487_v28, %v602_v12  ;;  %vm608_vm15 = vweird.f32 %v2487_v28  ;;  %vm3644_vm1 = vmor %vm617_vm11, %vm618_vm12 }
  0xf1   : > { %v2489_v33 = vpop.eup %2488  ;;  %v700_v25 = vmul.f32 %v580_v42, %v3011_v51  ;;  %v600_v48 = vsel %vm3628_vm10, %v3575_v37, %v596_v17  ;;  %vm3649_vm13 = vmor %vm607_vm14, %vm608_vm15  ;;  %vm627_vm2 = vweird.f32 %v3580_v18  ;;  %vm647_vm4 = vweird.f32 %v3585_v31 }
  0xf2   : > { %v622_v50 = vmul.f32 %v2489_v33, %v3580_v18  ;;  %v604_v13 = vmul.f32 0.5, %v603_v7  ;;  %v616_v11 = vmul.f32 %v3587_v5, %v615_v32  ;;  %vm628_vm3 = vweird.f32 %v2489_v33 }
  0xf3   : > { %v2491_v23 = vpop.eup %2490  ;;  %v2161_v59 = vpack.c.bf16 %v701_v24, %v700_v25  ;;  %v702_v10 = vmul.f32 %v600_v48, %v3023_v58  ;;  %vm3661_vm6 = vmor %vm627_vm2, %vm628_vm3  ;;  %vm637_vm7 = vweird.f32 %v3592_v47 }
  0xf4   : > { %v2493_v15 = vpop.eup %2492  ;;  %v623_v51 = vmul.f32 %v2489_v33, %v622_v50  ;;  %v642_v22 = vmul.f32 %v2491_v23, %v3585_v31  ;;  %v605_v40 = vsub.f32 1.5, %v604_v13  ;;  %v620_v54 = vsel %vm3644_vm1, %v3587_v5, %v616_v11 }
  0xf5   : > { %v632_v29 = vmul.f32 %v2493_v15, %v3592_v47  ;;  %2301 = vst [vmem:[#allocation2 + $0x60] sm:$0xff] %v2161_v59   ;;  %vm648_vm5 = vweird.f32 %v2491_v23  ;;  %vm638_vm8 = vweird.f32 %v2493_v15  ;;  %v704_v5 = vmul.f32 %v2494_v38, %v620_v54 }
  0xf6   : > { %v624_v43 = vmul.f32 0.5, %v623_v51  ;;  %v643_v20 = vmul.f32 %v2491_v23, %v642_v22  ;;  %2316 = vst [vmem:[#allocation3 + $0x60] sm:$0xff] %v2161_v59   ;;  %v606_v37 = vmul.f32 %v2487_v28, %v605_v40  ;;  %vm649_vm9 = vmor %vm647_vm4, %vm648_vm5 }
  0xf7   : > { %v633_v44 = vmul.f32 %v2493_v15, %v632_v29  ;;  %vm639_vm10 = vmor %vm637_vm7, %vm638_vm8 }
  0xf8   : > { %v625_v53 = vsub.f32 1.5, %v624_v43  ;;  %v644_v9 = vmul.f32 0.5, %v643_v20  ;;  %v610_v1 = vsel %vm3649_vm13, %v2487_v28, %v606_v37 }
  0xf9   : > { %v634_v16 = vmul.f32 0.5, %v633_v44  ;;  %v703_v58 = vmul.f32 %v610_v1, %v3021_v57 }
  0xfa   : > { %v626_v45 = vmul.f32 %v2489_v33, %v625_v53  ;;  %v645_v55 = vsub.f32 1.5, %v644_v9 }
  0xfb   : > { %v635_v26 = vsub.f32 1.5, %v634_v16  ;;  %v2166_v4 = vpack.c.bf16 %v703_v58, %v702_v10 }
  0xfc   : > { %v630_v19 = vsel %vm3661_vm6, %v2489_v33, %v626_v45  ;;  %v646_v2 = vmul.f32 %v2491_v23, %v645_v55 }
  0xfd   : > { %v705_v30 = vmul.f32 %v630_v19, %v3029_v3  ;;  %v636_v47 = vmul.f32 %v2493_v15, %v635_v26  ;;  %2302 = vst [vmem:[#allocation2 + $0x68] sm:$0xff] %v2166_v4  }
  0xfe   : > { %v650_v52 = vsel %vm649_vm9, %v2491_v23, %v646_v2  ;;  %2317 = vst [vmem:[#allocation3 + $0x68] sm:$0xff] %v2166_v4  }
  0xff   : > { %v2171_v57 = vpack.c.bf16 %v705_v30, %v704_v5  ;;  %v707_v49 = vmul.f32 %v2495_v35, %v650_v52  ;;  %v640_v14 = vsel %vm639_vm10, %v2493_v15, %v636_v47 }
 0x100   : > { %v706_v31 = vmul.f32 %v2496_v34, %v640_v14 }
 0x101   : > { %2303 = vst [vmem:[#allocation2 + $0x70] sm:$0xff] %v2171_v57  }
 0x102   : > { %2318 = vst [vmem:[#allocation3 + $0x70] sm:$0xff] %v2171_v57   ;;  %v2176_v28 = vpack.c.bf16 %v707_v49, %v706_v31 }
 0x104   : > { %2304 = vst [vmem:[#allocation2 + $0x78] sm:$0xff] %v2176_v28  }
 0x105   : > { %2319 = vst [vmem:[#allocation3 + $0x78] sm:$0xff] %v2176_v28  }
 0x123   : > { %v775_v27 = vpop.permute.xlu0 %774 }
 0x124   : > { %v782_v21 = vmul.f32 %v775_v27, %v3332_v36  ;;  %881 = sbr.rel (%p1954_p0) target bundleno = 609 (0x261), region = 44 }
 0x126   : > { %v2181_v3 = vpack.c.bf16 %v3560_v61, %v782_v21 }
 0x128   : > { %2182 = vst [vmem:[#allocation3] sm:$0xff] %v2181_v3  }
 0x129   : > { %v883_v8 = vrot.slane %v2924_v6, 4  ;;  %v891_v39 = vrot.slane %v3218_v63, 4  ;;  %vm895_vm11 = vcmask 3072   ;;  %v908_v48 = vld [vmem:[%s2912_s18] sm:$0xff] }
 0x12b   : > { %v885_v60 = vmul.f32 %v883_v8, %v2924_v6 }
 0x12d   : > { %v886_v12 = vsel %vm653_vm0, %v885_v60, 0.0 }
 0x12e   : > { %887 = vadd.xlane.f32.xlu0 %v886_v12 }
 0x1a1   : > { %v888_v24 = vpop.xlane.xlu0 %887 }
 0x1a2   : > { %v889_v17 = vmul.f32 %v888_v24, %v3218_v63 }
 0x1a4   : > { %v893_v36 = vmul.f32 %v891_v39, %v889_v17 }
 0x1a6   : > { %v894_v61 = vmul.f32 %v893_v36, %v3082_v56 }
 0x1a8   : > { %v896_v62 = vsel %vm895_vm11, %v894_v61, 0.0 }
 0x1a9   : > { %897 = vadd.xlane.f32.xlu0 %v896_v62 }
 0x21c   : > { %v898_v32 = vpop.xlane.xlu0 %897 }
 0x21d   : > { %v899_v33 = vrot.slane %v898_v32, 4 }
 0x21f   : > { %v900_v42 = vadd.f32 %v899_v33, %v898_v32 }
 0x221   : > { %v901_v6 = vrot.slane %v900_v42, 2 }
 0x223   : > { %v902_v7 = vadd.f32 %v901_v6, %v900_v42 }
 0x225   : > { %v903_v25 = vrot.slane %v902_v7, 1 }
 0x227   : > { %v904_v50 = vadd.f32 %v903_v25, %v902_v7 }
 0x229   : > { %2343 = vpush %v904_v50 }
 0x25a   : > { %s2344_s20 = spop %2343 }
 0x25b   : > { %v906_v23 = vstv %s2344_s20 }
 0x25c   : > { %v907_v63 = vmul.f32 2.0, %v906_v23 }
 0x25e   : > { %v909_v13 = vsub.f32 %v908_v48, %v907_v63 }
 0x260   : > { %910 = vst [vmem:[%s2912_s18] sm:$0xff] %v909_v13 }
 0x261 PF: > { %v2089_v15 = vld [vmem:[#allocation3 + $0x38] sm:$0xff]  ;;  %v2088_v59 = vld [vmem:[#allocation3 + $0x30] sm:$0xff]  ;;  %v2087_v51 = vld [vmem:[#allocation3 + $0x28] sm:$0xff]  ;;  %s1955_s23 = sshll.u32 %s2795_s12, 7  ;;  %vm1803_vm14 = vcmask 7168   ;;  %s2071_s28 = sshll.u32 %s2795_s12, 3 }
 0x262   : > { %v2097_v56 = vld [vmem:[#allocation3 + $0x78] sm:$0xff]  ;;  %1127 = vmatpush.bf16.xpose.msra.mxu0 %v2089_v15  ;;  %2327 = vmatpush.bf16.xpose.msra.mxu2 %v2089_v15  ;;  %v2096_v11 = vld [vmem:[#allocation3 + $0x70] sm:$0xff]  ;;  %v2095_v22 = vld [vmem:[#allocation3 + $0x68] sm:$0xff]  ;;  %s913_s24 = sshra.s32 %s1955_s23, 3  ;;  %s1859_s3 = scalar_lea.hbm %s4163_s2, %s2071_s28 }
 0x263   : > { %1176 = vmatpush.bf16.xpose.msra.mxu1 %v2097_v56  ;;  %2335 = vmatpush.bf16.xpose.msra.mxu3 %v2097_v56  ;;  %v2086_v41 = vld [vmem:[#allocation3 + $0x20] sm:$0xff]  ;;  %v2085_v29 = vld [vmem:[#allocation3 + $0x18] sm:$0xff]  ;;  %v2084_v43 = vld [vmem:[#allocation3 + $0x10] sm:$0xff]  ;;  %s1956_s25 = sshll.u32 %s913_s24, 2  ;;  %s1861_s4 = sshll.u32 %s2912_s18, 4  ;;  %s1862_s4 = int_to_ptr.vmem [resolvable:$true] %s1861_s4 }
 0x264   : > { %v2094_v40 = vld [vmem:[#allocation3 + $0x60] sm:$0xff]  ;;  %v2093_v46 = vld [vmem:[#allocation3 + $0x58] sm:$0xff]  ;;  %v2092_v20 = vld [vmem:[#allocation3 + $0x50] sm:$0xff]  ;;  %s3686_s26 = scalar_lea.vmem [#allocation2], %s1956_s25  ;;  %s3693_s27 = scalar_lea.vmem [#allocation3], %s1956_s25 }
 0x265   : > { %v2083_v10 = vld [vmem:[#allocation3 + $0x8] sm:$0xff]  ;;  %v2090_v54 = vld [vmem:[#allocation3 + $0x40] sm:$0xff]  ;;  %v3699_v19 = vld [vmem:[%s3686_s26 + $0x14] sm:$0xff]   ;;  %s1863_s5 = sshll.u32 %s1859_s3, 4  ;;  %s1849_s7 = scalar_lea.sflag [#allocation6], %s163_s15  ;;  %s1864_s5 = int_to_ptr.hbm [resolvable:$true] %s1863_s5 }
 0x266   : > { %v2091_v37 = vld [vmem:[#allocation3 + $0x48] sm:$0xff]  ;;  %v2074_v53 = vld [vmem:[%s3686_s26] sm:$0xff]  ;;  %v1230_v57 = vunpack.c.l.bf16 %v3699_v19  ;;  %v2076_v49 = vld [vmem:[%s3686_s26 + $0x10] sm:$0xff]  ;;  %s2731_s8 = sshra.s32 %s1864_s5, 4  ;;  %s2732_s8 = int_to_ptr.hbm [resolvable:$true] %s2731_s8 }
 0x267   : > { %v2082_v44 = vld [vmem:[#allocation3] sm:$0xff]  ;;  %v2075_v1 = vld [vmem:[%s3686_s26 + $0x8] sm:$0xff]  ;;  %v2321_v2 = vld [vmem:[%s3693_s27 + $0x10] sm:$0xff]   ;;  %s2733_s16 = scalar_lea.hbm %s2732_s8, 8  ;;  %p2738_p5 = scmp.lt.s32.totalorder %s2732_s8, %s4163_s2 }
 0x268   : > { %v2078_v9 = vld [vmem:[%s3686_s26 + $0x20] sm:$0xff]  ;;  %v2079_v18 = vld [vmem:[%s3686_s26 + $0x28] sm:$0xff]  ;;  %v2269_v52 = vunpack.c.h.bf16 %v2321_v2  ;;  %v2080_v14 = vld [vmem:[%s3686_s26 + $0x30] sm:$0xff]  ;;  %v2268_v27 = vunpack.c.l.bf16 %v2321_v2  ;;  %p2734_p1 = scmp.ne.s32.totalorder %s2732_s8, %s2733_s16 }
 0x269   : > { %v919_v16 = vld [vmem:[%s3686_s26 + $0x8] sm:$0xff]   ;;  %v918_v45 = vld [vmem:[%s3686_s26] sm:$0xff]   ;;  %v2077_v34 = vld [vmem:[%s3686_s26 + $0x18] sm:$0xff] }
 0x26a   : > { %1128 = vmatpush.bf16.xpose.msra.mxu0 %v2088_v59  ;;  %2328 = vmatpush.bf16.xpose.msra.mxu2 %v2088_v59  ;;  %v2320_v58 = vld [vmem:[%s3693_s27 + $0x8] sm:$0xff]   ;;  %v1227_v38 = vunpack.c.l.bf16 %v919_v16  ;;  %v2259_v5 = vld [vmem:[%s3693_s27] sm:$0xff]   ;;  %v1226_v26 = vunpack.c.h.bf16 %v918_v45  ;;  %v1262_v35 = vmul.f32 %v2269_v52, %v1230_v57  ;;  %v2081_v31 = vld [vmem:[%s3686_s26 + $0x38] sm:$0xff]  ;;  %v1225_v60 = vunpack.c.l.bf16 %v918_v45  ;;  %p2735_p2 = pnand %p2734_p1, %p2866_p4 }
 0x26b   : > { %1177 = vmatpush.bf16.xpose.msra.mxu1 %v2096_v11  ;;  %2336 = vmatpush.bf16.xpose.msra.mxu3 %v2096_v11  ;;  %v2264_v55 = vunpack.c.l.bf16 %v2320_v58  ;;  %v2261_v4 = vunpack.c.h.bf16 %v2259_v5  ;;  %v921_v28 = vld [vmem:[%s3686_s26 + $0x10] sm:$0xf]  ;;  %v2260_v8 = vunpack.c.l.bf16 %v2259_v5  ;;  %v2265_v39 = vunpack.c.h.bf16 %v2320_v58  ;;  %v2323_v5 = vld [vmem:[%s3693_s27 + $0x20] sm:$0xff]  }
 0x26c   : > { %v1229_v21 = vunpack.c.l.bf16 %v921_v28  ;;  %v1228_v24 = vunpack.c.h.bf16 %v919_v16  ;;  %p2736_p3 = pneg %p2735_p2 }
 0x26d   : > { %v1259_v30 = vmul.f32 %v2264_v55, %v1227_v38  ;;  %v1258_v47 = vmul.f32 %v2261_v4, %v1226_v26  ;;  %v1257_v12 = vmul.f32 %v2260_v8, %v1225_v60  ;;  %v925_v38 = vld [vmem:[%s3686_s26 + $0x20] sm:$0xff]   ;;  %v2276_v4 = vunpack.c.l.bf16 %v2323_v5 }
 0x26e   : > { %v1261_v3 = vmul.f32 %v2268_v27, %v1229_v21  ;;  %v1260_v17 = vmul.f32 %v2265_v39, %v1228_v24  ;;  %v1233_v2 = vunpack.c.l.bf16 %v925_v38  ;;  %v1234_v28 = vunpack.c.h.bf16 %v925_v38  ;;  %v2325_v39 = vld [vmem:[%s3693_s27 + $0x30] sm:$0xff]   ;;  %v3817_v38 = vld [vmem:[%s3693_s27 + $0x38] sm:$0xff]  }
 0x26f   : > { %1277 = vadd.xlane.f32.xlu0 %v1259_v30  ;;  %1275 = vadd.xlane.f32.xlu2 %v1258_v47  ;;  %v1231_v21 = vunpack.c.h.bf16 %v3699_v19 }
 0x270   : > { %1273 = vadd.xlane.f32.xlu1 %v1257_v12  ;;  %v929_v12 = vld [vmem:[%s3686_s26 + $0x30] sm:$0xff]  }
 0x272   : > { %1129 = vmatpush.bf16.xpose.msra.mxu0 %v2087_v51  ;;  %2329 = vmatpush.bf16.xpose.msra.mxu2 %v2087_v51 }
 0x273   : > { %1178 = vmatpush.bf16.xpose.msra.mxu1 %v2095_v22  ;;  %2337 = vmatpush.bf16.xpose.msra.mxu3 %v2095_v22 }
 0x277   : > { %1283 = vadd.xlane.f32.xlu0 %v1262_v35  ;;  %1281 = vadd.xlane.f32.xlu2 %v1261_v3  ;;  %v1265_v35 = vmul.f32 %v2276_v4, %v1233_v2 }
 0x278   : > { %1279 = vadd.xlane.f32.xlu1 %v1260_v17 }
 0x27a   : > { %1130 = vmatpush.bf16.xpose.msra.mxu0 %v2086_v41  ;;  %2330 = vmatpush.bf16.xpose.msra.mxu2 %v2086_v41 }
 0x27b   : > { %1179 = vmatpush.bf16.xpose.msra.mxu1 %v2094_v40  ;;  %2338 = vmatpush.bf16.xpose.msra.mxu3 %v2094_v40 }
 0x282   : > { %1131 = vmatpush.bf16.xpose.msra.mxu0 %v2085_v29  ;;  %2331 = vmatpush.bf16.xpose.msra.mxu2 %v2085_v29 }
 0x283   : > { %1180 = vmatpush.bf16.xpose.msra.mxu1 %v2093_v46  ;;  %2339 = vmatpush.bf16.xpose.msra.mxu3 %v2093_v46 }
 0x28a   : > { %1132 = vmatpush.bf16.xpose.msra.mxu0 %v2084_v43  ;;  %2332 = vmatpush.bf16.xpose.msra.mxu2 %v2084_v43 }
 0x28b   : > { %1181 = vmatpush.bf16.xpose.msra.mxu1 %v2092_v20  ;;  %2340 = vmatpush.bf16.xpose.msra.mxu3 %v2092_v20 }
 0x292   : > { %1133 = vmatpush.bf16.xpose.msra.mxu0 %v2083_v10  ;;  %2333 = vmatpush.bf16.xpose.msra.mxu2 %v2083_v10 }
 0x293   : > { %1182 = vmatpush.bf16.xpose.msra.mxu1 %v2091_v37  ;;  %2341 = vmatpush.bf16.xpose.msra.mxu3 %v2091_v37 }
 0x29a   : > { %1134 = vmatpush.bf16.xpose.msra.mxu0 %v2082_v44  ;;  %2334 = vmatpush.bf16.xpose.msra.mxu2 %v2082_v44 }
 0x29b   : > { %1183 = vmatpush.bf16.xpose.msra.mxu1 %v2090_v54  ;;  %2342 = vmatpush.bf16.xpose.msra.mxu3 %v2090_v54 }
 0x2a1   : > { %1135 = vmatmul.bf16.vlgmr.msra.gmra.mxu0 %v2074_v53  ;;  %1155 = vmatmul.bf16.vlgmr.msra.gmra.mxu2 %v2078_v9 }
 0x2a2   : > { %1184 = vmatmul.bf16.vlgmr.msra.gmra.mxu1 %v2074_v53  ;;  %1204 = vmatmul.bf16.vlgmr.msra.gmra.mxu3 %v2078_v9 }
 0x2b1   : > { %1140 = vmatmul.bf16.gmra.mxu0 %v2075_v1  ;;  %1160 = vmatmul.bf16.gmra.mxu2 %v2079_v18 }
 0x2b2   : > { %1189 = vmatmul.bf16.gmra.mxu1 %v2075_v1  ;;  %1209 = vmatmul.bf16.gmra.mxu3 %v2079_v18 }
 0x2c1   : > { %1145 = vmatmul.bf16.gmra.mxu0 %v2076_v49  ;;  %1165 = vmatmul.bf16.gmra.mxu2 %v2080_v14 }
 0x2c2   : > { %1194 = vmatmul.bf16.gmra.mxu1 %v2076_v49  ;;  %1214 = vmatmul.bf16.gmra.mxu3 %v2080_v14  ;;  %v2322_v14 = vld [vmem:[%s3693_s27 + $0x18] sm:$0xff]  }
 0x2c3   : > { %v2272_v27 = vunpack.c.l.bf16 %v2322_v14 }
 0x2c5   : > { %v1263_v17 = vmul.f32 %v2272_v27, %v1231_v21 }
 0x2d1   : > { %1150 = vmatmul.bf16.gmra.mxu0 %v2077_v34  ;;  %1170 = vmatmul.bf16.gmra.mxu2 %v2081_v31 }
 0x2d2   : > { %1199 = vmatmul.bf16.gmra.mxu1 %v2077_v34  ;;  %1219 = vmatmul.bf16.gmra.mxu3 %v2081_v31  ;;  %v2277_v31 = vunpack.c.h.bf16 %v2323_v5  ;;  %v2288_v5 = vunpack.c.l.bf16 %v3817_v38 }
 0x2d4   : > { %v1266_v8 = vmul.f32 %v2277_v31, %v1234_v28 }
 0x2e2   : > { %v3821_v28 = vpop.xlane.xlu0 %1277  ;;  %v3823_v27 = vpop.xlane.xlu2 %1275 }
 0x2ea   : > { %v3825_v21 = vpop.xlane.xlu0 %1283 }
 0x31e   : > { %v3708_v36 = vpop.f32.mrf.mxu0 }
 0x31f   : > { %v3710_v61 = vpop.f32.mrf.mxu1 }
 0x320   : > { %v1305_v62 = vmax.f32 %v3708_v36, %v3710_v61 }
 0x322   : > { %1306 = vmax.xlane.f32.xlu0 %v1305_v62  ;;  %v928_v62 = vld [vmem:[%s3686_s26 + $0x28] sm:$0xff]  }
 0x323   : > { %v1235_v2 = vunpack.c.l.bf16 %v928_v62 }
 0x324   : > { %v3714_v32 = vpop.f32.mrf.mxu2 }
 0x325   : > { %v3716_v33 = vpop.f32.mrf.mxu3 }
 0x326   : > { %v3718_v42 = vpop.f32.mrf.mxu0  ;;  %v1329_v6 = vmax.f32 %v3714_v32, %v3716_v33 }
 0x327   : > { %v3722_v7 = vpop.f32.mrf.mxu1 }
 0x328   : > { %1330 = vmax.xlane.f32.xlu2 %v1329_v6  ;;  %v1308_v25 = vmax.f32 %v3718_v42, %v3722_v7  ;;  %v2324_v6 = vld [vmem:[%s3693_s27 + $0x28] sm:$0xff]  }
 0x329   : > { %v2281_v19 = vunpack.c.h.bf16 %v2324_v6  ;;  %v2280_v4 = vunpack.c.l.bf16 %v2324_v6 }
 0x32a   : > { %1309 = vmax.xlane.f32.xlu0 %v1308_v25  ;;  %v924_v25 = vld [vmem:[%s3686_s26 + $0x1c] sm:$0xf] }
 0x32c   : > { %v3726_v50 = vpop.f32.mrf.mxu2 }
 0x32d   : > { %v3728_v23 = vpop.f32.mrf.mxu3 }
 0x32e   : > { %v3730_v48 = vpop.f32.mrf.mxu0  ;;  %v1332_v13 = vmax.f32 %v3726_v50, %v3728_v23 }
 0x32f   : > { %v3732_v63 = vpop.f32.mrf.mxu1 }
 0x330   : > { %v1311_v15 = vmax.f32 %v3730_v48, %v3732_v63 }
 0x332   : > { %1333 = vmax.xlane.f32.xlu0 %v1332_v13  ;;  %1312 = vmax.xlane.f32.xlu1 %v1311_v15  ;;  %v2284_v13 = vunpack.c.l.bf16 %v2325_v39  ;;  %v1237_v15 = vunpack.c.l.bf16 %v929_v12 }
 0x334   : > { %v3738_v56 = vpop.f32.mrf.mxu2 }
 0x335   : > { %v3740_v59 = vpop.f32.mrf.mxu3 }
 0x336   : > { %v3742_v11 = vpop.f32.mrf.mxu0  ;;  %v1335_v51 = vmax.f32 %v3738_v56, %v3740_v59 }
 0x337   : > { %v3746_v22 = vpop.f32.mrf.mxu1 }
 0x338   : > { %v1314_v20 = vmax.f32 %v3742_v11, %v3746_v22 }
 0x33a   : > { %1336 = vmax.xlane.f32.xlu1 %v1335_v51  ;;  %v1236_v51 = vunpack.c.h.bf16 %v928_v62 }
 0x33c   : > { %v3748_v41 = vpop.f32.mrf.mxu2 }
 0x33d   : > { %v3750_v40 = vpop.f32.mrf.mxu3 }
 0x33e   : > { %v3752_v29 = vpop.f32.mrf.mxu0  ;;  %v1338_v46 = vmax.f32 %v3748_v41, %v3750_v40 }
 0x33f   : > { %v3756_v43 = vpop.f32.mrf.mxu1 }
 0x340   : > { %1339 = vmax.xlane.f32.xlu2 %v1338_v46  ;;  %v1317_v53 = vmax.f32 %v3752_v29, %v3756_v43  ;;  %v2273_v46 = vunpack.c.h.bf16 %v2322_v14  ;;  %v2285_v14 = vunpack.c.h.bf16 %v2325_v39 }
 0x342   : > { %1315 = vmax.xlane.f32.xlu1 %v1314_v20  ;;  %v1232_v20 = vunpack.c.l.bf16 %v924_v25 }
 0x344   : > { %v3760_v10 = vpop.f32.mrf.mxu2 }
 0x345   : > { %v3762_v37 = vpop.f32.mrf.mxu3 }
 0x346   : > { %v3764_v44 = vpop.f32.mrf.mxu0  ;;  %v1341_v54 = vmax.f32 %v3760_v10, %v3762_v37 }
 0x347   : > { %v3770_v9 = vpop.f32.mrf.mxu1 }
 0x348   : > { %1342 = vmax.xlane.f32.xlu0 %v1341_v54  ;;  %1318 = vmax.xlane.f32.xlu2 %v1317_v53  ;;  %v1320_v58 = vmax.f32 %v3764_v44, %v3770_v9  ;;  %v1269_v54 = vmul.f32 %v2284_v13, %v1237_v15  ;;  %v1268_v53 = vmul.f32 %v2281_v19, %v1236_v51 }
 0x34c   : > { %v3772_v1 = vpop.f32.mrf.mxu2 }
 0x34d   : > { %v3774_v18 = vpop.f32.mrf.mxu3 }
 0x34e   : > { %v3776_v16 = vpop.f32.mrf.mxu0  ;;  %v1344_v45 = vmax.f32 %v3772_v1, %v3774_v18 }
 0x34f   : > { %v3782_v55 = vpop.f32.mrf.mxu1 }
 0x350   : > { %1321 = vmax.xlane.f32.xlu2 %v1320_v58  ;;  %1345 = vmax.xlane.f32.xlu1 %v1344_v45  ;;  %v1323_v26 = vmax.f32 %v3776_v16, %v3782_v55  ;;  %v1264_v58 = vmul.f32 %v2273_v46, %v1232_v20  ;;  %v3814_v45 = vld [vmem:[%s3686_s26 + $0x38] sm:$0xff]  }
 0x352   : > { %1324 = vmax.xlane.f32.xlu0 %v1323_v26  ;;  %v1239_v26 = vunpack.c.l.bf16 %v3814_v45 }
 0x354   : > { %v3788_v30 = vpop.f32.mrf.mxu2 }
 0x355   : > { %v3790_v47 = vpop.f32.mrf.mxu3 }
 0x356   : > { %v3792_v52 = vpop.f32.mrf.mxu0  ;;  %v1347_v57 = vmax.f32 %v3788_v30, %v3790_v47 }
 0x357   : > { %v3796_v49 = vpop.f32.mrf.mxu1 }
 0x358   : > { %v1326_v34 = vmax.f32 %v3792_v52, %v3796_v49  ;;  %1348 = vmax.xlane.f32.xlu2 %v1347_v57  ;;  %v1271_v57 = vmul.f32 %v2288_v5, %v1239_v26 }
 0x35a   : > { %1289 = vadd.xlane.f32.xlu0 %v1265_v35  ;;  %1327 = vmax.xlane.f32.xlu1 %v1326_v34  ;;  %v1267_v35 = vmul.f32 %v2280_v4, %v1235_v2  ;;  %v1238_v34 = vunpack.c.h.bf16 %v929_v12 }
 0x35c   : > { %v3802_v3 = vpop.f32.mrf.mxu2  ;;  %v1270_v31 = vmul.f32 %v2285_v14, %v1238_v34 }
 0x35d   : > { %v3804_v60 = vpop.f32.mrf.mxu3 }
 0x35e   : > { %v1350_v24 = vmax.f32 %v3802_v3, %v3804_v60 }
 0x360   : > { %1291 = vadd.xlane.f32.xlu2 %v1266_v8  ;;  %v3827_v8 = vpop.xlane.xlu2 %1281 }
 0x362   : > { %1351 = vmax.xlane.f32.xlu0 %v1350_v24  ;;  %1285 = vadd.xlane.f32.xlu1 %v1263_v17  ;;  %v3829_v24 = vpop.xlane.xlu1 %1273 }
 0x368   : > { %1297 = vadd.xlane.f32.xlu2 %v1269_v54 }
 0x36a   : > { %1295 = vadd.xlane.f32.xlu0 %v1268_v53  ;;  %1287 = vadd.xlane.f32.xlu1 %v1264_v58  ;;  %v3839_v13 = vpop.xlane.xlu1 %1279 }
 0x372   : > { %1301 = vadd.xlane.f32.xlu0 %v1271_v57  ;;  %1293 = vadd.xlane.f32.xlu1 %v1267_v35 }
 0x37a   : > { %1299 = vadd.xlane.f32.xlu1 %v1270_v31 }
 0x395   : > { %v3831_v17 = vpop.xlane.xlu0 %1306 }
 0x396   : > { %v1353_v62 = vsub.f32 %v3708_v36, %v3831_v17  ;;  %v1354_v12 = vsub.f32 %v3710_v61, %v3831_v17 }
 0x398   : > { %v1385_v39 = vmul.f32 1.442695, %v1353_v62  ;;  %v1387_v6 = vmul.f32 1.442695, %v1354_v12 }
 0x39a   : > { %2497 = vpow2.f32 %v1385_v39 }
 0x39b   : > { %v3837_v25 = vpop.xlane.xlu2 %1330  ;;  %2499 = vpow2.f32 %v1387_v6 }
 0x39c   : > { %v1369_v15 = vsub.f32 %v3714_v32, %v3837_v25  ;;  %v1370_v19 = vsub.f32 %v3716_v33, %v3837_v25 }
 0x39d   : > { %v3845_v51 = vpop.xlane.xlu0 %1309 }
 0x39e   : > { %v1355_v36 = vsub.f32 %v3718_v42, %v3845_v51  ;;  %v1356_v61 = vsub.f32 %v3722_v7, %v3845_v51  ;;  %v1417_v46 = vmul.f32 1.442695, %v1369_v15  ;;  %v1419_v20 = vmul.f32 1.442695, %v1370_v19 }
 0x3a0   : > { %2501 = vpow2.f32 %v1417_v46  ;;  %v1389_v54 = vmul.f32 1.442695, %v1355_v36  ;;  %v1391_v53 = vmul.f32 1.442695, %v1356_v61  ;;  %v2498_v58 = vpop.eup %2497 }
 0x3a1   : > { %2503 = vpow2.f32 %v1419_v20  ;;  %v2500_v32 = vpop.eup %2499 }
 0x3a2   : > { %2505 = vpow2.f32 %v1389_v54  ;;  %v1449_v5 = vadd.f32 %v2500_v32, %v2498_v58 }
 0x3a3   : > { %2507 = vpow2.f32 %v1391_v53 }
 0x3a4   : > { %1450 = vadd.xlane.f32.xlu2 %v1449_v5 }
 0x3a5   : > { %v3851_v33 = vpop.xlane.xlu0 %1333  ;;  %v3853_v26 = vpop.xlane.xlu1 %1312 }
 0x3a6   : > { %v2502_v42 = vpop.eup %2501  ;;  %v1371_v7 = vsub.f32 %v3726_v50, %v3851_v33  ;;  %v1372_v4 = vsub.f32 %v3728_v23, %v3851_v33  ;;  %v1357_v2 = vsub.f32 %v3730_v48, %v3853_v26  ;;  %v1358_v57 = vsub.f32 %v3732_v63, %v3853_v26 }
 0x3a7   : > { %v2504_v35 = vpop.eup %2503 }
 0x3a8   : > { %v2506_v14 = vpop.eup %2505  ;;  %v1421_v34 = vmul.f32 1.442695, %v1371_v7  ;;  %v1423_v31 = vmul.f32 1.442695, %v1372_v4  ;;  %v1393_v62 = vmul.f32 1.442695, %v1357_v2  ;;  %v1473_v15 = vadd.f32 %v2504_v35, %v2502_v42 }
 0x3a9   : > { %v2508_v12 = vpop.eup %2507  ;;  %v1395_v39 = vmul.f32 1.442695, %v1358_v57 }
 0x3aa   : > { %v1452_v6 = vadd.f32 %v2508_v12, %v2506_v14  ;;  %2509 = vpow2.f32 %v1421_v34 }
 0x3ab   : > { %2511 = vpow2.f32 %v1423_v31 }
 0x3ac   : > { %1453 = vadd.xlane.f32.xlu0 %v1452_v6  ;;  %2513 = vpow2.f32 %v1393_v62  ;;  %1474 = vadd.xlane.f32.xlu2 %v1473_v15 }
 0x3ad   : > { %v3863_v50 = vpop.xlane.xlu1 %1336  ;;  %2515 = vpow2.f32 %v1395_v39 }
 0x3b0   : > { %v2510_v23 = vpop.eup %2509 }
 0x3b1   : > { %v2512_v48 = vpop.eup %2511 }
 0x3b2   : > { %v2514_v63 = vpop.eup %2513  ;;  %v1476_v19 = vadd.f32 %v2512_v48, %v2510_v23 }
 0x3b3   : > { %v2516_v36 = vpop.eup %2515  ;;  %v3865_v61 = vpop.xlane.xlu2 %1339 }
 0x3b4   : > { %1477 = vadd.xlane.f32.xlu1 %v1476_v19  ;;  %v1455_v46 = vadd.f32 %v2516_v36, %v2514_v63  ;;  %v1376_v19 = vsub.f32 %v3750_v40, %v3865_v61 }
 0x3b5   : > { %v3867_v20 = vpop.xlane.xlu1 %1315 }
 0x3b6   : > { %1456 = vadd.xlane.f32.xlu2 %v1455_v46  ;;  %v1359_v54 = vsub.f32 %v3742_v11, %v3867_v20  ;;  %v1360_v53 = vsub.f32 %v3746_v22, %v3867_v20 }
 0x3b8   : > { %v1397_v58 = vmul.f32 1.442695, %v1359_v54  ;;  %v1399_v32 = vmul.f32 1.442695, %v1360_v53  ;;  %v1431_v54 = vmul.f32 1.442695, %v1376_v19 }
 0x3ba   : > { %2517 = vpow2.f32 %v1397_v58 }
 0x3bb   : > { %v3873_v5 = vpop.xlane.xlu2 %1318  ;;  %2519 = vpow2.f32 %v1399_v32  ;;  %v3879_v4 = vpop.xlane.xlu0 %1342 }
 0x3bc   : > { %v1361_v42 = vsub.f32 %v3752_v29, %v3873_v5  ;;  %v1362_v7 = vsub.f32 %v3756_v43, %v3873_v5  ;;  %v1377_v58 = vsub.f32 %v3760_v10, %v3879_v4  ;;  %v1374_v10 = vsub.f32 %v3740_v59, %v3863_v50 }
 0x3be   : > { %v1401_v2 = vmul.f32 1.442695, %v1361_v42  ;;  %v1403_v57 = vmul.f32 1.442695, %v1362_v7  ;;  %v1378_v7 = vsub.f32 %v3762_v37, %v3879_v4  ;;  %v2289_v37 = vunpack.c.h.bf16 %v3817_v38 }
 0x3c0   : > { %v2518_v11 = vpop.eup %2517  ;;  %2521 = vpow2.f32 %v1401_v2 }
 0x3c1   : > { %v2520_v35 = vpop.eup %2519  ;;  %2523 = vpow2.f32 %v1403_v57 }
 0x3c2   : > { %v1458_v22 = vadd.f32 %v2520_v35, %v2518_v11 }
 0x3c3   : > { %v3881_v14 = vpop.xlane.xlu2 %1321  ;;  %v3887_v31 = vpop.xlane.xlu1 %1345 }
 0x3c4   : > { %v1363_v34 = vsub.f32 %v3764_v44, %v3881_v14  ;;  %v1364_v29 = vsub.f32 %v3770_v9, %v3881_v14  ;;  %1459 = vadd.xlane.f32.xlu1 %v1458_v22  ;;  %v1375_v44 = vsub.f32 %v3748_v41, %v3865_v61 }
 0x3c5   : > { %v3889_v43 = vpop.xlane.xlu0 %1324 }
 0x3c6   : > { %v2522_v62 = vpop.eup %2521  ;;  %v1365_v12 = vsub.f32 %v3776_v16, %v3889_v43  ;;  %v1366_v39 = vsub.f32 %v3782_v55, %v3889_v43  ;;  %v1405_v6 = vmul.f32 1.442695, %v1363_v34  ;;  %v1407_v15 = vmul.f32 1.442695, %v1364_v29 }
 0x3c7   : > { %v2524_v23 = vpop.eup %2523  ;;  %v1429_v16 = vmul.f32 1.442695, %v1375_v44  ;;  %v1373_v55 = vsub.f32 %v3738_v56, %v3863_v50  ;;  %v1240_v29 = vunpack.c.h.bf16 %v3814_v45 }
 0x3c8   : > { %v1461_v48 = vadd.f32 %v2524_v23, %v2522_v62  ;;  %2525 = vpow2.f32 %v1405_v6  ;;  %v1409_v9 = vmul.f32 1.442695, %v1365_v12  ;;  %v1411_v63 = vmul.f32 1.442695, %v1366_v39 }
 0x3c9   : > { %2527 = vpow2.f32 %v1407_v15  ;;  %v1433_v62 = vmul.f32 1.442695, %v1377_v58  ;;  %v1272_v15 = vmul.f32 %v2289_v37, %v1240_v29  ;;  %v1427_v23 = vmul.f32 1.442695, %v1374_v10 }
 0x3ca   : > { %1462 = vadd.xlane.f32.xlu0 %v1461_v48  ;;  %2529 = vpow2.f32 %v1409_v9  ;;  %v1379_v48 = vsub.f32 %v3772_v1, %v3887_v31  ;;  %v1497_v37 = vsub.f32 %v3829_v24, %v3831_v17 }
 0x3cb   : > { %2531 = vpow2.f32 %v1411_v63  ;;  %v3899_v36 = vpop.xlane.xlu2 %1348  ;;  %v1380_v63 = vsub.f32 %v3774_v18, %v3887_v31 }
 0x3cc   : > { %2533 = vpow2.f32 %v1429_v16  ;;  %v1381_v2 = vsub.f32 %v3788_v30, %v3899_v36  ;;  %v1435_v30 = vmul.f32 1.442695, %v1378_v7  ;;  %v1437_v58 = vmul.f32 1.442695, %v1379_v48 }
 0x3cd   : > { %v3903_v46 = vpop.xlane.xlu0 %1289  ;;  %v3905_v41 = vpop.xlane.xlu1 %1327  ;;  %2535 = vpow2.f32 %v1431_v54  ;;  %v1439_v1 = vmul.f32 1.442695, %v1380_v63  ;;  %v1563_v63 = vsub.f32 0.0, %v3853_v26 }
 0x3ce   : > { %v2526_v53 = vpop.eup %2525  ;;  %v1367_v40 = vsub.f32 %v3792_v52, %v3905_v41  ;;  %v1368_v32 = vsub.f32 %v3796_v49, %v3905_v41  ;;  %v1382_v52 = vsub.f32 %v3790_v47, %v3899_v36  ;;  %v1425_v49 = vmul.f32 1.442695, %v1373_v55 }
 0x3cf   : > { %v2528_v42 = vpop.eup %2527  ;;  %v1441_v12 = vmul.f32 1.442695, %v1381_v2 }
 0x3d0   : > { %v2530_v56 = vpop.eup %2529  ;;  %v1464_v57 = vadd.f32 %v2528_v42, %v2526_v53  ;;  %v1413_v11 = vmul.f32 1.442695, %v1367_v40  ;;  %v1415_v35 = vmul.f32 1.442695, %v1368_v32  ;;  %v1443_v59 = vmul.f32 1.442695, %v1382_v52 }
 0x3d1   : > { %v2532_v22 = vpop.eup %2531 }
 0x3d2   : > { %1465 = vadd.xlane.f32.xlu2 %v1464_v57  ;;  %v1467_v34 = vadd.f32 %v2532_v22, %v2530_v56  ;;  %2537 = vpow2.f32 %v1413_v11  ;;  %v2534_v39 = vpop.eup %2533 }
 0x3d3   : > { %2539 = vpow2.f32 %v1415_v35  ;;  %v2536_v38 = vpop.eup %2535  ;;  %v3933_v52 = vpop.xlane.xlu2 %1291 }
 0x3d4   : > { %1468 = vadd.xlane.f32.xlu1 %v1467_v34  ;;  %2541 = vpow2.f32 %v1425_v49  ;;  %v1561_v49 = vsub.f32 0.0, %v3831_v17 }
 0x3d5   : > { %v3923_v6 = vpop.xlane.xlu0 %1351  ;;  %2543 = vpow2.f32 %v1433_v62  ;;  %v3936_v34 = vpop.xlane.xlu1 %1285 }
 0x3d6   : > { %v1383_v47 = vsub.f32 %v3802_v3, %v3923_v6  ;;  %v1384_v45 = vsub.f32 %v3804_v60, %v3923_v6  ;;  %2545 = vpow2.f32 %v1435_v30  ;;  %v1482_v3 = vadd.f32 %v2536_v38, %v2534_v39 }
 0x3d7   : > { %2547 = vpow2.f32 %v1441_v12  ;;  %v1577_v29 = vmul.f32 1.442695, %v1561_v49  ;;  %v1513_v30 = vmul.f32 1.442695, %v1497_v37  ;;  %v1562_v12 = vsub.f32 0.0, %v3845_v51 }
 0x3d8   : > { %v2538_v44 = vpop.eup %2537  ;;  %2549 = vpow2.f32 %v1443_v59  ;;  %v1445_v19 = vmul.f32 1.442695, %v1383_v47  ;;  %v1447_v54 = vmul.f32 1.442695, %v1384_v45  ;;  %v1498_v59 = vsub.f32 %v3823_v27, %v3845_v51 }
 0x3d9   : > { %v2540_v9 = vpop.eup %2539  ;;  %2551 = vpow2.f32 %v1427_v23  ;;  %v1499_v27 = vsub.f32 %v3821_v28, %v3853_v26 }
 0x3da   : > { %1303 = vadd.xlane.f32.xlu2 %v1272_v15  ;;  %v2542_v16 = vpop.eup %2541  ;;  %v1470_v55 = vadd.f32 %v2540_v9, %v2538_v44  ;;  %2553 = vpow2.f32 %v1445_v19  ;;  %v1579_v15 = vmul.f32 1.442695, %v1562_v12  ;;  %v1515_v23 = vmul.f32 1.442695, %v1498_v59 }
 0x3db   : > { %v2544_v53 = vpop.eup %2543  ;;  %2555 = vpow2.f32 %v1447_v54  ;;  %v3943_v39 = vpop.xlane.xlu2 %1297 }
 0x3dc   : > { %1483 = vadd.xlane.f32.xlu1 %v1482_v3  ;;  %v2546_v60 = vpop.eup %2545  ;;  %1471 = vadd.xlane.f32.xlu0 %v1470_v55  ;;  %2557 = vpow2.f32 %v1437_v58  ;;  %v1705_v55 = vlaneseq }
 0x3dd   : > { %v2548_v40 = vpop.eup %2547  ;;  %v1485_v7 = vadd.f32 %v2546_v60, %v2544_v53  ;;  %2559 = vpow2.f32 %v1439_v1  ;;  %v3940_v62 = vpop.xlane.xlu0 %1295  ;;  %v1581_v53 = vmul.f32 1.442695, %v1563_v63 }
 0x3de   : > { %v2550_v32 = vpop.eup %2549  ;;  %2561 = vpow2.f32 %v1577_v29  ;;  %v3947_v47 = vpop.xlane.xlu1 %1287 }
 0x3df   : > { %v2552_v42 = vpop.eup %2551  ;;  %v1491_v18 = vadd.f32 %v2550_v32, %v2548_v40  ;;  %2563 = vpow2.f32 %v1513_v30  ;;  %v1517_v40 = vmul.f32 1.442695, %v1499_v27  ;;  %v1570_v30 = vsub.f32 0.0, %v3851_v33 }
 0x3e0   : > { %v1479_v56 = vadd.f32 %v2552_v42, %v2542_v16  ;;  %v2554_v2 = vpop.eup %2553  ;;  %2565 = vpow2.f32 %v1579_v15 }
 0x3e1   : > { %v2556_v57 = vpop.eup %2555  ;;  %2567 = vpow2.f32 %v1515_v23  ;;  %v1500_v23 = vsub.f32 %v3839_v13, %v3867_v20  ;;  %v1595_v27 = vmul.f32 1.442695, %v1570_v30 }
 0x3e2   : > { %1486 = vadd.xlane.f32.xlu2 %v1485_v7  ;;  %v2558_v11 = vpop.eup %2557  ;;  %v1494_v22 = vadd.f32 %v2556_v57, %v2554_v2  ;;  %v3958_v7 = vshrl.u32 %v1705_v55, 7 }
 0x3e3   : > { %v2560_v35 = vpop.eup %2559 }
 0x3e4   : > { %1492 = vadd.xlane.f32.xlu1 %v1491_v18  ;;  %1480 = vadd.xlane.f32.xlu0 %v1479_v56  ;;  %v1488_v10 = vadd.f32 %v2560_v35, %v2558_v11  ;;  %v2562_v38 = vpop.eup %2561  ;;  %v3962_v18 = vstv %s1955_s23  ;;  %v1707_v56 = vadd.s32 8, %v3958_v7  ;;  %v1569_v35 = vsub.f32 0.0, %v3837_v25  ;;  %s2737_s23 = scalar_lea.hbm %s4163_s2, 16 }
 0x3e5   : > { %v3949_v45 = vpop.xlane.xlu0 %1301  ;;  %v2564_v24 = vpop.eup %2563  ;;  %v1609_v48 = vmul.f32 248.0, %v2562_v38  ;;  %v1723_v11 = vadd.s32 %v3962_v18, %v3958_v7  ;;  %p2739_p6 = scmp.lt.s32.totalorder %s2737_s23, %s2733_s16 }
 0x3e6   : > { %v2566_v19 = vpop.eup %2565  ;;  %v3954_v16 = vpop.xlane.xlu1 %1293  ;;  %v1724_v29 = vadd.s32 %v3962_v18, %v1707_v56  ;;  %v1593_v59 = vmul.f32 1.442695, %v1569_v35  ;;  %v1506_v56 = vsub.f32 %v3933_v52, %v3851_v33 }
 0x3e7   : > { %v2568_v60 = vpop.eup %2567  ;;  %v1610_v32 = vmul.f32 248.0, %v2566_v19  ;;  %vm1739_vm0 = vcmp.lt.s32.totalorder %v1723_v11, 8  ;;  %v1501_v19 = vsub.f32 %v3827_v8, %v3873_v5  ;;  %p2740_p7 = por %p2739_p6, %p2738_p5 }
 0x3e8   : > { %vm1740_vm12 = vcmp.lt.s32.totalorder %v1724_v29, 8  ;;  %v2054_v63 = vsel %vm1739_vm0, 1.0, %v2809_v0  ;;  %v1503_v29 = vsub.f32 %v3936_v34, %v3889_v43  ;;  %v1509_v34 = vsub.f32 %v3943_v39, %v3879_v4 }
 0x3e9   : > { %v2055_v13 = vsel %vm1740_vm12, 1.0, %v2809_v0  ;;  %v1521_v8 = vmul.f32 1.442695, %v1501_v19  ;;  %v1504_v39 = vsub.f32 %v3947_v47, %v3905_v41  ;;  %p2741_p9 = pnand %p2740_p7, %p2736_p3 }
 0x3ea   : > { %1495 = vadd.xlane.f32.xlu2 %v1494_v22  ;;  %v1564_v22 = vsub.f32 0.0, %v3867_v20 }
 0x3ec   : > { %1489 = vadd.xlane.f32.xlu0 %v1488_v10 }
 0x3ee   : > { %v3969_v49 = vpop.xlane.xlu1 %1299 }
 0x417   : > { %v1451_v44 = vpop.xlane.xlu2 %1450 }
 0x418   : > { %v1545_v9 = vsub.f32 %v1451_v44, %v2564_v24  ;;  %v1583_v44 = vmul.f32 1.442695, %v1564_v22 }
 0x41a   : > { %v1625_v3 = vsub.f32 %v1545_v9, %v1609_v48 }
 0x41c   : > { %v1641_v54 = vmax.f32 %v1625_v3, 1e-30 }
 0x41e   : > { %2569 = vlog2.f32 %v1641_v54  ;;  %v1519_v54 = vmul.f32 1.442695, %v1500_v23 }
 0x41f   : > { %v1454_v58 = vpop.xlane.xlu0 %1453  ;;  %v3956_v1 = vpop.xlane.xlu2 %1474  ;;  %2571 = vpow2.f32 %v1581_v53  ;;  %v1565_v53 = vsub.f32 0.0, %v3873_v5 }
 0x420   : > { %v1546_v42 = vsub.f32 %v1454_v58, %v2568_v60  ;;  %2573 = vpow2.f32 %v1517_v40  ;;  %v1505_v58 = vsub.f32 %v3903_v46, %v3837_v25  ;;  %v1567_v46 = vsub.f32 0.0, %v3889_v43 }
 0x422   : > { %v1626_v28 = vsub.f32 %v1546_v42, %v1610_v32  ;;  %v1529_v35 = vmul.f32 1.442695, %v1505_v58  ;;  %v1571_v58 = vsub.f32 0.0, %v3863_v50 }
 0x424   : > { %v1642_v2 = vmax.f32 %v1626_v28, 1e-30  ;;  %v2570_v57 = vpop.eup %2569  ;;  %v1566_v28 = vsub.f32 0.0, %v3881_v14 }
 0x425   : > { %v2572_v10 = vpop.eup %2571  ;;  %v1658_v37 = vmul.f32 0.6931472, %v2570_v57  ;;  %v1585_v57 = vmul.f32 1.442695, %v1565_v53 }
 0x426   : > { %2575 = vlog2.f32 %v1642_v2  ;;  %v2574_v12 = vpop.eup %2573  ;;  %v1611_v38 = vmul.f32 248.0, %v2572_v10  ;;  %v1568_v10 = vsub.f32 0.0, %v3905_v41  ;;  %v1587_v30 = vmul.f32 1.442695, %v1566_v28 }
 0x427   : > { %v1689_v48 = vadd.f32 %v1658_v37, %v3831_v17  ;;  %2577 = vpow2.f32 %v1593_v59  ;;  %v1502_v17 = vsub.f32 %v3825_v21, %v3881_v14  ;;  %v3986_v42 = vpop.xlane.xlu1 %1477  ;;  %v1708_v59 = vadd.s32 16, %v3958_v7 }
 0x428   : > { %2579 = vpow2.f32 %v1583_v44  ;;  %v1709_v28 = vadd.s32 24, %v3958_v7 }
 0x429   : > { %v1457_v15 = vpop.xlane.xlu2 %1456  ;;  %v1787_v40 = vmul.f32 %v2054_v63, %v1689_v48  ;;  %2581 = vpow2.f32 %v1595_v27  ;;  %v1523_v21 = vmul.f32 1.442695, %v1502_v17  ;;  %v1591_v63 = vmul.f32 1.442695, %v1568_v10 }
 0x42a   : > { %v1547_v24 = vsub.f32 %v1457_v15, %v2574_v12  ;;  %2583 = vpow2.f32 %v1519_v54  ;;  %v1531_v12 = vmul.f32 1.442695, %v1506_v56  ;;  %v1572_v15 = vsub.f32 0.0, %v3865_v61 }
 0x42b   : > { %v1525_v27 = vmul.f32 1.442695, %v1503_v29  ;;  %v1508_v54 = vsub.f32 %v3940_v62, %v3865_v61  ;;  %v1725_v53 = vadd.s32 %v3962_v18, %v1708_v59 }
 0x42c   : > { %v2576_v9 = vpop.eup %2575  ;;  %v1627_v3 = vsub.f32 %v1547_v24, %v1611_v38  ;;  %v1589_v24 = vmul.f32 1.442695, %v1567_v46 }
 0x42d   : > { %v1660_v55 = vmul.f32 0.6931472, %v2576_v9  ;;  %v2578_v11 = vpop.eup %2577  ;;  %v1535_v46 = vmul.f32 1.442695, %v1508_v54  ;;  %vm1741_vm15 = vcmp.lt.s32.totalorder %v1725_v53, 8 }
 0x42e   : > { %v1643_v60 = vmax.f32 %v1627_v3, 1e-30  ;;  %v2580_v37 = vpop.eup %2579  ;;  %v4001_v38 = vmul.f32 248.0, %v2578_v11  ;;  %v1574_v11 = vsub.f32 0.0, %v3887_v31 }
 0x42f   : > { %v1690_v32 = vadd.f32 %v1660_v55, %v3845_v51  ;;  %v1804_v51 = vsel %vm1803_vm14, %v1787_v40, 0.0  ;;  %v2582_v23 = vpop.eup %2581  ;;  %v1612_v48 = vmul.f32 248.0, %v2580_v37  ;;  %v1573_v55 = vsub.f32 0.0, %v3879_v4 }
 0x430   : > { %2585 = vlog2.f32 %v1643_v60  ;;  %v2584_v44 = vpop.eup %2583  ;;  %v4015_v62 = vmul.f32 248.0, %v2582_v23  ;;  %v2056_v23 = vsel %vm1741_vm15, 1.0, %v2809_v0 }
 0x431   : > { %v1788_v2 = vmul.f32 %v2055_v13, %v1690_v32  ;;  %2587 = vpow2.f32 %v1521_v8  ;;  %v1599_v13 = vmul.f32 1.442695, %v1572_v15  ;;  %v1537_v32 = vmul.f32 1.442695, %v1509_v34 }
 0x432   : > { %2589 = vpow2.f32 %v1585_v57  ;;  %v1601_v57 = vmul.f32 1.442695, %v1573_v55  ;;  %v1511_v15 = vsub.f32 %v3949_v45, %v3899_v36  ;;  %v1575_v55 = vsub.f32 0.0, %v3899_v36 }
 0x433   : > { %v1805_v22 = vsel %vm1803_vm14, %v1788_v2, 0.0  ;;  %2591 = vpow2.f32 %v1523_v21 }
 0x434   : > { %v3997_v52 = vadd.f32 %v1805_v22, %v1804_v51  ;;  %2593 = vpow2.f32 %v1529_v35  ;;  %v1527_v51 = vmul.f32 1.442695, %v1504_v39  ;;  %v1541_v53 = vmul.f32 1.442695, %v1511_v15 }
 0x435   : > { %2595 = vpow2.f32 %v1587_v30  ;;  %v1726_v30 = vadd.s32 %v3962_v18, %v1709_v28 }
 0x436   : > { %v2586_v3 = vpop.eup %2585  ;;  %2597 = vpow2.f32 %v1531_v12  ;;  %v1597_v12 = vmul.f32 1.442695, %v1571_v58 }
 0x437   : > { %v1460_v9 = vpop.xlane.xlu1 %1459  ;;  %v2588_v60 = vpop.eup %2587  ;;  %2599 = vpow2.f32 %v1589_v24  ;;  %v1662_v8 = vmul.f32 0.6931472, %v2586_v3  ;;  %vm1742_vm1 = vcmp.lt.s32.totalorder %v1726_v30, 8 }
 0x438   : > { %v1548_v19 = vsub.f32 %v1460_v9, %v2584_v44  ;;  %v2590_v40 = vpop.eup %2589  ;;  %2601 = vpow2.f32 %v1591_v63  ;;  %v1603_v9 = vmul.f32 1.442695, %v1574_v11  ;;  %v1507_v63 = vsub.f32 %v3954_v16, %v3863_v50 }
 0x439   : > { %v4013_v56 = vpop.eup %2591  ;;  %2603 = vpow2.f32 %v1525_v27  ;;  %v1613_v22 = vmul.f32 248.0, %v2590_v40  ;;  %v1691_v29 = vadd.f32 %v1662_v8, %v3853_v26  ;;  %v2057_v8 = vsel %vm1742_vm1, 1.0, %v2809_v0 }
 0x43a   : > { %v1628_v17 = vsub.f32 %v1548_v19, %v1612_v48  ;;  %v2594_v21 = vpop.eup %2593  ;;  %2605 = vpow2.f32 %v1599_v13  ;;  %v1710_v48 = vadd.s32 32, %v3958_v7  ;;  %v1605_v11 = vmul.f32 1.442695, %v1575_v55 }
 0x43b   : > { %v2596_v35 = vpop.eup %2595  ;;  %v1553_v34 = vsub.f32 %v3956_v1, %v2594_v21  ;;  %v1789_v19 = vmul.f32 %v2056_v23, %v1691_v29 }
 0x43c   : > { %v1644_v2 = vmax.f32 %v1628_v17, 1e-30  ;;  %v4018_v37 = vpop.eup %2597  ;;  %v1614_v27 = vmul.f32 248.0, %v2596_v35  ;;  %v1727_v16 = vadd.s32 %v3962_v18, %v1710_v48 }
 0x43d   : > { %v1463_v47 = vpop.xlane.xlu0 %1462  ;;  %v2600_v59 = vpop.eup %2599  ;;  %v1633_v39 = vsub.f32 %v1553_v34, %v4001_v38  ;;  %v1807_v21 = vsel %vm1803_vm14, %v1789_v19, 0.0  ;;  %v1554_v38 = vsub.f32 %v3986_v42, %v4018_v37 }
 0x43e   : > { %2607 = vlog2.f32 %v1644_v2  ;;  %v1549_v10 = vsub.f32 %v1463_v47, %v2588_v60  ;;  %v2602_v44 = vpop.eup %2601  ;;  %v1615_v1 = vmul.f32 248.0, %v2600_v59  ;;  %v1576_v2 = vsub.f32 0.0, %v3923_v6 }
 0x43f   : > { %2609 = vpow2.f32 %v1537_v32  ;;  %v2604_v26 = vpop.eup %2603  ;;  %v4031_v13 = vmul.f32 248.0, %v2602_v44  ;;  %v1533_v32 = vmul.f32 1.442695, %v1507_v63  ;;  %v1649_v29 = vmax.f32 %v1633_v39, 1e-30 }
 0x440   : > { %v1629_v24 = vsub.f32 %v1549_v10, %v1613_v22  ;;  %2611 = vpow2.f32 %v1601_v57  ;;  %v2606_v45 = vpop.eup %2605  ;;  %vm1743_vm13 = vcmp.lt.s32.totalorder %v1727_v16, 8  ;;  %v1808_v42 = vadd.f32 %v1807_v21, %v3997_v52 }
 0x441   : > { %2613 = vpow2.f32 %v1535_v46  ;;  %v1607_v15 = vmul.f32 1.442695, %v1576_v2  ;;  %v2058_v48 = vsel %vm1743_vm13, 1.0, %v2809_v0 }
 0x442   : > { %2615 = vpow2.f32 %v1527_v51  ;;  %v1645_v3 = vmax.f32 %v1629_v24, 1e-30  ;;  %v1510_v51 = vsub.f32 %v3969_v49, %v3887_v31  ;;  %v1634_v24 = vsub.f32 %v1554_v38, %v4015_v62 }
 0x443   : > { %2617 = vpow2.f32 %v1597_v12  ;;  %v1711_v12 = vadd.s32 40, %v3958_v7  ;;  %v1712_v62 = vadd.s32 48, %v3958_v7 }
 0x444   : > { %v2608_v54 = vpop.eup %2607  ;;  %2619 = vlog2.f32 %v1645_v3  ;;  %v1620_v3 = vmul.f32 248.0, %v2606_v45 }
 0x445   : > { %v4033_v60 = vpop.eup %2609  ;;  %v1664_v17 = vmul.f32 0.6931472, %v2608_v54  ;;  %v1466_v58 = vpop.xlane.xlu2 %1465  ;;  %2621 = vpow2.f32 %v1603_v9  ;;  %v1728_v52 = vadd.s32 %v3962_v18, %v1711_v12  ;;  %v1539_v54 = vmul.f32 1.442695, %v1510_v51 }
 0x446   : > { %v2612_v40 = vpop.eup %2611  ;;  %v1550_v28 = vsub.f32 %v1466_v58, %v4013_v56  ;;  %2623 = vpow2.f32 %v1541_v53 }
 0x447   : > { %v2614_v57 = vpop.eup %2613  ;;  %v1692_v46 = vadd.f32 %v1664_v17, %v3867_v20  ;;  %v1469_v47 = vpop.xlane.xlu1 %1468  ;;  %2625 = vpow2.f32 %v1605_v11  ;;  %v1621_v55 = vmul.f32 248.0, %v2612_v40  ;;  %v1650_v17 = vmax.f32 %v1634_v24, 1e-30 }
 0x448   : > { %v2616_v35 = vpop.eup %2615  ;;  %v1630_v22 = vsub.f32 %v1550_v28, %v1614_v27  ;;  %v1551_v10 = vsub.f32 %v1469_v47, %v2604_v26  ;;  %vm1744_vm2 = vcmp.lt.s32.totalorder %v1728_v52, 8 }
 0x449   : > { %v2618_v56 = vpop.eup %2617  ;;  %v1790_v30 = vmul.f32 %v2057_v8, %v1692_v46  ;;  %v1714_v8 = vadd.s32 64, %v3958_v7 }
 0x44a   : > { %v2620_v59 = vpop.eup %2619  ;;  %v1646_v37 = vmax.f32 %v1630_v22, 1e-30  ;;  %v1631_v20 = vsub.f32 %v1551_v10, %v1615_v1  ;;  %v1619_v39 = vmul.f32 248.0, %v2618_v56  ;;  %v2059_v10 = vsel %vm1744_vm2, 1.0, %v2809_v0 }
 0x44b   : > { %v2622_v23 = vpop.eup %2621  ;;  %v1809_v44 = vsel %vm1803_vm14, %v1790_v30, 0.0  ;;  %v1666_v49 = vmul.f32 0.6931472, %v2620_v59  ;;  %v1713_v56 = vadd.s32 56, %v3958_v7 }
 0x44c   : > { %v1810_v34 = vadd.f32 %v1809_v44, %v1808_v42  ;;  %2627 = vlog2.f32 %v1646_v37  ;;  %v1647_v9 = vmax.f32 %v1631_v20, 1e-30  ;;  %v4054_v27 = vpop.eup %2623  ;;  %v4058_v58 = vmul.f32 248.0, %v2622_v23 }
 0x44d   : > { %2629 = vlog2.f32 %v1649_v29  ;;  %v1693_v26 = vadd.f32 %v1666_v49, %v3873_v5  ;;  %v1304_v63 = vpop.xlane.xlu2 %1303  ;;  %v2626_v45 = vpop.eup %2625 }
 0x44e   : > { %2631 = vlog2.f32 %v1647_v9  ;;  %v1512_v19 = vsub.f32 %v1304_v63, %v3923_v6 }
 0x44f   : > { %2633 = vpow2.f32 %v1533_v32  ;;  %v1791_v53 = vmul.f32 %v2058_v48, %v1693_v26  ;;  %v1484_v1 = vpop.xlane.xlu1 %1483  ;;  %v1472_v16 = vpop.xlane.xlu0 %1471  ;;  %v1729_v32 = vadd.s32 %v3962_v18, %v1712_v62 }
 0x450   : > { %v1556_v5 = vsub.f32 %v1484_v1, %v2614_v57  ;;  %2635 = vpow2.f32 %v1607_v15  ;;  %v1552_v2 = vsub.f32 %v1472_v16, %v2616_v35  ;;  %v1543_v38 = vmul.f32 1.442695, %v1512_v19 }
 0x451   : > { %v1811_v28 = vsel %vm1803_vm14, %v1791_v53, 0.0  ;;  %2637 = vpow2.f32 %v1539_v54  ;;  %v1715_v57 = vadd.s32 72, %v3958_v7  ;;  %v1623_v35 = vmul.f32 248.0, %v2626_v45 }
 0x452   : > { %v2628_v21 = vpop.eup %2627  ;;  %v1812_v40 = vadd.f32 %v1811_v28, %v1810_v34  ;;  %v1636_v46 = vsub.f32 %v1556_v5, %v1620_v3  ;;  %v1632_v51 = vsub.f32 %v1552_v2, %v4031_v13  ;;  %2639 = vlog2.f32 %v1650_v17 }
 0x453   : > { %v2630_v47 = vpop.eup %2629  ;;  %v1668_v11 = vmul.f32 0.6931472, %v2628_v21  ;;  %v1731_v15 = vadd.s32 %v3962_v18, %v1714_v8  ;;  %vm1745_vm3 = vcmp.lt.s32.totalorder %v1729_v32, 8  ;;  %2641 = vpow2.f32 %v1543_v38 }
 0x454   : > { %v2632_v22 = vpop.eup %2631  ;;  %v1648_v59 = vmax.f32 %v1632_v51, 1e-30  ;;  %v1652_v42 = vmax.f32 %v1636_v46, 1e-30  ;;  %v1674_v23 = vmul.f32 0.6931472, %v2630_v47  ;;  %v1732_v24 = vadd.s32 %v3962_v18, %v1715_v57 }
 0x455   : > { %v2634_v29 = vpop.eup %2633  ;;  %v1694_v30 = vadd.f32 %v1668_v11, %v3881_v14  ;;  %v1670_v12 = vmul.f32 0.6931472, %v2632_v22  ;;  %v1487_v37 = vpop.xlane.xlu2 %1486  ;;  %v1730_v14 = vadd.s32 %v3962_v18, %v1713_v56  ;;  %v2060_v3 = vsel %vm1745_vm3, 1.0, %v2809_v0 }
 0x456   : > { %v2636_v20 = vpop.eup %2635  ;;  %v1557_v13 = vsub.f32 %v1487_v37, %v4033_v60  ;;  %2643 = vlog2.f32 %v1648_v59  ;;  %vm1747_vm4 = vcmp.lt.s32.totalorder %v1731_v15, 8  ;;  %vm1748_vm5 = vcmp.lt.s32.totalorder %v1732_v24, 8 }
 0x457   : > { %v1792_v44 = vmul.f32 %v2059_v10, %v1694_v30  ;;  %v1493_v49 = vpop.xlane.xlu1 %1492  ;;  %v1695_v34 = vadd.f32 %v1670_v12, %v3889_v43  ;;  %v1481_v9 = vpop.xlane.xlu0 %1480  ;;  %2645 = vlog2.f32 %v1652_v42  ;;  %v1624_v1 = vmul.f32 248.0, %v2636_v20 }
 0x458   : > { %v1637_v48 = vsub.f32 %v1557_v13, %v1621_v55  ;;  %v1559_v26 = vsub.f32 %v1493_v49, %v4054_v27  ;;  %v2638_v52 = vpop.eup %2637  ;;  %v1555_v60 = vsub.f32 %v1481_v9, %v2634_v29  ;;  %v1717_v43 = vadd.s32 88, %v3958_v7 }
 0x459   : > { %v1813_v63 = vsel %vm1803_vm14, %v1792_v44, 0.0  ;;  %v2640_v62 = vpop.eup %2639  ;;  %v1716_v55 = vadd.s32 80, %v3958_v7  ;;  %v1697_v27 = vadd.f32 %v1674_v23, %v3837_v25  ;;  %v1793_v5 = vmul.f32 %v2060_v3, %v1695_v34 }
 0x45a   : > { %v1814_v19 = vadd.f32 %v1813_v63, %v1812_v40  ;;  %v1653_v54 = vmax.f32 %v1637_v48, 1e-30  ;;  %v1639_v53 = vsub.f32 %v1559_v26, %v1623_v35  ;;  %v1635_v17 = vsub.f32 %v1555_v60, %v1619_v39  ;;  %v2642_v16 = vpop.eup %2641 }
 0x45b   : > { %vm1746_vm6 = vcmp.lt.s32.totalorder %v1730_v14, 8  ;;  %v1676_v8 = vmul.f32 0.6931472, %v2640_v62  ;;  %v2062_v40 = vsel %vm1747_vm4, 1.0, %v2809_v0  ;;  %v1718_v38 = vadd.s32 96, %v3958_v7 }
 0x45c   : > { %v2644_v45 = vpop.eup %2643  ;;  %2647 = vlog2.f32 %v1653_v54  ;;  %v1651_v28 = vmax.f32 %v1635_v17, 1e-30  ;;  %v1655_v2 = vmax.f32 %v1639_v53, 1e-30  ;;  %v2061_v39 = vsel %vm1746_vm6, 1.0, %v2809_v0 }
 0x45d   : > { %v1496_v21 = vpop.xlane.xlu2 %1495  ;;  %v1672_v32 = vmul.f32 0.6931472, %v2644_v45  ;;  %v2646_v47 = vpop.eup %2645  ;;  %v1734_v25 = vadd.s32 %v3962_v18, %v1717_v43  ;;  %v1733_v57 = vadd.s32 %v3962_v18, %v1716_v55  ;;  %v2063_v11 = vsel %vm1748_vm5, 1.0, %v2809_v0 }
 0x45e   : > { %v1560_v46 = vsub.f32 %v1496_v21, %v2642_v16  ;;  %2649 = vlog2.f32 %v1651_v28  ;;  %v1815_v51 = vsel %vm1803_vm14, %v1793_v5, 0.0  ;;  %v1795_v35 = vmul.f32 %v2062_v40, %v1697_v27 }
 0x45f   : > { %v1696_v22 = vadd.f32 %v1672_v32, %v3905_v41  ;;  %v1490_v56 = vpop.xlane.xlu0 %1489  ;;  %v1698_v29 = vadd.f32 %v1676_v8, %v3851_v33  ;;  %2651 = vlog2.f32 %v1655_v2  ;;  %v1680_v59 = vmul.f32 0.6931472, %v2646_v47 }
 0x460   : > { %v1640_v10 = vsub.f32 %v1560_v46, %v1624_v1  ;;  %v1558_v30 = vsub.f32 %v1490_v56, %v2638_v52  ;;  %v1735_v42 = vadd.s32 %v3962_v18, %v1718_v38  ;;  %v1816_v15 = vadd.f32 %v1815_v51, %v1814_v19 }
 0x461   : > { %v1794_v12 = vmul.f32 %v2061_v39, %v1696_v22  ;;  %vm1750_vm7 = vcmp.lt.s32.totalorder %v1734_v25, 8  ;;  %vm1749_vm8 = vcmp.lt.s32.totalorder %v1733_v57, 8  ;;  %v1719_v23 = vadd.s32 104, %v3958_v7 }
 0x462   : > { %v1656_v37 = vmax.f32 %v1640_v10, 1e-30  ;;  %v2648_v20 = vpop.eup %2647  ;;  %v1638_v13 = vsub.f32 %v1558_v30, %v4058_v58  ;;  %v1720_v33 = vadd.s32 112, %v3958_v7  ;;  %v1796_v44 = vmul.f32 %v2063_v11, %v1698_v29 }
 0x463   : > { %v1817_v41 = vsel %vm1803_vm14, %v1794_v12, 0.0  ;;  %v1721_v14 = vadd.s32 120, %v3958_v7  ;;  %v1819_v48 = vsel %vm1803_vm14, %v1795_v35, 0.0  ;;  %v1700_v9 = vadd.f32 %v1680_v59, %v3865_v61 }
 0x464   : > { %2653 = vlog2.f32 %v1656_v37  ;;  %v2650_v24 = vpop.eup %2649  ;;  %v1818_v49 = vadd.f32 %v1817_v41, %v1816_v15  ;;  %v1654_v34 = vmax.f32 %v1638_v13, 1e-30  ;;  %v1682_v26 = vmul.f32 0.6931472, %v2648_v20  ;;  %v1844_v37 = vld [vmem:[%s2912_s18] sm:$0xff] }
 0x465   : > { %v1678_v52 = vmul.f32 0.6931472, %v2650_v24  ;;  %v2652_v58 = vpop.eup %2651  ;;  %v2065_v3 = vsel %vm1750_vm7, 1.0, %v2809_v0  ;;  %v2064_v60 = vsel %vm1749_vm8, 1.0, %v2809_v0  ;;  %vm1751_vm9 = vcmp.lt.s32.totalorder %v1735_v42, 8 }
 0x466   : > { %v1820_v63 = vadd.f32 %v1819_v48, %v1818_v49  ;;  %2655 = vlog2.f32 %v1654_v34  ;;  %v1736_v7 = vadd.s32 %v3962_v18, %v1719_v23  ;;  %v1737_v19 = vadd.s32 %v3962_v18, %v1720_v33 }
 0x467   : > { %v1699_v62 = vadd.f32 %v1678_v52, %v3863_v50  ;;  %v1821_v61 = vsel %vm1803_vm14, %v1796_v44, 0.0  ;;  %v1738_v54 = vadd.s32 %v3962_v18, %v1721_v14  ;;  %v1798_v1 = vmul.f32 %v2065_v3, %v1700_v9 }
 0x468   : > { %v1701_v43 = vadd.f32 %v1682_v26, %v3879_v4  ;;  %v1686_v17 = vmul.f32 0.6931472, %v2652_v58  ;;  %v2066_v16 = vsel %vm1751_vm9, 1.0, %v2809_v0  ;;  %v1822_v27 = vadd.f32 %v1821_v61, %v1820_v63 }
 0x469   : > { %v1797_v55 = vmul.f32 %v2064_v60, %v1699_v62  ;;  %vm1752_vm10 = vcmp.lt.s32.totalorder %v1736_v7, 8  ;;  %vm1753_vm11 = vcmp.lt.s32.totalorder %v1737_v19, 8  ;;  %vm1754_vm0 = vcmp.lt.s32.totalorder %v1738_v54, 8 }
 0x46a   : > { %v2654_v53 = vpop.eup %2653  ;;  %v1799_v28 = vmul.f32 %v2066_v16, %v1701_v43  ;;  %v1703_v18 = vadd.f32 %v1686_v17, %v3899_v36  ;;  %v1825_v21 = vsel %vm1803_vm14, %v1798_v1, 0.0  ;;  %v2067_v4 = vsel %vm1752_vm10, 1.0, %v2809_v0 }
 0x46b   : > { %v1823_v5 = vsel %vm1803_vm14, %v1797_v55, 0.0  ;;  %v1688_v50 = vmul.f32 0.6931472, %v2654_v53  ;;  %v2068_v40 = vsel %vm1753_vm11, 1.0, %v2809_v0  ;;  %v2069_v47 = vsel %vm1754_vm0, 1.0, %v2809_v0 }
 0x46c   : > { %v2656_v45 = vpop.eup %2655  ;;  %v1824_v8 = vadd.f32 %v1823_v5, %v1822_v27  ;;  %v1801_v25 = vmul.f32 %v2068_v40, %v1703_v18  ;;  %v1827_v57 = vsel %vm1803_vm14, %v1799_v28, 0.0 }
 0x46d   : > { %v1684_v2 = vmul.f32 0.6931472, %v2656_v45  ;;  %v1704_v46 = vadd.f32 %v1688_v50, %v3923_v6 }
 0x46e   : > { %v1826_v32 = vadd.f32 %v1825_v21, %v1824_v8  ;;  %v1831_v10 = vsel %vm1803_vm14, %v1801_v25, 0.0 }
 0x46f   : > { %v1702_v38 = vadd.f32 %v1684_v2, %v3887_v31  ;;  %v1802_v36 = vmul.f32 %v2069_v47, %v1704_v46 }
 0x470   : > { %v1828_v11 = vadd.f32 %v1827_v57, %v1826_v32 }
 0x471   : > { %v1800_v39 = vmul.f32 %v2067_v4, %v1702_v38  ;;  %v1833_v31 = vsel %vm1803_vm14, %v1802_v36, 0.0 }
 0x473   : > { %v1829_v51 = vsel %vm1803_vm14, %v1800_v39, 0.0 }
 0x474   : > { %v1830_v22 = vadd.f32 %v1829_v51, %v1828_v11 }
 0x476   : > { %v1832_v56 = vadd.f32 %v1831_v10, %v1830_v22 }
 0x478   : > { %v1834_v6 = vadd.f32 %v1833_v31, %v1832_v56 }
 0x47a   : > { %1835 = vadd.xlane.f32.xlu0 %v1834_v6 }
 0x4ed   : > { %v1836_v0 = vpop.xlane.xlu0 %1835 }
 0x4ee   : > { %v1837_v35 = vrot.slane %v1836_v0, 4 }
 0x4f0   : > { %v1838_v29 = vadd.f32 %v1837_v35, %v1836_v0 }
 0x4f2   : > { %v1839_v30 = vrot.slane %v1838_v29, 2 }
 0x4f4   : > { %v1840_v12 = vadd.f32 %v1839_v30, %v1838_v29 }
 0x4f6   : > { %v1841_v59 = vrot.slane %v1840_v12, 1 }
 0x4f8   : > { %v1842_v42 = vadd.f32 %v1841_v59, %v1840_v12 }
 0x4fa   : > { %2345 = vpush %v1842_v42 }
 0x52b   : > { %s2346_s6 = spop %2345 }
 0x52c   : > { %v1845_v20 = vstv %s2346_s6 }
 0x52d   : > { %v1846_v15 = vadd.f32 %v1845_v20, %v1844_v37 }
 0x52f   : > { %1847 = vst [vmem:[%s2912_s18] sm:$0xff] %v1846_v15 }
 0x530   : > { %2744 = shalt.err (!%p2741_p9)
}
 0x531   : > { %2355 = dma.vmem_to_hbm [thread:$0]  (%p2866_p4), %s1862_s4, 128, %s1864_s5, %s1849_s7  }
 0x532 PF: > { %p2372_p10 = scmp.ge.s32.totalorder %s2803_s14, 2  ;;  %s1875_s15 = sand.u32 1, %s2783_s9  }
 0x533   : > { %s1876_s18 = scalar_lea.sflag [#allocation6], %s1875_s15 }
 0x534   : > { %p2365_p11 = pnand %p2372_p10, %p2873_p8 }
 0x536   : > { %p2366_p12 = pneg %p2365_p11 }
 0x538   : > { %2778 = dma.done.wait (%p2366_p12), %s1876_s18, 128  }
 0x539   : > { %2780 = vsyncadd (%p2366_p12), %s1876_s18, 4294967168  ;;  %s17_s14 = sadd.s32 1, %s2803_s14   ;;  %s4226_s9 = smov %s2787_s10 }
 0x53a   : > { %p14_p13 = scmp.ge.s32.totalorder %s17_s14, 4   ;;  %s4227_s10 = smov %s2791_s11 }
 0x53b   : > { %s4228_s11 = smov %s2879_s22  ;;  %s4229_s12 = smov %s2799_s13 }
 0x53c   : > { %s4230_s13 = smov %s4232_s17  ;;  %16 = sbr.rel (!%p14_p13) target bundleno = 6 (0x6), region = 79 }
 0x541   :  { %1882 = vsyncpa [#allocation5], 1 }
 0x542   :  { %1884 = vsyncpa [#allocation5 + $0x1], 1 }
 0x543   :  { %1885 = vsyncpa [#allocation8], 1 }
 0x544   :  { %1886 = vsyncpa [#allocation6], 1 }
 0x545   :  { %1888 = vsyncpa [#allocation6 + $0x1], 1 }

// kernel: tpu_custom_call.1
= control target key start
LH: loop header
LB: loop body
LE: loop exit
PB: predicated region body
PF: predicated region fallthrough
CT: control target
= control target key end

     0   :  { %7 = vsyncpa [#allocation5], 0  ;;  %s4161_s0 = inlined_call_operand.hbm [shape: f32[256,128], index: 0, kind: input, shape index: {}]   ;;  %s4162_s1 = inlined_call_operand.hbm [shape: f32[4,128], index: 1, kind: input, shape index: {}]   ;;  %s4163_s2 = inlined_call_operand.hbm [shape: f32[16,128], index: 2, kind: output, shape index: {}]  }
   0x1   :  { %8 = vsyncpa [#allocation8], 0 }
   0x2   :  { %9 = vsyncpa [#allocation6], 0 }
   0x3   :  { %11 = vsyncpa [#allocation6 + $0x1], 0  ;;  %s2826_s9 = smov 0   ;;  %s2828_s10 = smov 0  }
   0x4   :  { %s2830_s11 = smov 0   ;;  %s2832_s12 = smov 0  }
   0x5   :  { %s2834_s13 = smov 0   ;;  %s2836_s14 = smov 0  }
   0x6 LB: > { %s1945_s15 = sadd.s32 4294967295, %s2803_s14   ;;  %s1946_s16 = sadd.s32 4294967294, %s2803_s14   ;;  %s2803_s14 = sphi %s2836_s14, %s17_s14   ;;  %s2799_s13 = sphi %s2834_s13, %s4230_s13   ;;  %s2795_s12 = sphi %s2832_s12, %s4229_s12   ;;  %s2791_s11 = sphi %s2830_s11, %s4228_s11   ;;  %s2787_s10 = sphi %s2828_s10, %s4227_s10   ;;  %s2783_s9 = sphi %s2826_s9, %s4226_s9  }
   0x7   : > { %s29_s17 = sadd.s32 1, %s2799_s13  ;;  %s78_s18 = sadd.s32 1, %s2791_s11 }
   0x8   : > { %p31_p0 = scmp.ge.s32.totalorder %s29_s17, 2  ;;  %p88_p1 = scmp.ne.s32.totalorder %s2791_s11, %s2787_s10 }
   0x9   : > { %p89_p2 = scmp.eq.s32.totalorder %s1945_s15, 1  ;;  %p94_p3 = scmp.ne.s32.totalorder %s2787_s10, %s2783_s9 }
   0xa   : > { %s4232_s17 = smov (%p31_p0, %s29_s17), 0  ;;  %p95_p5 = scmp.eq.s32.totalorder %s1946_s16, 1 }
   0xb   : > { %p2866_p4 = por %p89_p2, %p88_p1  ;;  %s75_s20 = ssub.s32 %s2799_s13, %s4232_s17 }
   0xc   : > { %p1947_p6 = scmp.ge.s32.totalorder %s2803_s14, 1  ;;  %p76_p7 = scmp.eq.s32.totalorder %s75_s20, 0 }
   0xd   : > { %p2873_p8 = por %p95_p5, %p94_p3  ;;  %p102_p9 = scmp.lt.s32.totalorder %s2803_s14, 3 }
   0xe   : > { %s2879_s22 = scalar_select %p76_p7, %s2791_s11, %s78_s18  }
   0xf   : > { %p2881_p10 = pnand %p1947_p6, %p102_p9  ;;  %p2885_p11 = scmp.eq.s32.totalorder %s1945_s15, 0 }
  0x10   : > { %s113_s27 = sshll.u32 %s4161_s0, 4  ;;  %s2805_s28 = smov [#allocation4]   ;;  %s114_s27 = int_to_ptr.hbm [resolvable:$true] %s113_s27 }
  0x11   : > { %p2357_p12 = pneg %p2881_p10  ;;  %s115_s29 = sshll.u32 %s2805_s28, 4  ;;  %s116_s29 = int_to_ptr.vmem [resolvable:$true] %s115_s29 }
  0x12   : > { %s128_s4 = sshll.u32 %s4162_s1, 4  ;;  %s2806_s5 = smov 128   ;;  %s129_s4 = int_to_ptr.hbm [resolvable:$true] %s128_s4 }
  0x13   : > { %p2358_p13 = pnand %p2885_p11, %p2357_p12  ;;  %s2807_s6 = smov 8  }
  0x14   : > { %s2808_s7 = smov [#allocation7]   ;;  %143 = sbr.rel (%p2881_p10) target bundleno = 1330 (0x532), region = 28 }
  0x15   : > { %2360 = dma.hbm_to_vmem [thread:$0]  (!%p2358_p13), %s114_s27, 4096, %s116_s29, [#allocation5], %s2806_s5, %s2806_s5, %s2807_s6  }
  0x16   : > { %s130_s8 = sshll.u32 %s2808_s7, 4  ;;  %s131_s8 = int_to_ptr.vmem [resolvable:$true] %s130_s8 }
  0x17   : > { %2363 = dma.hbm_to_vmem [thread:$0]  (!%p2358_p13), %s129_s4, 64, %s131_s8, [#allocation8]  }
  0x19   : > { %2770 = dma.done.wait (%p2885_p11), [#allocation5], 4096  }
  0x1a   : > { %2772 = vsyncadd (%p2885_p11), [#allocation5], 4294963200 }
  0x1b   : > { %2774 = dma.done.wait (%p2885_p11), [#allocation8], 64  }
  0x1c   : > { %2776 = vsyncadd (%p2885_p11), [#allocation8], 4294967232  ;;  %s163_s15 = sand.u32 1, %s2787_s10   ;;  %v2809_v0 = vmov 0.0   ;;  %v2916_v1 = vld [vmem:[#allocation4 + $0x18] sm:$0xff]  ;;  %v2918_v2 = vld [vmem:[#allocation4 + $0x10] sm:$0xff] }
  0x1d   : > { %s1953_s16 = sshll.u32 %s163_s15, 3  ;;  %v206_v3 = vmul.f32 %v2916_v1, %v2916_v1  ;;  %v205_v4 = vmul.f32 %v2918_v2, %v2918_v2  ;;  %v651_v5 = vld [vmem:[#allocation7] sm:$0xf]  ;;  %vm653_vm0 = vcmask 1043456   ;;  %v2930_v10 = vld [vmem:[#allocation4 + $0x8] sm:$0xff]  ;;  %v2937_v14 = vld [vmem:[#allocation4 + $0x38] sm:$0xff] }
  0x1e   : > { %s2912_s18 = scalar_lea.vmem [#allocation9], %s1953_s16  ;;  %v2924_v6 = vld [vmem:[#allocation4] sm:$0xff]  ;;  %v652_v8 = vmul.f32 %v651_v5, %v651_v5  ;;  %v204_v13 = vmul.f32 %v2930_v10, %v2930_v10  ;;  %v2939_v15 = vld [vmem:[#allocation4 + $0x30] sm:$0xff]  ;;  %v2941_v16 = vld [vmem:[#allocation4 + $0x28] sm:$0xff]  ;;  %v210_v17 = vmul.f32 %v2937_v14, %v2937_v14  ;;  %p1954_p0 = scmp.ne.s32.totalorder %s2795_s12, 0 }
  0x1f   : > { %170 = vst [vmem:[%s2912_s18] sm:$0xff] %v2809_v0  ;;  %v203_v7 = vmul.f32 %v2924_v6, %v2924_v6  ;;  %241 = vadd.xlane.f32.xlu2 %v206_v3  ;;  %239 = vadd.xlane.f32.xlu1 %v205_v4  ;;  %v2928_v9 = vld [vmem:[#allocation4 + $0x20] sm:$0xff]  ;;  %v209_v18 = vmul.f32 %v2939_v15, %v2939_v15  ;;  %v2949_v20 = vld [vmem:[#allocation4 + $0x50] sm:$0xff]  ;;  %v2951_v21 = vld [vmem:[#allocation4 + $0x48] sm:$0xff] }
  0x20   : > { %v207_v11 = vmul.f32 %v2928_v9, %v2928_v9  ;;  %v654_v12 = vsel %vm653_vm0, %v652_v8, 0.0  ;;  %v208_v19 = vmul.f32 %v2941_v16, %v2941_v16  ;;  %v2953_v22 = vld [vmem:[#allocation4 + $0x40] sm:$0xff]  ;;  %v213_v23 = vmul.f32 %v2949_v20, %v2949_v20  ;;  %v2961_v26 = vld [vmem:[#allocation4 + $0x68] sm:$0xff]  ;;  %v2965_v28 = vld [vmem:[#allocation4 + $0x58] sm:$0xff] }
  0x21   : > { %235 = vadd.xlane.f32.xlu0 %v203_v7  ;;  %v212_v24 = vmul.f32 %v2951_v21, %v2951_v21  ;;  %v211_v25 = vmul.f32 %v2953_v22, %v2953_v22  ;;  %v2963_v27 = vld [vmem:[#allocation4 + $0x60] sm:$0xff]  ;;  %v216_v29 = vmul.f32 %v2961_v26, %v2961_v26  ;;  %v214_v31 = vmul.f32 %v2965_v28, %v2965_v28  ;;  %v2975_v33 = vld [vmem:[#allocation4 + $0x78] sm:$0xff]  ;;  %v2977_v34 = vld [vmem:[#allocation4 + $0x70] sm:$0xff] }
  0x22   : > { %v215_v30 = vmul.f32 %v2963_v27, %v2963_v27  ;;  %v2973_v32 = vld [vmem:[#allocation4 + $0x80] sm:$0xff]  ;;  %v218_v36 = vmul.f32 %v2975_v33, %v2975_v33  ;;  %v217_v37 = vmul.f32 %v2977_v34, %v2977_v34  ;;  %v2985_v38 = vld [vmem:[#allocation4 + $0x98] sm:$0xff]  ;;  %v2987_v39 = vld [vmem:[#allocation4 + $0x90] sm:$0xff]  ;;  %v2810_v8 = vmov 0  }
  0x23   : > { %v219_v35 = vmul.f32 %v2973_v32, %v2973_v32  ;;  %v2989_v40 = vld [vmem:[#allocation4 + $0x88] sm:$0xff]  ;;  %v222_v41 = vmul.f32 %v2985_v38, %v2985_v38  ;;  %v221_v42 = vmul.f32 %v2987_v39, %v2987_v39  ;;  %v2997_v44 = vld [vmem:[#allocation4 + $0xb0] sm:$0xff]  ;;  %v3001_v46 = vld [vmem:[#allocation4 + $0xa0] sm:$0xff]  ;;  %2427 = vset.pattern.permute.xlu0 %v2810_v8 }
  0x24   : > { %v220_v43 = vmul.f32 %v2989_v40, %v2989_v40  ;;  %v2999_v45 = vld [vmem:[#allocation4 + $0xa8] sm:$0xff]  ;;  %v225_v47 = vmul.f32 %v2997_v44, %v2997_v44  ;;  %v223_v49 = vmul.f32 %v3001_v46, %v3001_v46  ;;  %v3011_v51 = vld [vmem:[#allocation4 + $0xc0] sm:$0xff]  ;;  %v3013_v52 = vld [vmem:[#allocation4 + $0xb8] sm:$0xff] }
  0x25   : > { %v224_v48 = vmul.f32 %v2999_v45, %v2999_v45  ;;  %v3009_v50 = vld [vmem:[#allocation4 + $0xc8] sm:$0xff]  ;;  %v227_v54 = vmul.f32 %v3011_v51, %v3011_v51  ;;  %v226_v55 = vmul.f32 %v3013_v52, %v3013_v52  ;;  %v199_v56 = vld [vmem:[#allocation4 + $0xe0] sm:$0xff]  ;;  %v3021_v57 = vld [vmem:[#allocation4 + $0xd8] sm:$0xff] }
  0x26   : > { %v228_v53 = vmul.f32 %v3009_v50, %v3009_v50  ;;  %v3023_v58 = vld [vmem:[#allocation4 + $0xd0] sm:$0xff]  ;;  %v231_v59 = vmul.f32 %v199_v56, %v199_v56  ;;  %v230_v60 = vmul.f32 %v3021_v57, %v3021_v57  ;;  %v202_v62 = vld [vmem:[#allocation4 + $0xf8] sm:$0xff]  ;;  %v3029_v3 = vld [vmem:[#allocation4 + $0xe8] sm:$0xff] }
  0x27   : > { %655 = vadd.xlane.f32.xlu1 %v654_v12  ;;  %243 = vadd.xlane.f32.xlu2 %v207_v11  ;;  %v229_v61 = vmul.f32 %v3023_v58, %v3023_v58  ;;  %v201_v63 = vld [vmem:[#allocation4 + $0xf0] sm:$0xff]  ;;  %v234_v4 = vmul.f32 %v202_v62, %v202_v62  ;;  %v232_v7 = vmul.f32 %v3029_v3, %v3029_v3 }
  0x28   : > { %v233_v5 = vmul.f32 %v201_v63, %v201_v63 }
  0x29   : > { %237 = vadd.xlane.f32.xlu0 %v204_v13 }
  0x2f   : > { %249 = vadd.xlane.f32.xlu2 %v210_v17  ;;  %247 = vadd.xlane.f32.xlu1 %v209_v18 }
  0x31   : > { %245 = vadd.xlane.f32.xlu0 %v208_v19 }
  0x37   : > { %255 = vadd.xlane.f32.xlu2 %v213_v23  ;;  %253 = vadd.xlane.f32.xlu1 %v212_v24 }
  0x39   : > { %251 = vadd.xlane.f32.xlu0 %v211_v25 }
  0x3f   : > { %261 = vadd.xlane.f32.xlu2 %v216_v29  ;;  %259 = vadd.xlane.f32.xlu1 %v215_v30 }
  0x41   : > { %257 = vadd.xlane.f32.xlu0 %v214_v31 }
  0x47   : > { %267 = vadd.xlane.f32.xlu2 %v219_v35  ;;  %265 = vadd.xlane.f32.xlu1 %v218_v36 }
  0x49   : > { %263 = vadd.xlane.f32.xlu0 %v217_v37 }
  0x4f   : > { %273 = vadd.xlane.f32.xlu2 %v222_v41  ;;  %271 = vadd.xlane.f32.xlu1 %v221_v42 }
  0x51   : > { %269 = vadd.xlane.f32.xlu0 %v220_v43 }
  0x57   : > { %279 = vadd.xlane.f32.xlu2 %v225_v47  ;;  %277 = vadd.xlane.f32.xlu1 %v224_v48 }
  0x59   : > { %275 = vadd.xlane.f32.xlu0 %v223_v49 }
  0x5f   : > { %285 = vadd.xlane.f32.xlu2 %v228_v53  ;;  %283 = vadd.xlane.f32.xlu1 %v227_v54 }
  0x61   : > { %281 = vadd.xlane.f32.xlu0 %v226_v55 }
  0x67   : > { %291 = vadd.xlane.f32.xlu2 %v231_v59  ;;  %289 = vadd.xlane.f32.xlu1 %v230_v60 }
  0x69   : > { %287 = vadd.xlane.f32.xlu0 %v229_v61 }
  0x6f   : > { %297 = vadd.xlane.f32.xlu2 %v234_v4  ;;  %295 = vadd.xlane.f32.xlu1 %v233_v5 }
  0x71   : > { %293 = vadd.xlane.f32.xlu0 %v232_v7 }
  0x92   : > { %v242_v11 = vpop.xlane.xlu2 %241  ;;  %v240_v12 = vpop.xlane.xlu1 %239 }
  0x93   : > { %v302_v13 = vmax.f32 %v242_v11, 1e-16  ;;  %v301_v17 = vmax.f32 %v240_v12, 1e-16 }
  0x94   : > { %v236_v18 = vpop.xlane.xlu0 %235 }
  0x95   : > { %v3033_v19 = vmax.f32 %v236_v18, 1e-16  ;;  %2428 = vrsqrt.f32 %v302_v13  ;;  %vm367_vm1 = vweird.f32 %v302_v13  ;;  %vm357_vm3 = vweird.f32 %v301_v17 }
  0x96   : > { %2430 = vrsqrt.f32 %v301_v17 }
  0x97   : > { %2432 = vrsqrt.f32 %v3033_v19  ;;  %vm337_vm13 = vweird.f32 %v3033_v19 }
  0x9a   : > { %v656_v23 = vpop.xlane.xlu1 %655  ;;  %v244_v24 = vpop.xlane.xlu2 %243 }
  0x9b   : > { %v2429_v25 = vpop.eup %2428  ;;  %2434 = vrcp.f32 %v656_v23  ;;  %v3038_v36 = vmax.f32 %v244_v24, 1e-16  ;;  %v666_v56 = vand.u32 2147483647, %v656_v23  ;;  %v668_v63 = vand.u32 2147483648, %v656_v23 }
  0x9c   : > { %v238_v29 = vpop.xlane.xlu0 %237  ;;  %v2431_v30 = vpop.eup %2430  ;;  %v362_v31 = vmul.f32 %v2429_v25, %v302_v13  ;;  %vm368_vm2 = vweird.f32 %v2429_v25  ;;  %vm662_vm8 = vweird.f32 %v656_v23 }
  0x9d   : > { %v3036_v35 = vmax.f32 %v238_v29, 1e-16  ;;  %v3040_v37 = vpop.eup %2432  ;;  %v352_v41 = vmul.f32 %v2431_v30, %v301_v17  ;;  %vm3046_vm4 = vmor %vm367_vm1, %vm368_vm2  ;;  %vm358_vm5 = vweird.f32 %v2431_v30  ;;  %vm667_vm10 = vcmp.eq.f32.partialorder %v666_v56, 8.507059e+37 }
  0x9e   : > { %v363_v42 = vmul.f32 %v2429_v25, %v362_v31  ;;  %v332_v48 = vmul.f32 %v3040_v37, %v3033_v19  ;;  %vm359_vm7 = vmor %vm357_vm3, %vm358_vm5  ;;  %vm377_vm11 = vweird.f32 %v3038_v36 }
  0x9f   : > { %2436 = vrsqrt.f32 %v3036_v35  ;;  %v353_v43 = vmul.f32 %v2431_v30, %v352_v41 }
  0xa0   : > { %2438 = vrsqrt.f32 %v3038_v36  ;;  %v364_v47 = vmul.f32 0.5, %v363_v42  ;;  %v333_v12 = vmul.f32 %v3040_v37, %v332_v48 }
  0xa1   : > { %v2435_v49 = vpop.eup %2434  ;;  %v354_v53 = vmul.f32 0.5, %v353_v43 }
  0xa2   : > { %v365_v54 = vsub.f32 1.5, %v364_v47  ;;  %v658_v55 = vmul.f32 %v2435_v49, %v656_v23  ;;  %v250_v59 = vpop.xlane.xlu2 %249  ;;  %v248_v60 = vpop.xlane.xlu1 %247  ;;  %vm663_vm6 = vweird.f32 %v2435_v49 }
  0xa3   : > { %v355_v62 = vsub.f32 1.5, %v354_v53  ;;  %v3050_v5 = vmax.f32 %v250_v59, 1e-16  ;;  %v3060_v29 = vmax.f32 %v248_v60, 1e-16  ;;  %vm664_vm9 = vmor %vm662_vm8, %vm663_vm6 }
  0xa4   : > { %v246_v4 = vpop.xlane.xlu0 %245  ;;  %v366_v8 = vmul.f32 %v2429_v25, %v365_v54  ;;  %v659_v11 = vsub.f32 1.0, %v658_v55  ;;  %v669_v55 = vor.u32 1.1754944e-38, %v668_v63 }
  0xa5   : > { %v3052_v7 = vpop.eup %2436  ;;  %v3055_v13 = vmax.f32 %v246_v4, 1e-16  ;;  %v356_v24 = vmul.f32 %v2431_v30, %v355_v62  ;;  %2440 = vrsqrt.f32 %v3050_v5  ;;  %vm407_vm15 = vweird.f32 %v3050_v5 }
  0xa6   : > { %v3057_v18 = vpop.eup %2438  ;;  %v370_v31 = vsel %vm3046_vm4, %v2429_v25, %v366_v8  ;;  %v660_v41 = vmul.f32 %v2435_v49, %v659_v11  ;;  %v342_v42 = vmul.f32 %v3052_v7, %v3036_v35  ;;  %v334_v25 = vmul.f32 0.5, %v333_v12 }
  0xa7   : > { %v372_v43 = vmul.f32 %v3057_v18, %v3038_v36  ;;  %v679_v47 = vmul.f32 %v370_v31, %v2916_v1  ;;  %v360_v48 = vsel %vm359_vm7, %v2431_v30, %v356_v24  ;;  %2442 = vrsqrt.f32 %v3055_v13 }
  0xa8   : > { %v678_v53 = vmul.f32 %v360_v48, %v2918_v2  ;;  %v661_v54 = vadd.f32 %v2435_v49, %v660_v41  ;;  %2444 = vrsqrt.f32 %v3060_v29  ;;  %v343_v60 = vmul.f32 %v3052_v7, %v342_v42 }
  0xa9   : > { %v373_v17 = vmul.f32 %v3057_v18, %v372_v43  ;;  %v335_v63 = vsub.f32 1.5, %v334_v25  ;;  %vm378_vm12 = vweird.f32 %v3057_v18  ;;  %vm387_vm14 = vweird.f32 %v3055_v13 }
  0xaa   : > { %v2106_v59 = vpack.c.bf16 %v679_v47, %v678_v53  ;;  %v665_v1 = vsel %vm664_vm9, %v2435_v49, %v661_v54  ;;  %v256_v23 = vpop.xlane.xlu2 %255  ;;  %v254_v61 = vpop.xlane.xlu1 %253  ;;  %v3095_v41 = vmul.f32 0.5, %v343_v60  ;;  %vm3113_vm1 = vmor %vm377_vm11, %vm378_vm12  ;;  %vm397_vm2 = vweird.f32 %v3060_v29 }
  0xab   : > { %v374_v30 = vmul.f32 0.5, %v373_v17  ;;  %v3077_v62 = vpop.eup %2440  ;;  %v670_v2 = vsel %vm667_vm10, %v669_v55, %v665_v1  ;;  %v3080_v8 = vmax.f32 %v256_v23, 1e-16  ;;  %v3092_v31 = vmax.f32 %v254_v61, 1e-16 }
  0xac   : > { %v252_v4 = vpop.xlane.xlu0 %251  ;;  %2290 = vst [vmem:[#allocation2 + $0x8] sm:$0xff] %v2106_v59   ;;  %v3082_v56 = vmul.f32 500.0, %v670_v2  ;;  %v402_v12 = vmul.f32 %v3077_v62, %v3050_v5  ;;  %vm408_vm3 = vweird.f32 %v3077_v62  ;;  %v336_v60 = vmul.f32 %v3040_v37, %v335_v63 }
  0xad   : > { %v375_v11 = vsub.f32 1.5, %v374_v30  ;;  %v3086_v49 = vpop.eup %2442  ;;  %2305 = vst [vmem:[#allocation3 + $0x8] sm:$0xff] %v2106_v59   ;;  %v3089_v24 = vmax.f32 %v252_v4, 1e-16  ;;  %2446 = vrsqrt.f32 %v3080_v8  ;;  %v345_v36 = vsub.f32 1.5, %v3095_v41  ;;  %vm3140_vm7 = vmor %vm407_vm15, %vm408_vm3 }
  0xae   : > { %v673_v42 = vrot.slane %v3082_v56, 4  ;;  %v382_v43 = vmul.f32 %v3086_v49, %v3055_v13  ;;  %v3101_v47 = vpop.eup %2444  ;;  %v403_v53 = vmul.f32 %v3077_v62, %v402_v12  ;;  %vm388_vm4 = vweird.f32 %v3086_v49 }
  0xaf   : > { %v376_v48 = vmul.f32 %v3057_v18, %v375_v11  ;;  %2448 = vrsqrt.f32 %v3089_v24  ;;  %v392_v55 = vmul.f32 %v3101_v47, %v3060_v29  ;;  %vm417_vm5 = vweird.f32 %v3089_v24  ;;  %vm3153_vm9 = vmor %vm387_vm14, %vm388_vm4 }
  0xb0   : > { %v675_v54 = vsel %vm653_vm0, %v3082_v56, %v673_v42  ;;  %v383_v17 = vmul.f32 %v3086_v49, %v382_v43  ;;  %v404_v59 = vmul.f32 0.5, %v403_v53  ;;  %2450 = vrsqrt.f32 %v3092_v31 }
  0xb1   : > { %774 = vperm.xlu0 %2427, %v675_v54   ;;  %v393_v30 = vmul.f32 %v3101_v47, %v392_v55  ;;  %v380_v4 = vsel %vm3113_vm1, %v3057_v18, %v376_v48  ;;  %vm437_vm6 = vweird.f32 %v3080_v8  ;;  %vm398_vm8 = vweird.f32 %v3101_v47 }
  0xb2   : > { %v384_v1 = vmul.f32 0.5, %v383_v17  ;;  %v262_v23 = vpop.xlane.xlu2 %261  ;;  %v260_v61 = vpop.xlane.xlu1 %259  ;;  %v405_v11 = vsub.f32 1.5, %v404_v59  ;;  %vm427_vm10 = vweird.f32 %v3092_v31  ;;  %vm338_vm11 = vweird.f32 %v3040_v37  ;;  %vm3178_vm12 = vmor %vm397_vm2, %vm398_vm8 }
  0xb3   : > { %v3127_v2 = vpop.eup %2446  ;;  %v3134_v12 = vmax.f32 %v262_v23, 1e-16  ;;  %v394_v53 = vmul.f32 0.5, %v393_v30  ;;  %v3166_v59 = vmax.f32 %v260_v61, 1e-16  ;;  %v680_v30 = vmul.f32 %v380_v4, %v2928_v9  ;;  %vm3198_vm15 = vmor %vm337_vm13, %vm338_vm11 }
  0xb4   : > { %v258_v63 = vpop.xlane.xlu0 %257  ;;  %v385_v42 = vsub.f32 1.5, %v384_v1  ;;  %v432_v18 = vmul.f32 %v3127_v2, %v3080_v8  ;;  %v406_v5 = vmul.f32 %v3077_v62, %v405_v11  ;;  %vm438_vm14 = vweird.f32 %v3127_v2 }
  0xb5   : > { %v3147_v48 = vpop.eup %2448  ;;  %v3159_v25 = vmax.f32 %v258_v63, 1e-16  ;;  %2452 = vrsqrt.f32 %v3134_v12  ;;  %v395_v55 = vsub.f32 1.5, %v394_v53  ;;  %vm3237_vm3 = vmor %vm437_vm6, %vm438_vm14  ;;  %vm457_vm11 = vweird.f32 %v3166_v59 }
  0xb6   : > { %v386_v17 = vmul.f32 %v3086_v49, %v385_v42  ;;  %v412_v13 = vmul.f32 %v3147_v48, %v3089_v24  ;;  %v3168_v1 = vpop.eup %2450  ;;  %v410_v23 = vsel %vm3140_vm7, %v3077_v62, %v406_v5  ;;  %v433_v63 = vmul.f32 %v3127_v2, %v432_v18 }
  0xb7   : > { %2454 = vrsqrt.f32 %v3159_v25  ;;  %v396_v61 = vmul.f32 %v3101_v47, %v395_v55  ;;  %v683_v4 = vmul.f32 %v410_v23, %v2937_v14  ;;  %v422_v43 = vmul.f32 %v3168_v1, %v3092_v31 }
  0xb8   : > { %v390_v9 = vsel %vm3153_vm9, %v3086_v49, %v386_v17  ;;  %v413_v62 = vmul.f32 %v3147_v48, %v412_v13  ;;  %v434_v42 = vmul.f32 0.5, %v433_v63  ;;  %vm418_vm1 = vweird.f32 %v3147_v48 }
  0xb9   : > { %v681_v29 = vmul.f32 %v390_v9, %v2941_v16  ;;  %v400_v53 = vsel %vm3178_vm12, %v3101_v47, %v396_v61  ;;  %2456 = vrsqrt.f32 %v3166_v59  ;;  %v423_v55 = vmul.f32 %v3168_v1, %v422_v43  ;;  %vm3226_vm13 = vmor %vm417_vm5, %vm418_vm1 }
  0xba   : > { %v414_v18 = vmul.f32 0.5, %v413_v62  ;;  %v268_v14 = vpop.xlane.xlu2 %267  ;;  %v266_v16 = vpop.xlane.xlu1 %265  ;;  %v682_v19 = vmul.f32 %v400_v53, %v2939_v15  ;;  %v435_v17 = vsub.f32 1.5, %v434_v42  ;;  %v3218_v63 = vsel %vm3198_vm15, %v3040_v37, %v336_v60 }
  0xbb   : > { %v3207_v54 = vpop.eup %2452  ;;  %v2111_v5 = vpack.c.bf16 %v681_v29, %v680_v30  ;;  %v424_v62 = vmul.f32 0.5, %v423_v55  ;;  %vm428_vm2 = vweird.f32 %v3168_v1  ;;  %vm447_vm4 = vweird.f32 %v3159_v25 }
  0xbc   : > { %v264_v13 = vpop.xlane.xlu0 %263  ;;  %v415_v23 = vsub.f32 1.5, %v414_v18  ;;  %v462_v47 = vmul.f32 %v3207_v54, %v3134_v12  ;;  %v2116_v30 = vpack.c.bf16 %v683_v4, %v682_v19  ;;  %v436_v61 = vmul.f32 %v3127_v2, %v435_v17  ;;  %vm3258_vm6 = vmor %vm427_vm10, %vm428_vm2 }
  0xbd   : > { %v3213_v11 = vmax.f32 %v264_v13, 1e-16  ;;  %v3220_v9 = vpop.eup %2454  ;;  %2291 = vst [vmem:[#allocation2 + $0x10] sm:$0xff] %v2111_v5   ;;  %v3244_v4 = vmax.f32 %v268_v14, 1e-16  ;;  %v425_v42 = vsub.f32 1.5, %v424_v62  ;;  %vm467_vm5 = vweird.f32 %v3134_v12 }
  0xbe   : > { %2306 = vst [vmem:[#allocation3 + $0x10] sm:$0xff] %v2111_v5   ;;  %v416_v37 = vmul.f32 %v3147_v48, %v415_v23  ;;  %v442_v24 = vmul.f32 %v3220_v9, %v3159_v25  ;;  %v463_v29 = vmul.f32 %v3207_v54, %v462_v47  ;;  %vm468_vm7 = vweird.f32 %v3207_v54 }
  0xbf   : > { %2292 = vst [vmem:[#allocation2 + $0x18] sm:$0xff] %v2116_v30   ;;  %2458 = vrsqrt.f32 %v3213_v11  ;;  %v3249_v8 = vpop.eup %2456  ;;  %v440_v14 = vsel %vm3237_vm3, %v3127_v2, %v436_v61  ;;  %v426_v5 = vmul.f32 %v3168_v1, %v425_v42  ;;  %vm448_vm8 = vweird.f32 %v3220_v9  ;;  %vm3287_vm9 = vmor %vm467_vm5, %vm468_vm7 }
  0xc0   : > { %2307 = vst [vmem:[#allocation3 + $0x18] sm:$0xff] %v2116_v30   ;;  %v420_v43 = vsel %vm3226_vm13, %v3147_v48, %v416_v37  ;;  %v443_v53 = vmul.f32 %v3220_v9, %v442_v24  ;;  %v464_v18 = vmul.f32 0.5, %v463_v29  ;;  %v452_v31 = vmul.f32 %v3249_v8, %v3166_v59  ;;  %vm3299_vm10 = vmor %vm447_vm4, %vm448_vm8 }
  0xc1   : > { %v684_v48 = vmul.f32 %v420_v43, %v2953_v22  ;;  %2460 = vrsqrt.f32 %v3244_v4  ;;  %v430_v23 = vsel %vm3258_vm6, %v3168_v1, %v426_v5  ;;  %v3277_v47 = vmax.f32 %v266_v16, 1e-16 }
  0xc2   : > { %v444_v19 = vmul.f32 0.5, %v443_v53  ;;  %v465_v17 = vsub.f32 1.5, %v464_v18  ;;  %v274_v55 = vpop.xlane.xlu2 %273  ;;  %v272_v13 = vpop.xlane.xlu1 %271  ;;  %v453_v2 = vmul.f32 %v3249_v8, %v452_v31  ;;  %v685_v61 = vmul.f32 %v430_v23, %v2951_v21 }
  0xc3   : > { %v3279_v15 = vmax.f32 %v274_v55, 1e-16  ;;  %vm458_vm12 = vweird.f32 %v3249_v8  ;;  %2462 = vrsqrt.f32 %v3277_v47  ;;  %v3312_v25 = vmul.f32 %v3052_v7, %v345_v36 }
  0xc4   : > { %v270_v30 = vpop.xlane.xlu0 %269  ;;  %v445_v22 = vsub.f32 1.5, %v444_v19  ;;  %v466_v62 = vmul.f32 %v3207_v54, %v465_v17  ;;  %v454_v60 = vmul.f32 0.5, %v453_v2  ;;  %v2121_v12 = vpack.c.bf16 %v685_v61, %v684_v48  ;;  %vm3324_vm14 = vmor %vm457_vm11, %vm458_vm12 }
  0xc5   : > { %v3291_v1 = vmax.f32 %v270_v30, 1e-16  ;;  %v3293_v16 = vpop.eup %2458  ;;  %v686_v42 = vmul.f32 %v440_v14, %v2949_v20  ;;  %v3332_v36 = vmul.f32 %v3218_v63, %v2924_v6  ;;  %vm477_vm15 = vweird.f32 %v3213_v11 }
  0xc6   : > { %v446_v24 = vmul.f32 %v3220_v9, %v445_v22  ;;  %v472_v29 = vmul.f32 %v3293_v16, %v3213_v11  ;;  %v470_v59 = vsel %vm3287_vm9, %v3207_v54, %v466_v62  ;;  %v455_v43 = vsub.f32 1.5, %v454_v60  ;;  %2293 = vst [vmem:[#allocation2 + $0x20] sm:$0xff] %v2121_v12  }
  0xc7   : > { %2464 = vrsqrt.f32 %v3291_v1  ;;  %v3319_v49 = vpop.eup %2460  ;;  %2308 = vst [vmem:[#allocation3 + $0x20] sm:$0xff] %v2121_v12   ;;  %v689_v14 = vmul.f32 %v470_v59, %v2961_v26  ;;  %vm497_vm1 = vweird.f32 %v3244_v4  ;;  %v3341_v31 = vmax.f32 %v272_v13, 1e-16 }
  0xc8   : > { %v450_v53 = vsel %vm3299_vm10, %v3220_v9, %v446_v24  ;;  %v473_v20 = vmul.f32 %v3293_v16, %v472_v29  ;;  %2466 = vrsqrt.f32 %v3279_v15  ;;  %v456_v18 = vmul.f32 %v3249_v8, %v455_v43 }
  0xc9   : > { %v687_v54 = vmul.f32 %v450_v53, %v2965_v28  ;;  %v492_v9 = vmul.f32 %v3319_v49, %v3244_v4  ;;  %v3343_v17 = vpop.eup %2462  ;;  %vm478_vm13 = vweird.f32 %v3293_v16  ;;  %vm498_vm2 = vweird.f32 %v3319_v49 }
  0xca   : > { %v474_v5 = vmul.f32 0.5, %v473_v20  ;;  %v280_v48 = vpop.xlane.xlu2 %279  ;;  %v278_v19 = vpop.xlane.xlu1 %277  ;;  %v460_v28 = vsel %vm3324_vm14, %v3249_v8, %v456_v18  ;;  %v482_v13 = vmul.f32 %v3343_v17, %v3277_v47  ;;  %2468 = vrsqrt.f32 %v3341_v31  ;;  %vm3371_vm3 = vmor %vm477_vm15, %vm478_vm13 }
  0xcb   : > { %v2126_v55 = vpack.c.bf16 %v687_v54, %v686_v42  ;;  %v493_v23 = vmul.f32 %v3319_v49, %v492_v9  ;;  %v688_v26 = vmul.f32 %v460_v28, %v2963_v27  ;;  %v3359_v62 = vmax.f32 %v280_v48, 1e-16  ;;  %vm3387_vm7 = vmor %vm497_vm1, %vm498_vm2 }
  0xcc   : > { %v276_v2 = vpop.xlane.xlu0 %275  ;;  %v475_v30 = vsub.f32 1.5, %v474_v5  ;;  %v483_v60 = vmul.f32 %v3343_v17, %v482_v13  ;;  %vm487_vm4 = vweird.f32 %v3277_v47  ;;  %vm527_vm5 = vweird.f32 %v3279_v15 }
  0xcd   : > { %v3354_v61 = vpop.eup %2464  ;;  %2294 = vst [vmem:[#allocation2 + $0x28] sm:$0xff] %v2126_v55   ;;  %v494_v22 = vmul.f32 0.5, %v493_v23  ;;  %v3357_v8 = vmax.f32 %v276_v2, 1e-16  ;;  %v2131_v27 = vpack.c.bf16 %v689_v14, %v688_v26  ;;  %vm488_vm6 = vweird.f32 %v3343_v17 }
  0xce   : > { %v3361_v37 = vpop.eup %2466  ;;  %2309 = vst [vmem:[#allocation3 + $0x28] sm:$0xff] %v2126_v55   ;;  %v476_v21 = vmul.f32 %v3293_v16, %v475_v30  ;;  %v502_v12 = vmul.f32 %v3354_v61, %v3291_v1  ;;  %v484_v59 = vmul.f32 0.5, %v483_v60  ;;  %vm507_vm8 = vweird.f32 %v3291_v1  ;;  %vm3406_vm12 = vmor %vm487_vm4, %vm488_vm6 }
  0xcf   : > { %v495_v29 = vsub.f32 1.5, %v494_v22  ;;  %v522_v42 = vmul.f32 %v3361_v37, %v3279_v15  ;;  %2295 = vst [vmem:[#allocation2 + $0x30] sm:$0xff] %v2131_v27   ;;  %2470 = vrsqrt.f32 %v3357_v8  ;;  %vm508_vm9 = vweird.f32 %v3354_v61 }
  0xd0   : > { %v503_v43 = vmul.f32 %v3354_v61, %v502_v12  ;;  %2310 = vst [vmem:[#allocation3 + $0x30] sm:$0xff] %v2131_v27   ;;  %v480_v20 = vsel %vm3371_vm3, %v3293_v16, %v476_v21  ;;  %v485_v54 = vsub.f32 1.5, %v484_v59  ;;  %2472 = vrsqrt.f32 %v3359_v62  ;;  %v3398_v14 = vpop.eup %2468  ;;  %vm3425_vm1 = vmor %vm507_vm8, %vm508_vm9 }
  0xd1   : > { %v496_v11 = vmul.f32 %v3319_v49, %v495_v29  ;;  %v523_v41 = vmul.f32 %v3361_v37, %v522_v42  ;;  %vm347_vm10 = vweird.f32 %v3036_v35  ;;  %vm348_vm11 = vweird.f32 %v3052_v7 }
  0xd2   : > { %v504_v18 = vmul.f32 0.5, %v503_v43  ;;  %v286_v9 = vpop.xlane.xlu2 %285  ;;  %v284_v4 = vpop.xlane.xlu1 %283  ;;  %vm528_vm14 = vweird.f32 %v3361_v37  ;;  %vm517_vm15 = vweird.f32 %v3341_v31  ;;  %v3412_v48 = vmax.f32 %v278_v19, 1e-16  ;;  %vm3496_vm8 = vmor %vm347_vm10, %vm348_vm11 }
  0xd3   : > { %v524_v16 = vmul.f32 0.5, %v523_v41  ;;  %v500_v28 = vsel %vm3387_vm7, %v3319_v49, %v496_v11  ;;  %v486_v23 = vmul.f32 %v3343_v17, %v485_v54  ;;  %v512_v47 = vmul.f32 %v3398_v14, %v3341_v31  ;;  %vm3448_vm13 = vmor %vm527_vm5, %vm528_vm14 }
  0xd4   : > { %v282_v55 = vpop.xlane.xlu0 %281  ;;  %v505_v2 = vsub.f32 1.5, %v504_v18  ;;  %v690_v26 = vmul.f32 %v480_v20, %v2977_v34  ;;  %2474 = vrsqrt.f32 %v3412_v48  ;;  %v3430_v49 = vmax.f32 %v286_v9, 1e-16 }
  0xd5   : > { %v525_v30 = vsub.f32 1.5, %v524_v16  ;;  %v3432_v13 = vpop.eup %2470  ;;  %v490_v22 = vsel %vm3406_vm12, %v3343_v17, %v486_v23  ;;  %v513_v27 = vmul.f32 %v3398_v14, %v512_v47  ;;  %v3439_v1 = vmax.f32 %v282_v55, 1e-16 }
  0xd6   : > { %v506_v34 = vmul.f32 %v3354_v61, %v505_v2  ;;  %v692_v21 = vmul.f32 %v500_v28, %v2973_v32  ;;  %v691_v60 = vmul.f32 %v490_v22, %v2975_v33  ;;  %v532_v17 = vmul.f32 %v3432_v13, %v3357_v8  ;;  %v3454_v29 = vpop.eup %2472 }
  0xd7   : > { %v526_v12 = vmul.f32 %v3361_v37, %v525_v30  ;;  %v514_v33 = vmul.f32 0.5, %v513_v27  ;;  %vm518_vm2 = vweird.f32 %v3398_v14  ;;  %2476 = vrsqrt.f32 %v3439_v1 }
  0xd8   : > { %v510_v32 = vsel %vm3425_vm1, %v3354_v61, %v506_v34  ;;  %v2136_v42 = vpack.c.bf16 %v691_v60, %v690_v26  ;;  %v533_v59 = vmul.f32 %v3432_v13, %v532_v17  ;;  %vm537_vm3 = vweird.f32 %v3357_v8  ;;  %vm3474_vm5 = vmor %vm517_vm15, %vm518_vm2 }
  0xd9   : > { %v693_v15 = vmul.f32 %v510_v32, %v2989_v40  ;;  %v530_v43 = vsel %vm3448_vm13, %v3361_v37, %v526_v12  ;;  %v515_v11 = vsub.f32 1.5, %v514_v33  ;;  %v552_v61 = vmul.f32 %v3454_v29, %v3359_v62 }
  0xda   : > { %vm557_vm4 = vweird.f32 %v3359_v62  ;;  %v3470_v53 = vpop.eup %2474  ;;  %2296 = vst [vmem:[#allocation2 + $0x38] sm:$0xff] %v2136_v42   ;;  %v534_v20 = vmul.f32 0.5, %v533_v59  ;;  %vm547_vm6 = vweird.f32 %v3412_v48  ;;  %2478 = vrsqrt.f32 %v3430_v49  ;;  %v292_v54 = vpop.xlane.xlu2 %291 }
  0xdb   : > { %v2141_v41 = vpack.c.bf16 %v693_v15, %v692_v21  ;;  %2311 = vst [vmem:[#allocation3 + $0x38] sm:$0xff] %v2136_v42   ;;  %v516_v18 = vmul.f32 %v3398_v14, %v515_v11  ;;  %vm538_vm7 = vweird.f32 %v3432_v13  ;;  %v553_v9 = vmul.f32 %v3454_v29, %v552_v61  ;;  %v290_v5 = vpop.xlane.xlu1 %289 }
  0xdc   : > { %v288_v37 = vpop.xlane.xlu0 %287  ;;  %v542_v31 = vmul.f32 %v3470_v53, %v3412_v48  ;;  %v695_v16 = vmul.f32 %v530_v43, %v2985_v38  ;;  %v535_v55 = vsub.f32 1.5, %v534_v20  ;;  %v3486_v28 = vmax.f32 %v284_v4, 1e-16  ;;  %vm3511_vm10 = vmor %vm537_vm3, %vm538_vm7 }
  0xdd   : > { %2297 = vst [vmem:[#allocation2 + $0x40] sm:$0xff] %v2141_v41   ;;  %v3488_v23 = vmax.f32 %v288_v37, 1e-16  ;;  %v3490_v2 = vpop.eup %2476  ;;  %v520_v38 = vsel %vm3474_vm5, %v3398_v14, %v516_v18  ;;  %v554_v26 = vmul.f32 0.5, %v553_v9  ;;  %vm558_vm9 = vweird.f32 %v3454_v29 }
  0xde   : > { %2312 = vst [vmem:[#allocation3 + $0x40] sm:$0xff] %v2141_v41   ;;  %v543_v4 = vmul.f32 %v3470_v53, %v542_v31  ;;  %v694_v19 = vmul.f32 %v520_v38, %v2987_v39  ;;  %v536_v30 = vmul.f32 %v3432_v13, %v535_v55  ;;  %v562_v14 = vmul.f32 %v3490_v2, %v3439_v1  ;;  %vm3525_vm12 = vmor %vm557_vm4, %vm558_vm9 }
  0xdf   : > { %v3517_v22 = vmax.f32 %v292_v54, 1e-16  ;;  %v555_v34 = vsub.f32 1.5, %v554_v26  ;;  %vm548_vm11 = vweird.f32 %v3470_v53  ;;  %2480 = vrsqrt.f32 %v3486_v28 }
  0xe0   : > { %v544_v27 = vmul.f32 0.5, %v543_v4  ;;  %v3521_v39 = vpop.eup %2478  ;;  %v2146_v21 = vpack.c.bf16 %v695_v16, %v694_v19  ;;  %v563_v60 = vmul.f32 %v3490_v2, %v562_v14  ;;  %2482 = vrsqrt.f32 %v3488_v23  ;;  %vm3543_vm14 = vmor %vm547_vm6, %vm548_vm11 }
  0xe1   : > { %v350_v12 = vsel %vm3496_vm8, %v3052_v7, %v3312_v25  ;;  %v540_v24 = vsel %vm3511_vm10, %v3432_v13, %v536_v30  ;;  %v556_v17 = vmul.f32 %v3454_v29, %v555_v34  ;;  %v582_v32 = vmul.f32 %v3521_v39, %v3430_v49 }
  0xe2   : > { %v545_v62 = vsub.f32 1.5, %v544_v27  ;;  %2298 = vst [vmem:[#allocation2 + $0x48] sm:$0xff] %v2146_v21   ;;  %v564_v42 = vmul.f32 0.5, %v563_v60  ;;  %vm567_vm15 = vweird.f32 %v3439_v1  ;;  %vm568_vm1 = vweird.f32 %v3490_v2  ;;  %v298_v11 = vpop.xlane.xlu2 %297 }
  0xe3   : > { %2484 = vrsqrt.f32 %v3517_v22  ;;  %2313 = vst [vmem:[#allocation3 + $0x48] sm:$0xff] %v2146_v21   ;;  %v560_v7 = vsel %vm3525_vm12, %v3454_v29, %v556_v17  ;;  %v583_v48 = vmul.f32 %v3521_v39, %v582_v32  ;;  %vm587_vm13 = vweird.f32 %v3430_v49  ;;  %vm3570_vm2 = vmor %vm567_vm15, %vm568_vm1 }
  0xe4   : > { %v546_v25 = vmul.f32 %v3470_v53, %v545_v62  ;;  %v294_v13 = vpop.xlane.xlu0 %293  ;;  %v696_v15 = vmul.f32 %v540_v24, %v3001_v46  ;;  %v565_v59 = vsub.f32 1.5, %v564_v42  ;;  %v3557_v43 = vmax.f32 %v290_v5, 1e-16 }
  0xe5   : > { %v3560_v61 = vmul.f32 %v350_v12, %v2930_v10  ;;  %v2481_v41 = vpop.eup %2480  ;;  %v698_v40 = vmul.f32 %v560_v7, %v2997_v44  ;;  %v584_v20 = vmul.f32 0.5, %v583_v48  ;;  %vm588_vm3 = vweird.f32 %v3521_v39  ;;  %v296_v10 = vpop.xlane.xlu1 %295 }
  0xe6   : > { %v550_v29 = vsel %vm3543_vm14, %v3470_v53, %v546_v25  ;;  %v3575_v37 = vpop.eup %2482  ;;  %v566_v54 = vmul.f32 %v3490_v2, %v565_v59  ;;  %v572_v53 = vmul.f32 %v2481_v41, %v3486_v28  ;;  %v3580_v18 = vmax.f32 %v294_v13, 1e-16  ;;  %vm3600_vm4 = vmor %vm587_vm13, %vm588_vm3 }
  0xe7   : > { %v697_v44 = vmul.f32 %v550_v29, %v2999_v45  ;;  %v585_v9 = vsub.f32 1.5, %v584_v20  ;;  %v592_v1 = vmul.f32 %v3575_v37, %v3488_v23  ;;  %2486 = vrsqrt.f32 %v3557_v43 }
  0xe8   : > { %v3585_v31 = vmax.f32 %v298_v11, 1e-16  ;;  %v570_v45 = vsel %vm3570_vm2, %v3490_v2, %v566_v54  ;;  %v573_v55 = vmul.f32 %v2481_v41, %v572_v53  ;;  %v3592_v47 = vmax.f32 %v296_v10, 1e-16 }
  0xe9   : > { %v3587_v5 = vpop.eup %2484  ;;  %v2151_v16 = vpack.c.bf16 %v697_v44, %v696_v15  ;;  %v699_v38 = vmul.f32 %v570_v45, %v3013_v52  ;;  %v586_v26 = vmul.f32 %v3521_v39, %v585_v9  ;;  %v593_v19 = vmul.f32 %v3575_v37, %v592_v1 }
  0xea   : > { %v612_v2 = vmul.f32 %v3587_v5, %v3517_v22  ;;  %v574_v30 = vmul.f32 0.5, %v573_v55  ;;  %vm577_vm5 = vweird.f32 %v3486_v28  ;;  %vm578_vm6 = vweird.f32 %v2481_v41 }
  0xeb   : > { %2299 = vst [vmem:[#allocation2 + $0x50] sm:$0xff] %v2151_v16   ;;  %2488 = vrsqrt.f32 %v3580_v18  ;;  %v2156_v52 = vpack.c.bf16 %v699_v38, %v698_v40  ;;  %v594_v35 = vmul.f32 0.5, %v593_v19  ;;  %vm597_vm7 = vweird.f32 %v3488_v23  ;;  %vm3616_vm9 = vmor %vm577_vm5, %vm578_vm6  ;;  %v2494_v38 = vld [vmem:[#allocation4 + $0xe0] sm:$0xff] }
  0xec   : > { %2314 = vst [vmem:[#allocation3 + $0x50] sm:$0xff] %v2151_v16   ;;  %v613_v49 = vmul.f32 %v3587_v5, %v612_v2  ;;  %v590_v14 = vsel %vm3600_vm4, %v3521_v39, %v586_v26  ;;  %v575_v34 = vsub.f32 1.5, %v574_v30  ;;  %vm598_vm8 = vweird.f32 %v3575_v37 }
  0xed   : > { %2490 = vrsqrt.f32 %v3585_v31  ;;  %v2487_v28 = vpop.eup %2486  ;;  %2300 = vst [vmem:[#allocation2 + $0x58] sm:$0xff] %v2156_v52   ;;  %v595_v21 = vsub.f32 1.5, %v594_v35  ;;  %v2101_v39 = vpack.c.bf16 %v3560_v61, %v3332_v36  ;;  %v701_v24 = vmul.f32 %v590_v14, %v3009_v50  ;;  %vm3628_vm10 = vmor %vm597_vm7, %vm598_vm8  ;;  %v2495_v35 = vld [vmem:[#allocation4 + $0xf8] sm:$0xff] }
  0xee   : > { %v614_v8 = vmul.f32 0.5, %v613_v49  ;;  %2492 = vrsqrt.f32 %v3592_v47  ;;  %2315 = vst [vmem:[#allocation3 + $0x58] sm:$0xff] %v2156_v52   ;;  %v576_v60 = vmul.f32 %v2481_v41, %v575_v34  ;;  %v602_v12 = vmul.f32 %v2487_v28, %v3557_v43  ;;  %v2496_v34 = vld [vmem:[#allocation4 + $0xf0] sm:$0xff] }
  0xef   : > { %v596_v17 = vmul.f32 %v3575_v37, %v595_v21  ;;  %2102 = vst [vmem:[#allocation2] sm:$0xff] %v2101_v39   ;;  %vm617_vm11 = vweird.f32 %v3517_v22  ;;  %vm618_vm12 = vweird.f32 %v3587_v5  ;;  %vm607_vm14 = vweird.f32 %v3557_v43 }
  0xf0   : > { %v615_v32 = vsub.f32 1.5, %v614_v8  ;;  %v580_v42 = vsel %vm3616_vm9, %v2481_v41, %v576_v60  ;;  %v603_v7 = vmul.f32 %v2487_v28, %v602_v12  ;;  %vm608_vm15 = vweird.f32 %v2487_v28  ;;  %vm3644_vm1 = vmor %vm617_vm11, %vm618_vm12 }
  0xf1   : > { %v2489_v33 = vpop.eup %2488  ;;  %v700_v25 = vmul.f32 %v580_v42, %v3011_v51  ;;  %v600_v48 = vsel %vm3628_vm10, %v3575_v37, %v596_v17  ;;  %vm3649_vm13 = vmor %vm607_vm14, %vm608_vm15  ;;  %vm627_vm2 = vweird.f32 %v3580_v18  ;;  %vm647_vm4 = vweird.f32 %v3585_v31 }
  0xf2   : > { %v622_v50 = vmul.f32 %v2489_v33, %v3580_v18  ;;  %v604_v13 = vmul.f32 0.5, %v603_v7  ;;  %v616_v11 = vmul.f32 %v3587_v5, %v615_v32  ;;  %vm628_vm3 = vweird.f32 %v2489_v33 }
  0xf3   : > { %v2491_v23 = vpop.eup %2490  ;;  %v2161_v59 = vpack.c.bf16 %v701_v24, %v700_v25  ;;  %v702_v10 = vmul.f32 %v600_v48, %v3023_v58  ;;  %vm3661_vm6 = vmor %vm627_vm2, %vm628_vm3  ;;  %vm637_vm7 = vweird.f32 %v3592_v47 }
  0xf4   : > { %v2493_v15 = vpop.eup %2492  ;;  %v623_v51 = vmul.f32 %v2489_v33, %v622_v50  ;;  %v642_v22 = vmul.f32 %v2491_v23, %v3585_v31  ;;  %v605_v40 = vsub.f32 1.5, %v604_v13  ;;  %v620_v54 = vsel %vm3644_vm1, %v3587_v5, %v616_v11 }
  0xf5   : > { %v632_v29 = vmul.f32 %v2493_v15, %v3592_v47  ;;  %2301 = vst [vmem:[#allocation2 + $0x60] sm:$0xff] %v2161_v59   ;;  %vm648_vm5 = vweird.f32 %v2491_v23  ;;  %vm638_vm8 = vweird.f32 %v2493_v15  ;;  %v704_v5 = vmul.f32 %v2494_v38, %v620_v54 }
  0xf6   : > { %v624_v43 = vmul.f32 0.5, %v623_v51  ;;  %v643_v20 = vmul.f32 %v2491_v23, %v642_v22  ;;  %2316 = vst [vmem:[#allocation3 + $0x60] sm:$0xff] %v2161_v59   ;;  %v606_v37 = vmul.f32 %v2487_v28, %v605_v40  ;;  %vm649_vm9 = vmor %vm647_vm4, %vm648_vm5 }
  0xf7   : > { %v633_v44 = vmul.f32 %v2493_v15, %v632_v29  ;;  %vm639_vm10 = vmor %vm637_vm7, %vm638_vm8 }
  0xf8   : > { %v625_v53 = vsub.f32 1.5, %v624_v43  ;;  %v644_v9 = vmul.f32 0.5, %v643_v20  ;;  %v610_v1 = vsel %vm3649_vm13, %v2487_v28, %v606_v37 }
  0xf9   : > { %v634_v16 = vmul.f32 0.5, %v633_v44  ;;  %v703_v58 = vmul.f32 %v610_v1, %v3021_v57 }
  0xfa   : > { %v626_v45 = vmul.f32 %v2489_v33, %v625_v53  ;;  %v645_v55 = vsub.f32 1.5, %v644_v9 }
  0xfb   : > { %v635_v26 = vsub.f32 1.5, %v634_v16  ;;  %v2166_v4 = vpack.c.bf16 %v703_v58, %v702_v10 }
  0xfc   : > { %v630_v19 = vsel %vm3661_vm6, %v2489_v33, %v626_v45  ;;  %v646_v2 = vmul.f32 %v2491_v23, %v645_v55 }
  0xfd   : > { %v705_v30 = vmul.f32 %v630_v19, %v3029_v3  ;;  %v636_v47 = vmul.f32 %v2493_v15, %v635_v26  ;;  %2302 = vst [vmem:[#allocation2 + $0x68] sm:$0xff] %v2166_v4  }
  0xfe   : > { %v650_v52 = vsel %vm649_vm9, %v2491_v23, %v646_v2  ;;  %2317 = vst [vmem:[#allocation3 + $0x68] sm:$0xff] %v2166_v4  }
  0xff   : > { %v2171_v57 = vpack.c.bf16 %v705_v30, %v704_v5  ;;  %v707_v49 = vmul.f32 %v2495_v35, %v650_v52  ;;  %v640_v14 = vsel %vm639_vm10, %v2493_v15, %v636_v47 }
 0x100   : > { %v706_v31 = vmul.f32 %v2496_v34, %v640_v14 }
 0x101   : > { %2303 = vst [vmem:[#allocation2 + $0x70] sm:$0xff] %v2171_v57  }
 0x102   : > { %2318 = vst [vmem:[#allocation3 + $0x70] sm:$0xff] %v2171_v57   ;;  %v2176_v28 = vpack.c.bf16 %v707_v49, %v706_v31 }
 0x104   : > { %2304 = vst [vmem:[#allocation2 + $0x78] sm:$0xff] %v2176_v28  }
 0x105   : > { %2319 = vst [vmem:[#allocation3 + $0x78] sm:$0xff] %v2176_v28  }
 0x123   : > { %v775_v27 = vpop.permute.xlu0 %774 }
 0x124   : > { %v782_v21 = vmul.f32 %v775_v27, %v3332_v36  ;;  %881 = sbr.rel (%p1954_p0) target bundleno = 609 (0x261), region = 44 }
 0x126   : > { %v2181_v3 = vpack.c.bf16 %v3560_v61, %v782_v21 }
 0x128   : > { %2182 = vst [vmem:[#allocation3] sm:$0xff] %v2181_v3  }
 0x129   : > { %v883_v8 = vrot.slane %v2924_v6, 4  ;;  %v891_v39 = vrot.slane %v3218_v63, 4  ;;  %vm895_vm11 = vcmask 3072   ;;  %v908_v48 = vld [vmem:[%s2912_s18] sm:$0xff] }
 0x12b   : > { %v885_v60 = vmul.f32 %v883_v8, %v2924_v6 }
 0x12d   : > { %v886_v12 = vsel %vm653_vm0, %v885_v60, 0.0 }
 0x12e   : > { %887 = vadd.xlane.f32.xlu0 %v886_v12 }
 0x1a1   : > { %v888_v24 = vpop.xlane.xlu0 %887 }
 0x1a2   : > { %v889_v17 = vmul.f32 %v888_v24, %v3218_v63 }
 0x1a4   : > { %v893_v36 = vmul.f32 %v891_v39, %v889_v17 }
 0x1a6   : > { %v894_v61 = vmul.f32 %v893_v36, %v3082_v56 }
 0x1a8   : > { %v896_v62 = vsel %vm895_vm11, %v894_v61, 0.0 }
 0x1a9   : > { %897 = vadd.xlane.f32.xlu0 %v896_v62 }
 0x21c   : > { %v898_v32 = vpop.xlane.xlu0 %897 }
 0x21d   : > { %v899_v33 = vrot.slane %v898_v32, 4 }
 0x21f   : > { %v900_v42 = vadd.f32 %v899_v33, %v898_v32 }
 0x221   : > { %v901_v6 = vrot.slane %v900_v42, 2 }
 0x223   : > { %v902_v7 = vadd.f32 %v901_v6, %v900_v42 }
 0x225   : > { %v903_v25 = vrot.slane %v902_v7, 1 }
 0x227   : > { %v904_v50 = vadd.f32 %v903_v25, %v902_v7 }
 0x229   : > { %2343 = vpush %v904_v50 }
 0x25a   : > { %s2344_s20 = spop %2343 }
 0x25b   : > { %v906_v23 = vstv %s2344_s20 }
 0x25c   : > { %v907_v63 = vmul.f32 2.0, %v906_v23 }
 0x25e   : > { %v909_v13 = vsub.f32 %v908_v48, %v907_v63 }
 0x260   : > { %910 = vst [vmem:[%s2912_s18] sm:$0xff] %v909_v13 }
 0x261 PF: > { %v2089_v15 = vld [vmem:[#allocation3 + $0x38] sm:$0xff]  ;;  %v2088_v59 = vld [vmem:[#allocation3 + $0x30] sm:$0xff]  ;;  %v2087_v51 = vld [vmem:[#allocation3 + $0x28] sm:$0xff]  ;;  %s1955_s23 = sshll.u32 %s2795_s12, 7  ;;  %vm1803_vm14 = vcmask 7168   ;;  %s2071_s28 = sshll.u32 %s2795_s12, 3 }
 0x262   : > { %v2097_v56 = vld [vmem:[#allocation3 + $0x78] sm:$0xff]  ;;  %1127 = vmatpush.bf16.xpose.msra.mxu0 %v2089_v15  ;;  %2327 = vmatpush.bf16.xpose.msra.mxu2 %v2089_v15  ;;  %v2096_v11 = vld [vmem:[#allocation3 + $0x70] sm:$0xff]  ;;  %v2095_v22 = vld [vmem:[#allocation3 + $0x68] sm:$0xff]  ;;  %s913_s24 = sshra.s32 %s1955_s23, 3  ;;  %s1859_s3 = scalar_lea.hbm %s4163_s2, %s2071_s28 }
 0x263   : > { %1176 = vmatpush.bf16.xpose.msra.mxu1 %v2097_v56  ;;  %2335 = vmatpush.bf16.xpose.msra.mxu3 %v2097_v56  ;;  %v2086_v41 = vld [vmem:[#allocation3 + $0x20] sm:$0xff]  ;;  %v2085_v29 = vld [vmem:[#allocation3 + $0x18] sm:$0xff]  ;;  %v2084_v43 = vld [vmem:[#allocation3 + $0x10] sm:$0xff]  ;;  %s1956_s25 = sshll.u32 %s913_s24, 2  ;;  %s1861_s4 = sshll.u32 %s2912_s18, 4  ;;  %s1862_s4 = int_to_ptr.vmem [resolvable:$true] %s1861_s4 }
 0x264   : > { %v2094_v40 = vld [vmem:[#allocation3 + $0x60] sm:$0xff]  ;;  %v2093_v46 = vld [vmem:[#allocation3 + $0x58] sm:$0xff]  ;;  %v2092_v20 = vld [vmem:[#allocation3 + $0x50] sm:$0xff]  ;;  %s3686_s26 = scalar_lea.vmem [#allocation2], %s1956_s25  ;;  %s3693_s27 = scalar_lea.vmem [#allocation3], %s1956_s25 }
 0x265   : > { %v2083_v10 = vld [vmem:[#allocation3 + $0x8] sm:$0xff]  ;;  %v2090_v54 = vld [vmem:[#allocation3 + $0x40] sm:$0xff]  ;;  %v3699_v19 = vld [vmem:[%s3686_s26 + $0x14] sm:$0xff]   ;;  %s1863_s5 = sshll.u32 %s1859_s3, 4  ;;  %s1849_s7 = scalar_lea.sflag [#allocation6], %s163_s15  ;;  %s1864_s5 = int_to_ptr.hbm [resolvable:$true] %s1863_s5 }
 0x266   : > { %v2091_v37 = vld [vmem:[#allocation3 + $0x48] sm:$0xff]  ;;  %v2074_v53 = vld [vmem:[%s3686_s26] sm:$0xff]  ;;  %v1230_v57 = vunpack.c.l.bf16 %v3699_v19  ;;  %v2076_v49 = vld [vmem:[%s3686_s26 + $0x10] sm:$0xff]  ;;  %s2731_s8 = sshra.s32 %s1864_s5, 4  ;;  %s2732_s8 = int_to_ptr.hbm [resolvable:$true] %s2731_s8 }
 0x267   : > { %v2082_v44 = vld [vmem:[#allocation3] sm:$0xff]  ;;  %v2075_v1 = vld [vmem:[%s3686_s26 + $0x8] sm:$0xff]  ;;  %v2321_v2 = vld [vmem:[%s3693_s27 + $0x10] sm:$0xff]   ;;  %s2733_s16 = scalar_lea.hbm %s2732_s8, 8  ;;  %p2738_p5 = scmp.lt.s32.totalorder %s2732_s8, %s4163_s2 }
 0x268   : > { %v2078_v9 = vld [vmem:[%s3686_s26 + $0x20] sm:$0xff]  ;;  %v2079_v18 = vld [vmem:[%s3686_s26 + $0x28] sm:$0xff]  ;;  %v2269_v52 = vunpack.c.h.bf16 %v2321_v2  ;;  %v2080_v14 = vld [vmem:[%s3686_s26 + $0x30] sm:$0xff]  ;;  %v2268_v27 = vunpack.c.l.bf16 %v2321_v2  ;;  %p2734_p1 = scmp.ne.s32.totalorder %s2732_s8, %s2733_s16 }
 0x269   : > { %v919_v16 = vld [vmem:[%s3686_s26 + $0x8] sm:$0xff]   ;;  %v918_v45 = vld [vmem:[%s3686_s26] sm:$0xff]   ;;  %v2077_v34 = vld [vmem:[%s3686_s26 + $0x18] sm:$0xff] }
 0x26a   : > { %1128 = vmatpush.bf16.xpose.msra.mxu0 %v2088_v59  ;;  %2328 = vmatpush.bf16.xpose.msra.mxu2 %v2088_v59  ;;  %v2320_v58 = vld [vmem:[%s3693_s27 + $0x8] sm:$0xff]   ;;  %v1227_v38 = vunpack.c.l.bf16 %v919_v16  ;;  %v2259_v5 = vld [vmem:[%s3693_s27] sm:$0xff]   ;;  %v1226_v26 = vunpack.c.h.bf16 %v918_v45  ;;  %v1262_v35 = vmul.f32 %v2269_v52, %v1230_v57  ;;  %v2081_v31 = vld [vmem:[%s3686_s26 + $0x38] sm:$0xff]  ;;  %v1225_v60 = vunpack.c.l.bf16 %v918_v45  ;;  %p2735_p2 = pnand %p2734_p1, %p2866_p4 }
 0x26b   : > { %1177 = vmatpush.bf16.xpose.msra.mxu1 %v2096_v11  ;;  %2336 = vmatpush.bf16.xpose.msra.mxu3 %v2096_v11  ;;  %v2264_v55 = vunpack.c.l.bf16 %v2320_v58  ;;  %v2261_v4 = vunpack.c.h.bf16 %v2259_v5  ;;  %v921_v28 = vld [vmem:[%s3686_s26 + $0x10] sm:$0xf]  ;;  %v2260_v8 = vunpack.c.l.bf16 %v2259_v5  ;;  %v2265_v39 = vunpack.c.h.bf16 %v2320_v58  ;;  %v2323_v5 = vld [vmem:[%s3693_s27 + $0x20] sm:$0xff]  }
 0x26c   : > { %v1229_v21 = vunpack.c.l.bf16 %v921_v28  ;;  %v1228_v24 = vunpack.c.h.bf16 %v919_v16  ;;  %p2736_p3 = pneg %p2735_p2 }
 0x26d   : > { %v1259_v30 = vmul.f32 %v2264_v55, %v1227_v38  ;;  %v1258_v47 = vmul.f32 %v2261_v4, %v1226_v26  ;;  %v1257_v12 = vmul.f32 %v2260_v8, %v1225_v60  ;;  %v925_v38 = vld [vmem:[%s3686_s26 + $0x20] sm:$0xff]   ;;  %v2276_v4 = vunpack.c.l.bf16 %v2323_v5 }
 0x26e   : > { %v1261_v3 = vmul.f32 %v2268_v27, %v1229_v21  ;;  %v1260_v17 = vmul.f32 %v2265_v39, %v1228_v24  ;;  %v1233_v2 = vunpack.c.l.bf16 %v925_v38  ;;  %v1234_v28 = vunpack.c.h.bf16 %v925_v38  ;;  %v2325_v39 = vld [vmem:[%s3693_s27 + $0x30] sm:$0xff]   ;;  %v3817_v38 = vld [vmem:[%s3693_s27 + $0x38] sm:$0xff]  }
 0x26f   : > { %1277 = vadd.xlane.f32.xlu0 %v1259_v30  ;;  %1275 = vadd.xlane.f32.xlu2 %v1258_v47  ;;  %v1231_v21 = vunpack.c.h.bf16 %v3699_v19 }
 0x270   : > { %1273 = vadd.xlane.f32.xlu1 %v1257_v12  ;;  %v929_v12 = vld [vmem:[%s3686_s26 + $0x30] sm:$0xff]  }
 0x272   : > { %1129 = vmatpush.bf16.xpose.msra.mxu0 %v2087_v51  ;;  %2329 = vmatpush.bf16.xpose.msra.mxu2 %v2087_v51 }
 0x273   : > { %1178 = vmatpush.bf16.xpose.msra.mxu1 %v2095_v22  ;;  %2337 = vmatpush.bf16.xpose.msra.mxu3 %v2095_v22 }
 0x277   : > { %1283 = vadd.xlane.f32.xlu0 %v1262_v35  ;;  %1281 = vadd.xlane.f32.xlu2 %v1261_v3  ;;  %v1265_v35 = vmul.f32 %v2276_v4, %v1233_v2 }
 0x278   : > { %1279 = vadd.xlane.f32.xlu1 %v1260_v17 }
 0x27a   : > { %1130 = vmatpush.bf16.xpose.msra.mxu0 %v2086_v41  ;;  %2330 = vmatpush.bf16.xpose.msra.mxu2 %v2086_v41 }
 0x27b   : > { %1179 = vmatpush.bf16.xpose.msra.mxu1 %v2094_v40  ;;  %2338 = vmatpush.bf16.xpose.msra.mxu3 %v2094_v40 }
 0x282   : > { %1131 = vmatpush.bf16.xpose.msra.mxu0 %v2085_v29  ;;  %2331 = vmatpush.bf16.xpose.msra.mxu2 %v2085_v29 }
 0x283   : > { %1180 = vmatpush.bf16.xpose.msra.mxu1 %v2093_v46  ;;  %2339 = vmatpush.bf16.xpose.msra.mxu3 %v2093_v46 }
 0x28a   : > { %1132 = vmatpush.bf16.xpose.msra.mxu0 %v2084_v43  ;;  %2332 = vmatpush.bf16.xpose.msra.mxu2 %v2084_v43 }
 0x28b   : > { %1181 = vmatpush.bf16.xpose.msra.mxu1 %v2092_v20  ;;  %2340 = vmatpush.bf16.xpose.msra.mxu3 %v2092_v20 }
 0x292   : > { %1133 = vmatpush.bf16.xpose.msra.mxu0 %v2083_v10  ;;  %2333 = vmatpush.bf16.xpose.msra.mxu2 %v2083_v10 }
 0x293   : > { %1182 = vmatpush.bf16.xpose.msra.mxu1 %v2091_v37  ;;  %2341 = vmatpush.bf16.xpose.msra.mxu3 %v2091_v37 }
 0x29a   : > { %1134 = vmatpush.bf16.xpose.msra.mxu0 %v2082_v44  ;;  %2334 = vmatpush.bf16.xpose.msra.mxu2 %v2082_v44 }
 0x29b   : > { %1183 = vmatpush.bf16.xpose.msra.mxu1 %v2090_v54  ;;  %2342 = vmatpush.bf16.xpose.msra.mxu3 %v2090_v54 }
 0x2a1   : > { %1135 = vmatmul.bf16.vlgmr.msra.gmra.mxu0 %v2074_v53  ;;  %1155 = vmatmul.bf16.vlgmr.msra.gmra.mxu2 %v2078_v9 }
 0x2a2   : > { %1184 = vmatmul.bf16.vlgmr.msra.gmra.mxu1 %v2074_v53  ;;  %1204 = vmatmul.bf16.vlgmr.msra.gmra.mxu3 %v2078_v9 }
 0x2b1   : > { %1140 = vmatmul.bf16.gmra.mxu0 %v2075_v1  ;;  %1160 = vmatmul.bf16.gmra.mxu2 %v2079_v18 }
 0x2b2   : > { %1189 = vmatmul.bf16.gmra.mxu1 %v2075_v1  ;;  %1209 = vmatmul.bf16.gmra.mxu3 %v2079_v18 }
 0x2c1   : > { %1145 = vmatmul.bf16.gmra.mxu0 %v2076_v49  ;;  %1165 = vmatmul.bf16.gmra.mxu2 %v2080_v14 }
 0x2c2   : > { %1194 = vmatmul.bf16.gmra.mxu1 %v2076_v49  ;;  %1214 = vmatmul.bf16.gmra.mxu3 %v2080_v14  ;;  %v2322_v14 = vld [vmem:[%s3693_s27 + $0x18] sm:$0xff]  }
 0x2c3   : > { %v2272_v27 = vunpack.c.l.bf16 %v2322_v14 }
 0x2c5   : > { %v1263_v17 = vmul.f32 %v2272_v27, %v1231_v21 }
 0x2d1   : > { %1150 = vmatmul.bf16.gmra.mxu0 %v2077_v34  ;;  %1170 = vmatmul.bf16.gmra.mxu2 %v2081_v31 }
 0x2d2   : > { %1199 = vmatmul.bf16.gmra.mxu1 %v2077_v34  ;;  %1219 = vmatmul.bf16.gmra.mxu3 %v2081_v31  ;;  %v2277_v31 = vunpack.c.h.bf16 %v2323_v5  ;;  %v2288_v5 = vunpack.c.l.bf16 %v3817_v38 }
 0x2d4   : > { %v1266_v8 = vmul.f32 %v2277_v31, %v1234_v28 }
 0x2e2   : > { %v3821_v28 = vpop.xlane.xlu0 %1277  ;;  %v3823_v27 = vpop.xlane.xlu2 %1275 }
 0x2ea   : > { %v3825_v21 = vpop.xlane.xlu0 %1283 }
 0x31e   : > { %v3708_v36 = vpop.f32.mrf.mxu0 }
 0x31f   : > { %v3710_v61 = vpop.f32.mrf.mxu1 }
 0x320   : > { %v1305_v62 = vmax.f32 %v3708_v36, %v3710_v61 }
 0x322   : > { %1306 = vmax.xlane.f32.xlu0 %v1305_v62  ;;  %v928_v62 = vld [vmem:[%s3686_s26 + $0x28] sm:$0xff]  }
 0x323   : > { %v1235_v2 = vunpack.c.l.bf16 %v928_v62 }
 0x324   : > { %v3714_v32 = vpop.f32.mrf.mxu2 }
 0x325   : > { %v3716_v33 = vpop.f32.mrf.mxu3 }
 0x326   : > { %v3718_v42 = vpop.f32.mrf.mxu0  ;;  %v1329_v6 = vmax.f32 %v3714_v32, %v3716_v33 }
 0x327   : > { %v3722_v7 = vpop.f32.mrf.mxu1 }
 0x328   : > { %1330 = vmax.xlane.f32.xlu2 %v1329_v6  ;;  %v1308_v25 = vmax.f32 %v3718_v42, %v3722_v7  ;;  %v2324_v6 = vld [vmem:[%s3693_s27 + $0x28] sm:$0xff]  }
 0x329   : > { %v2281_v19 = vunpack.c.h.bf16 %v2324_v6  ;;  %v2280_v4 = vunpack.c.l.bf16 %v2324_v6 }
 0x32a   : > { %1309 = vmax.xlane.f32.xlu0 %v1308_v25  ;;  %v924_v25 = vld [vmem:[%s3686_s26 + $0x1c] sm:$0xf] }
 0x32c   : > { %v3726_v50 = vpop.f32.mrf.mxu2 }
 0x32d   : > { %v3728_v23 = vpop.f32.mrf.mxu3 }
 0x32e   : > { %v3730_v48 = vpop.f32.mrf.mxu0  ;;  %v1332_v13 = vmax.f32 %v3726_v50, %v3728_v23 }
 0x32f   : > { %v3732_v63 = vpop.f32.mrf.mxu1 }
 0x330   : > { %v1311_v15 = vmax.f32 %v3730_v48, %v3732_v63 }
 0x332   : > { %1333 = vmax.xlane.f32.xlu0 %v1332_v13  ;;  %1312 = vmax.xlane.f32.xlu1 %v1311_v15  ;;  %v2284_v13 = vunpack.c.l.bf16 %v2325_v39  ;;  %v1237_v15 = vunpack.c.l.bf16 %v929_v12 }
 0x334   : > { %v3738_v56 = vpop.f32.mrf.mxu2 }
 0x335   : > { %v3740_v59 = vpop.f32.mrf.mxu3 }
 0x336   : > { %v3742_v11 = vpop.f32.mrf.mxu0  ;;  %v1335_v51 = vmax.f32 %v3738_v56, %v3740_v59 }
 0x337   : > { %v3746_v22 = vpop.f32.mrf.mxu1 }
 0x338   : > { %v1314_v20 = vmax.f32 %v3742_v11, %v3746_v22 }
 0x33a   : > { %1336 = vmax.xlane.f32.xlu1 %v1335_v51  ;;  %v1236_v51 = vunpack.c.h.bf16 %v928_v62 }
 0x33c   : > { %v3748_v41 = vpop.f32.mrf.mxu2 }
 0x33d   : > { %v3750_v40 = vpop.f32.mrf.mxu3 }
 0x33e   : > { %v3752_v29 = vpop.f32.mrf.mxu0  ;;  %v1338_v46 = vmax.f32 %v3748_v41, %v3750_v40 }
 0x33f   : > { %v3756_v43 = vpop.f32.mrf.mxu1 }
 0x340   : > { %1339 = vmax.xlane.f32.xlu2 %v1338_v46  ;;  %v1317_v53 = vmax.f32 %v3752_v29, %v3756_v43  ;;  %v2273_v46 = vunpack.c.h.bf16 %v2322_v14  ;;  %v2285_v14 = vunpack.c.h.bf16 %v2325_v39 }
 0x342   : > { %1315 = vmax.xlane.f32.xlu1 %v1314_v20  ;;  %v1232_v20 = vunpack.c.l.bf16 %v924_v25 }
 0x344   : > { %v3760_v10 = vpop.f32.mrf.mxu2 }
 0x345   : > { %v3762_v37 = vpop.f32.mrf.mxu3 }
 0x346   : > { %v3764_v44 = vpop.f32.mrf.mxu0  ;;  %v1341_v54 = vmax.f32 %v3760_v10, %v3762_v37 }
 0x347   : > { %v3770_v9 = vpop.f32.mrf.mxu1 }
 0x348   : > { %1342 = vmax.xlane.f32.xlu0 %v1341_v54  ;;  %1318 = vmax.xlane.f32.xlu2 %v1317_v53  ;;  %v1320_v58 = vmax.f32 %v3764_v44, %v3770_v9  ;;  %v1269_v54 = vmul.f32 %v2284_v13, %v1237_v15  ;;  %v1268_v53 = vmul.f32 %v2281_v19, %v1236_v51 }
 0x34c   : > { %v3772_v1 = vpop.f32.mrf.mxu2 }
 0x34d   : > { %v3774_v18 = vpop.f32.mrf.mxu3 }
 0x34e   : > { %v3776_v16 = vpop.f32.mrf.mxu0  ;;  %v1344_v45 = vmax.f32 %v3772_v1, %v3774_v18 }
 0x34f   : > { %v3782_v55 = vpop.f32.mrf.mxu1 }
 0x350   : > { %1321 = vmax.xlane.f32.xlu2 %v1320_v58  ;;  %1345 = vmax.xlane.f32.xlu1 %v1344_v45  ;;  %v1323_v26 = vmax.f32 %v3776_v16, %v3782_v55  ;;  %v1264_v58 = vmul.f32 %v2273_v46, %v1232_v20  ;;  %v3814_v45 = vld [vmem:[%s3686_s26 + $0x38] sm:$0xff]  }
 0x352   : > { %1324 = vmax.xlane.f32.xlu0 %v1323_v26  ;;  %v1239_v26 = vunpack.c.l.bf16 %v3814_v45 }
 0x354   : > { %v3788_v30 = vpop.f32.mrf.mxu2 }
 0x355   : > { %v3790_v47 = vpop.f32.mrf.mxu3 }
 0x356   : > { %v3792_v52 = vpop.f32.mrf.mxu0  ;;  %v1347_v57 = vmax.f32 %v3788_v30, %v3790_v47 }
 0x357   : > { %v3796_v49 = vpop.f32.mrf.mxu1 }
 0x358   : > { %v1326_v34 = vmax.f32 %v3792_v52, %v3796_v49  ;;  %1348 = vmax.xlane.f32.xlu2 %v1347_v57  ;;  %v1271_v57 = vmul.f32 %v2288_v5, %v1239_v26 }
 0x35a   : > { %1289 = vadd.xlane.f32.xlu0 %v1265_v35  ;;  %1327 = vmax.xlane.f32.xlu1 %v1326_v34  ;;  %v1267_v35 = vmul.f32 %v2280_v4, %v1235_v2  ;;  %v1238_v34 = vunpack.c.h.bf16 %v929_v12 }
 0x35c   : > { %v3802_v3 = vpop.f32.mrf.mxu2  ;;  %v1270_v31 = vmul.f32 %v2285_v14, %v1238_v34 }
 0x35d   : > { %v3804_v60 = vpop.f32.mrf.mxu3 }
 0x35e   : > { %v1350_v24 = vmax.f32 %v3802_v3, %v3804_v60 }
 0x360   : > { %1291 = vadd.xlane.f32.xlu2 %v1266_v8  ;;  %v3827_v8 = vpop.xlane.xlu2 %1281 }
 0x362   : > { %1351 = vmax.xlane.f32.xlu0 %v1350_v24  ;;  %1285 = vadd.xlane.f32.xlu1 %v1263_v17  ;;  %v3829_v24 = vpop.xlane.xlu1 %1273 }
 0x368   : > { %1297 = vadd.xlane.f32.xlu2 %v1269_v54 }
 0x36a   : > { %1295 = vadd.xlane.f32.xlu0 %v1268_v53  ;;  %1287 = vadd.xlane.f32.xlu1 %v1264_v58  ;;  %v3839_v13 = vpop.xlane.xlu1 %1279 }
 0x372   : > { %1301 = vadd.xlane.f32.xlu0 %v1271_v57  ;;  %1293 = vadd.xlane.f32.xlu1 %v1267_v35 }
 0x37a   : > { %1299 = vadd.xlane.f32.xlu1 %v1270_v31 }
 0x395   : > { %v3831_v17 = vpop.xlane.xlu0 %1306 }
 0x396   : > { %v1353_v62 = vsub.f32 %v3708_v36, %v3831_v17  ;;  %v1354_v12 = vsub.f32 %v3710_v61, %v3831_v17 }
 0x398   : > { %v1385_v39 = vmul.f32 1.442695, %v1353_v62  ;;  %v1387_v6 = vmul.f32 1.442695, %v1354_v12 }
 0x39a   : > { %2497 = vpow2.f32 %v1385_v39 }
 0x39b   : > { %v3837_v25 = vpop.xlane.xlu2 %1330  ;;  %2499 = vpow2.f32 %v1387_v6 }
 0x39c   : > { %v1369_v15 = vsub.f32 %v3714_v32, %v3837_v25  ;;  %v1370_v19 = vsub.f32 %v3716_v33, %v3837_v25 }
 0x39d   : > { %v3845_v51 = vpop.xlane.xlu0 %1309 }
 0x39e   : > { %v1355_v36 = vsub.f32 %v3718_v42, %v3845_v51  ;;  %v1356_v61 = vsub.f32 %v3722_v7, %v3845_v51  ;;  %v1417_v46 = vmul.f32 1.442695, %v1369_v15  ;;  %v1419_v20 = vmul.f32 1.442695, %v1370_v19 }
 0x3a0   : > { %2501 = vpow2.f32 %v1417_v46  ;;  %v1389_v54 = vmul.f32 1.442695, %v1355_v36  ;;  %v1391_v53 = vmul.f32 1.442695, %v1356_v61  ;;  %v2498_v58 = vpop.eup %2497 }
 0x3a1   : > { %2503 = vpow2.f32 %v1419_v20  ;;  %v2500_v32 = vpop.eup %2499 }
 0x3a2   : > { %2505 = vpow2.f32 %v1389_v54  ;;  %v1449_v5 = vadd.f32 %v2500_v32, %v2498_v58 }
 0x3a3   : > { %2507 = vpow2.f32 %v1391_v53 }
 0x3a4   : > { %1450 = vadd.xlane.f32.xlu2 %v1449_v5 }
 0x3a5   : > { %v3851_v33 = vpop.xlane.xlu0 %1333  ;;  %v3853_v26 = vpop.xlane.xlu1 %1312 }
 0x3a6   : > { %v2502_v42 = vpop.eup %2501  ;;  %v1371_v7 = vsub.f32 %v3726_v50, %v3851_v33  ;;  %v1372_v4 = vsub.f32 %v3728_v23, %v3851_v33  ;;  %v1357_v2 = vsub.f32 %v3730_v48, %v3853_v26  ;;  %v1358_v57 = vsub.f32 %v3732_v63, %v3853_v26 }
 0x3a7   : > { %v2504_v35 = vpop.eup %2503 }
 0x3a8   : > { %v2506_v14 = vpop.eup %2505  ;;  %v1421_v34 = vmul.f32 1.442695, %v1371_v7  ;;  %v1423_v31 = vmul.f32 1.442695, %v1372_v4  ;;  %v1393_v62 = vmul.f32 1.442695, %v1357_v2  ;;  %v1473_v15 = vadd.f32 %v2504_v35, %v2502_v42 }
 0x3a9   : > { %v2508_v12 = vpop.eup %2507  ;;  %v1395_v39 = vmul.f32 1.442695, %v1358_v57 }
 0x3aa   : > { %v1452_v6 = vadd.f32 %v2508_v12, %v2506_v14  ;;  %2509 = vpow2.f32 %v1421_v34 }
 0x3ab   : > { %2511 = vpow2.f32 %v1423_v31 }
 0x3ac   : > { %1453 = vadd.xlane.f32.xlu0 %v1452_v6  ;;  %2513 = vpow2.f32 %v1393_v62  ;;  %1474 = vadd.xlane.f32.xlu2 %v1473_v15 }
 0x3ad   : > { %v3863_v50 = vpop.xlane.xlu1 %1336  ;;  %2515 = vpow2.f32 %v1395_v39 }
 0x3b0   : > { %v2510_v23 = vpop.eup %2509 }
 0x3b1   : > { %v2512_v48 = vpop.eup %2511 }
 0x3b2   : > { %v2514_v63 = vpop.eup %2513  ;;  %v1476_v19 = vadd.f32 %v2512_v48, %v2510_v23 }
 0x3b3   : > { %v2516_v36 = vpop.eup %2515  ;;  %v3865_v61 = vpop.xlane.xlu2 %1339 }
 0x3b4   : > { %1477 = vadd.xlane.f32.xlu1 %v1476_v19  ;;  %v1455_v46 = vadd.f32 %v2516_v36, %v2514_v63  ;;  %v1376_v19 = vsub.f32 %v3750_v40, %v3865_v61 }
 0x3b5   : > { %v3867_v20 = vpop.xlane.xlu1 %1315 }
 0x3b6   : > { %1456 = vadd.xlane.f32.xlu2 %v1455_v46  ;;  %v1359_v54 = vsub.f32 %v3742_v11, %v3867_v20  ;;  %v1360_v53 = vsub.f32 %v3746_v22, %v3867_v20 }
 0x3b8   : > { %v1397_v58 = vmul.f32 1.442695, %v1359_v54  ;;  %v1399_v32 = vmul.f32 1.442695, %v1360_v53  ;;  %v1431_v54 = vmul.f32 1.442695, %v1376_v19 }
 0x3ba   : > { %2517 = vpow2.f32 %v1397_v58 }
 0x3bb   : > { %v3873_v5 = vpop.xlane.xlu2 %1318  ;;  %2519 = vpow2.f32 %v1399_v32  ;;  %v3879_v4 = vpop.xlane.xlu0 %1342 }
 0x3bc   : > { %v1361_v42 = vsub.f32 %v3752_v29, %v3873_v5  ;;  %v1362_v7 = vsub.f32 %v3756_v43, %v3873_v5  ;;  %v1377_v58 = vsub.f32 %v3760_v10, %v3879_v4  ;;  %v1374_v10 = vsub.f32 %v3740_v59, %v3863_v50 }
 0x3be   : > { %v1401_v2 = vmul.f32 1.442695, %v1361_v42  ;;  %v1403_v57 = vmul.f32 1.442695, %v1362_v7  ;;  %v1378_v7 = vsub.f32 %v3762_v37, %v3879_v4  ;;  %v2289_v37 = vunpack.c.h.bf16 %v3817_v38 }
 0x3c0   : > { %v2518_v11 = vpop.eup %2517  ;;  %2521 = vpow2.f32 %v1401_v2 }
 0x3c1   : > { %v2520_v35 = vpop.eup %2519  ;;  %2523 = vpow2.f32 %v1403_v57 }
 0x3c2   : > { %v1458_v22 = vadd.f32 %v2520_v35, %v2518_v11 }
 0x3c3   : > { %v3881_v14 = vpop.xlane.xlu2 %1321  ;;  %v3887_v31 = vpop.xlane.xlu1 %1345 }
 0x3c4   : > { %v1363_v34 = vsub.f32 %v3764_v44, %v3881_v14  ;;  %v1364_v29 = vsub.f32 %v3770_v9, %v3881_v14  ;;  %1459 = vadd.xlane.f32.xlu1 %v1458_v22  ;;  %v1375_v44 = vsub.f32 %v3748_v41, %v3865_v61 }
 0x3c5   : > { %v3889_v43 = vpop.xlane.xlu0 %1324 }
 0x3c6   : > { %v2522_v62 = vpop.eup %2521  ;;  %v1365_v12 = vsub.f32 %v3776_v16, %v3889_v43  ;;  %v1366_v39 = vsub.f32 %v3782_v55, %v3889_v43  ;;  %v1405_v6 = vmul.f32 1.442695, %v1363_v34  ;;  %v1407_v15 = vmul.f32 1.442695, %v1364_v29 }
 0x3c7   : > { %v2524_v23 = vpop.eup %2523  ;;  %v1429_v16 = vmul.f32 1.442695, %v1375_v44  ;;  %v1373_v55 = vsub.f32 %v3738_v56, %v3863_v50  ;;  %v1240_v29 = vunpack.c.h.bf16 %v3814_v45 }
 0x3c8   : > { %v1461_v48 = vadd.f32 %v2524_v23, %v2522_v62  ;;  %2525 = vpow2.f32 %v1405_v6  ;;  %v1409_v9 = vmul.f32 1.442695, %v1365_v12  ;;  %v1411_v63 = vmul.f32 1.442695, %v1366_v39 }
 0x3c9   : > { %2527 = vpow2.f32 %v1407_v15  ;;  %v1433_v62 = vmul.f32 1.442695, %v1377_v58  ;;  %v1272_v15 = vmul.f32 %v2289_v37, %v1240_v29  ;;  %v1427_v23 = vmul.f32 1.442695, %v1374_v10 }
 0x3ca   : > { %1462 = vadd.xlane.f32.xlu0 %v1461_v48  ;;  %2529 = vpow2.f32 %v1409_v9  ;;  %v1379_v48 = vsub.f32 %v3772_v1, %v3887_v31  ;;  %v1497_v37 = vsub.f32 %v3829_v24, %v3831_v17 }
 0x3cb   : > { %2531 = vpow2.f32 %v1411_v63  ;;  %v3899_v36 = vpop.xlane.xlu2 %1348  ;;  %v1380_v63 = vsub.f32 %v3774_v18, %v3887_v31 }
 0x3cc   : > { %2533 = vpow2.f32 %v1429_v16  ;;  %v1381_v2 = vsub.f32 %v3788_v30, %v3899_v36  ;;  %v1435_v30 = vmul.f32 1.442695, %v1378_v7  ;;  %v1437_v58 = vmul.f32 1.442695, %v1379_v48 }
 0x3cd   : > { %v3903_v46 = vpop.xlane.xlu0 %1289  ;;  %v3905_v41 = vpop.xlane.xlu1 %1327  ;;  %2535 = vpow2.f32 %v1431_v54  ;;  %v1439_v1 = vmul.f32 1.442695, %v1380_v63  ;;  %v1563_v63 = vsub.f32 0.0, %v3853_v26 }
 0x3ce   : > { %v2526_v53 = vpop.eup %2525  ;;  %v1367_v40 = vsub.f32 %v3792_v52, %v3905_v41  ;;  %v1368_v32 = vsub.f32 %v3796_v49, %v3905_v41  ;;  %v1382_v52 = vsub.f32 %v3790_v47, %v3899_v36  ;;  %v1425_v49 = vmul.f32 1.442695, %v1373_v55 }
 0x3cf   : > { %v2528_v42 = vpop.eup %2527  ;;  %v1441_v12 = vmul.f32 1.442695, %v1381_v2 }
 0x3d0   : > { %v2530_v56 = vpop.eup %2529  ;;  %v1464_v57 = vadd.f32 %v2528_v42, %v2526_v53  ;;  %v1413_v11 = vmul.f32 1.442695, %v1367_v40  ;;  %v1415_v35 = vmul.f32 1.442695, %v1368_v32  ;;  %v1443_v59 = vmul.f32 1.442695, %v1382_v52 }
 0x3d1   : > { %v2532_v22 = vpop.eup %2531 }
 0x3d2   : > { %1465 = vadd.xlane.f32.xlu2 %v1464_v57  ;;  %v1467_v34 = vadd.f32 %v2532_v22, %v2530_v56  ;;  %2537 = vpow2.f32 %v1413_v11  ;;  %v2534_v39 = vpop.eup %2533 }
 0x3d3   : > { %2539 = vpow2.f32 %v1415_v35  ;;  %v2536_v38 = vpop.eup %2535  ;;  %v3933_v52 = vpop.xlane.xlu2 %1291 }
 0x3d4   : > { %1468 = vadd.xlane.f32.xlu1 %v1467_v34  ;;  %2541 = vpow2.f32 %v1425_v49  ;;  %v1561_v49 = vsub.f32 0.0, %v3831_v17 }
 0x3d5   : > { %v3923_v6 = vpop.xlane.xlu0 %1351  ;;  %2543 = vpow2.f32 %v1433_v62  ;;  %v3936_v34 = vpop.xlane.xlu1 %1285 }
 0x3d6   : > { %v1383_v47 = vsub.f32 %v3802_v3, %v3923_v6  ;;  %v1384_v45 = vsub.f32 %v3804_v60, %v3923_v6  ;;  %2545 = vpow2.f32 %v1435_v30  ;;  %v1482_v3 = vadd.f32 %v2536_v38, %v2534_v39 }
 0x3d7   : > { %2547 = vpow2.f32 %v1441_v12  ;;  %v1577_v29 = vmul.f32 1.442695, %v1561_v49  ;;  %v1513_v30 = vmul.f32 1.442695, %v1497_v37  ;;  %v1562_v12 = vsub.f32 0.0, %v3845_v51 }
 0x3d8   : > { %v2538_v44 = vpop.eup %2537  ;;  %2549 = vpow2.f32 %v1443_v59  ;;  %v1445_v19 = vmul.f32 1.442695, %v1383_v47  ;;  %v1447_v54 = vmul.f32 1.442695, %v1384_v45  ;;  %v1498_v59 = vsub.f32 %v3823_v27, %v3845_v51 }
 0x3d9   : > { %v2540_v9 = vpop.eup %2539  ;;  %2551 = vpow2.f32 %v1427_v23  ;;  %v1499_v27 = vsub.f32 %v3821_v28, %v3853_v26 }
 0x3da   : > { %1303 = vadd.xlane.f32.xlu2 %v1272_v15  ;;  %v2542_v16 = vpop.eup %2541  ;;  %v1470_v55 = vadd.f32 %v2540_v9, %v2538_v44  ;;  %2553 = vpow2.f32 %v1445_v19  ;;  %v1579_v15 = vmul.f32 1.442695, %v1562_v12  ;;  %v1515_v23 = vmul.f32 1.442695, %v1498_v59 }
 0x3db   : > { %v2544_v53 = vpop.eup %2543  ;;  %2555 = vpow2.f32 %v1447_v54  ;;  %v3943_v39 = vpop.xlane.xlu2 %1297 }
 0x3dc   : > { %1483 = vadd.xlane.f32.xlu1 %v1482_v3  ;;  %v2546_v60 = vpop.eup %2545  ;;  %1471 = vadd.xlane.f32.xlu0 %v1470_v55  ;;  %2557 = vpow2.f32 %v1437_v58  ;;  %v1705_v55 = vlaneseq }
 0x3dd   : > { %v2548_v40 = vpop.eup %2547  ;;  %v1485_v7 = vadd.f32 %v2546_v60, %v2544_v53  ;;  %2559 = vpow2.f32 %v1439_v1  ;;  %v3940_v62 = vpop.xlane.xlu0 %1295  ;;  %v1581_v53 = vmul.f32 1.442695, %v1563_v63 }
 0x3de   : > { %v2550_v32 = vpop.eup %2549  ;;  %2561 = vpow2.f32 %v1577_v29  ;;  %v3947_v47 = vpop.xlane.xlu1 %1287 }
 0x3df   : > { %v2552_v42 = vpop.eup %2551  ;;  %v1491_v18 = vadd.f32 %v2550_v32, %v2548_v40  ;;  %2563 = vpow2.f32 %v1513_v30  ;;  %v1517_v40 = vmul.f32 1.442695, %v1499_v27  ;;  %v1570_v30 = vsub.f32 0.0, %v3851_v33 }
 0x3e0   : > { %v1479_v56 = vadd.f32 %v2552_v42, %v2542_v16  ;;  %v2554_v2 = vpop.eup %2553  ;;  %2565 = vpow2.f32 %v1579_v15 }
 0x3e1   : > { %v2556_v57 = vpop.eup %2555  ;;  %2567 = vpow2.f32 %v1515_v23  ;;  %v1500_v23 = vsub.f32 %v3839_v13, %v3867_v20  ;;  %v1595_v27 = vmul.f32 1.442695, %v1570_v30 }
 0x3e2   : > { %1486 = vadd.xlane.f32.xlu2 %v1485_v7  ;;  %v2558_v11 = vpop.eup %2557  ;;  %v1494_v22 = vadd.f32 %v2556_v57, %v2554_v2  ;;  %v3958_v7 = vshrl.u32 %v1705_v55, 7 }
 0x3e3   : > { %v2560_v35 = vpop.eup %2559 }
 0x3e4   : > { %1492 = vadd.xlane.f32.xlu1 %v1491_v18  ;;  %1480 = vadd.xlane.f32.xlu0 %v1479_v56  ;;  %v1488_v10 = vadd.f32 %v2560_v35, %v2558_v11  ;;  %v2562_v38 = vpop.eup %2561  ;;  %v3962_v18 = vstv %s1955_s23  ;;  %v1707_v56 = vadd.s32 8, %v3958_v7  ;;  %v1569_v35 = vsub.f32 0.0, %v3837_v25  ;;  %s2737_s23 = scalar_lea.hbm %s4163_s2, 16 }
 0x3e5   : > { %v3949_v45 = vpop.xlane.xlu0 %1301  ;;  %v2564_v24 = vpop.eup %2563  ;;  %v1609_v48 = vmul.f32 248.0, %v2562_v38  ;;  %v1723_v11 = vadd.s32 %v3962_v18, %v3958_v7  ;;  %p2739_p6 = scmp.lt.s32.totalorder %s2737_s23, %s2733_s16 }
 0x3e6   : > { %v2566_v19 = vpop.eup %2565  ;;  %v3954_v16 = vpop.xlane.xlu1 %1293  ;;  %v1724_v29 = vadd.s32 %v3962_v18, %v1707_v56  ;;  %v1593_v59 = vmul.f32 1.442695, %v1569_v35  ;;  %v1506_v56 = vsub.f32 %v3933_v52, %v3851_v33 }
 0x3e7   : > { %v2568_v60 = vpop.eup %2567  ;;  %v1610_v32 = vmul.f32 248.0, %v2566_v19  ;;  %vm1739_vm0 = vcmp.lt.s32.totalorder %v1723_v11, 8  ;;  %v1501_v19 = vsub.f32 %v3827_v8, %v3873_v5  ;;  %p2740_p7 = por %p2739_p6, %p2738_p5 }
 0x3e8   : > { %vm1740_vm12 = vcmp.lt.s32.totalorder %v1724_v29, 8  ;;  %v2054_v63 = vsel %vm1739_vm0, 1.0, %v2809_v0  ;;  %v1503_v29 = vsub.f32 %v3936_v34, %v3889_v43  ;;  %v1509_v34 = vsub.f32 %v3943_v39, %v3879_v4 }
 0x3e9   : > { %v2055_v13 = vsel %vm1740_vm12, 1.0, %v2809_v0  ;;  %v1521_v8 = vmul.f32 1.442695, %v1501_v19  ;;  %v1504_v39 = vsub.f32 %v3947_v47, %v3905_v41  ;;  %p2741_p9 = pnand %p2740_p7, %p2736_p3 }
 0x3ea   : > { %1495 = vadd.xlane.f32.xlu2 %v1494_v22  ;;  %v1564_v22 = vsub.f32 0.0, %v3867_v20 }
 0x3ec   : > { %1489 = vadd.xlane.f32.xlu0 %v1488_v10 }
 0x3ee   : > { %v3969_v49 = vpop.xlane.xlu1 %1299 }
 0x417   : > { %v1451_v44 = vpop.xlane.xlu2 %1450 }
 0x418   : > { %v1545_v9 = vsub.f32 %v1451_v44, %v2564_v24  ;;  %v1583_v44 = vmul.f32 1.442695, %v1564_v22 }
 0x41a   : > { %v1625_v3 = vsub.f32 %v1545_v9, %v1609_v48 }
 0x41c   : > { %v1641_v54 = vmax.f32 %v1625_v3, 1e-30 }
 0x41e   : > { %2569 = vlog2.f32 %v1641_v54  ;;  %v1519_v54 = vmul.f32 1.442695, %v1500_v23 }
 0x41f   : > { %v1454_v58 = vpop.xlane.xlu0 %1453  ;;  %v3956_v1 = vpop.xlane.xlu2 %1474  ;;  %2571 = vpow2.f32 %v1581_v53  ;;  %v1565_v53 = vsub.f32 0.0, %v3873_v5 }
 0x420   : > { %v1546_v42 = vsub.f32 %v1454_v58, %v2568_v60  ;;  %2573 = vpow2.f32 %v1517_v40  ;;  %v1505_v58 = vsub.f32 %v3903_v46, %v3837_v25  ;;  %v1567_v46 = vsub.f32 0.0, %v3889_v43 }
 0x422   : > { %v1626_v28 = vsub.f32 %v1546_v42, %v1610_v32  ;;  %v1529_v35 = vmul.f32 1.442695, %v1505_v58  ;;  %v1571_v58 = vsub.f32 0.0, %v3863_v50 }
 0x424   : > { %v1642_v2 = vmax.f32 %v1626_v28, 1e-30  ;;  %v2570_v57 = vpop.eup %2569  ;;  %v1566_v28 = vsub.f32 0.0, %v3881_v14 }
 0x425   : > { %v2572_v10 = vpop.eup %2571  ;;  %v1658_v37 = vmul.f32 0.6931472, %v2570_v57  ;;  %v1585_v57 = vmul.f32 1.442695, %v1565_v53 }
 0x426   : > { %2575 = vlog2.f32 %v1642_v2  ;;  %v2574_v12 = vpop.eup %2573  ;;  %v1611_v38 = vmul.f32 248.0, %v2572_v10  ;;  %v1568_v10 = vsub.f32 0.0, %v3905_v41  ;;  %v1587_v30 = vmul.f32 1.442695, %v1566_v28 }
 0x427   : > { %v1689_v48 = vadd.f32 %v1658_v37, %v3831_v17  ;;  %2577 = vpow2.f32 %v1593_v59  ;;  %v1502_v17 = vsub.f32 %v3825_v21, %v3881_v14  ;;  %v3986_v42 = vpop.xlane.xlu1 %1477  ;;  %v1708_v59 = vadd.s32 16, %v3958_v7 }
 0x428   : > { %2579 = vpow2.f32 %v1583_v44  ;;  %v1709_v28 = vadd.s32 24, %v3958_v7 }
 0x429   : > { %v1457_v15 = vpop.xlane.xlu2 %1456  ;;  %v1787_v40 = vmul.f32 %v2054_v63, %v1689_v48  ;;  %2581 = vpow2.f32 %v1595_v27  ;;  %v1523_v21 = vmul.f32 1.442695, %v1502_v17  ;;  %v1591_v63 = vmul.f32 1.442695, %v1568_v10 }
 0x42a   : > { %v1547_v24 = vsub.f32 %v1457_v15, %v2574_v12  ;;  %2583 = vpow2.f32 %v1519_v54  ;;  %v1531_v12 = vmul.f32 1.442695, %v1506_v56  ;;  %v1572_v15 = vsub.f32 0.0, %v3865_v61 }
 0x42b   : > { %v1525_v27 = vmul.f32 1.442695, %v1503_v29  ;;  %v1508_v54 = vsub.f32 %v3940_v62, %v3865_v61  ;;  %v1725_v53 = vadd.s32 %v3962_v18, %v1708_v59 }
 0x42c   : > { %v2576_v9 = vpop.eup %2575  ;;  %v1627_v3 = vsub.f32 %v1547_v24, %v1611_v38  ;;  %v1589_v24 = vmul.f32 1.442695, %v1567_v46 }
 0x42d   : > { %v1660_v55 = vmul.f32 0.6931472, %v2576_v9  ;;  %v2578_v11 = vpop.eup %2577  ;;  %v1535_v46 = vmul.f32 1.442695, %v1508_v54  ;;  %vm1741_vm15 = vcmp.lt.s32.totalorder %v1725_v53, 8 }
 0x42e   : > { %v1643_v60 = vmax.f32 %v1627_v3, 1e-30  ;;  %v2580_v37 = vpop.eup %2579  ;;  %v4001_v38 = vmul.f32 248.0, %v2578_v11  ;;  %v1574_v11 = vsub.f32 0.0, %v3887_v31 }
 0x42f   : > { %v1690_v32 = vadd.f32 %v1660_v55, %v3845_v51  ;;  %v1804_v51 = vsel %vm1803_vm14, %v1787_v40, 0.0  ;;  %v2582_v23 = vpop.eup %2581  ;;  %v1612_v48 = vmul.f32 248.0, %v2580_v37  ;;  %v1573_v55 = vsub.f32 0.0, %v3879_v4 }
 0x430   : > { %2585 = vlog2.f32 %v1643_v60  ;;  %v2584_v44 = vpop.eup %2583  ;;  %v4015_v62 = vmul.f32 248.0, %v2582_v23  ;;  %v2056_v23 = vsel %vm1741_vm15, 1.0, %v2809_v0 }
 0x431   : > { %v1788_v2 = vmul.f32 %v2055_v13, %v1690_v32  ;;  %2587 = vpow2.f32 %v1521_v8  ;;  %v1599_v13 = vmul.f32 1.442695, %v1572_v15  ;;  %v1537_v32 = vmul.f32 1.442695, %v1509_v34 }
 0x432   : > { %2589 = vpow2.f32 %v1585_v57  ;;  %v1601_v57 = vmul.f32 1.442695, %v1573_v55  ;;  %v1511_v15 = vsub.f32 %v3949_v45, %v3899_v36  ;;  %v1575_v55 = vsub.f32 0.0, %v3899_v36 }
 0x433   : > { %v1805_v22 = vsel %vm1803_vm14, %v1788_v2, 0.0  ;;  %2591 = vpow2.f32 %v1523_v21 }
 0x434   : > { %v3997_v52 = vadd.f32 %v1805_v22, %v1804_v51  ;;  %2593 = vpow2.f32 %v1529_v35  ;;  %v1527_v51 = vmul.f32 1.442695, %v1504_v39  ;;  %v1541_v53 = vmul.f32 1.442695, %v1511_v15 }
 0x435   : > { %2595 = vpow2.f32 %v1587_v30  ;;  %v1726_v30 = vadd.s32 %v3962_v18, %v1709_v28 }
 0x436   : > { %v2586_v3 = vpop.eup %2585  ;;  %2597 = vpow2.f32 %v1531_v12  ;;  %v1597_v12 = vmul.f32 1.442695, %v1571_v58 }
 0x437   : > { %v1460_v9 = vpop.xlane.xlu1 %1459  ;;  %v2588_v60 = vpop.eup %2587  ;;  %2599 = vpow2.f32 %v1589_v24  ;;  %v1662_v8 = vmul.f32 0.6931472, %v2586_v3  ;;  %vm1742_vm1 = vcmp.lt.s32.totalorder %v1726_v30, 8 }
 0x438   : > { %v1548_v19 = vsub.f32 %v1460_v9, %v2584_v44  ;;  %v2590_v40 = vpop.eup %2589  ;;  %2601 = vpow2.f32 %v1591_v63  ;;  %v1603_v9 = vmul.f32 1.442695, %v1574_v11  ;;  %v1507_v63 = vsub.f32 %v3954_v16, %v3863_v50 }
 0x439   : > { %v4013_v56 = vpop.eup %2591  ;;  %2603 = vpow2.f32 %v1525_v27  ;;  %v1613_v22 = vmul.f32 248.0, %v2590_v40  ;;  %v1691_v29 = vadd.f32 %v1662_v8, %v3853_v26  ;;  %v2057_v8 = vsel %vm1742_vm1, 1.0, %v2809_v0 }
 0x43a   : > { %v1628_v17 = vsub.f32 %v1548_v19, %v1612_v48  ;;  %v2594_v21 = vpop.eup %2593  ;;  %2605 = vpow2.f32 %v1599_v13  ;;  %v1710_v48 = vadd.s32 32, %v3958_v7  ;;  %v1605_v11 = vmul.f32 1.442695, %v1575_v55 }
 0x43b   : > { %v2596_v35 = vpop.eup %2595  ;;  %v1553_v34 = vsub.f32 %v3956_v1, %v2594_v21  ;;  %v1789_v19 = vmul.f32 %v2056_v23, %v1691_v29 }
 0x43c   : > { %v1644_v2 = vmax.f32 %v1628_v17, 1e-30  ;;  %v4018_v37 = vpop.eup %2597  ;;  %v1614_v27 = vmul.f32 248.0, %v2596_v35  ;;  %v1727_v16 = vadd.s32 %v3962_v18, %v1710_v48 }
 0x43d   : > { %v1463_v47 = vpop.xlane.xlu0 %1462  ;;  %v2600_v59 = vpop.eup %2599  ;;  %v1633_v39 = vsub.f32 %v1553_v34, %v4001_v38  ;;  %v1807_v21 = vsel %vm1803_vm14, %v1789_v19, 0.0  ;;  %v1554_v38 = vsub.f32 %v3986_v42, %v4018_v37 }
 0x43e   : > { %2607 = vlog2.f32 %v1644_v2  ;;  %v1549_v10 = vsub.f32 %v1463_v47, %v2588_v60  ;;  %v2602_v44 = vpop.eup %2601  ;;  %v1615_v1 = vmul.f32 248.0, %v2600_v59  ;;  %v1576_v2 = vsub.f32 0.0, %v3923_v6 }
 0x43f   : > { %2609 = vpow2.f32 %v1537_v32  ;;  %v2604_v26 = vpop.eup %2603  ;;  %v4031_v13 = vmul.f32 248.0, %v2602_v44  ;;  %v1533_v32 = vmul.f32 1.442695, %v1507_v63  ;;  %v1649_v29 = vmax.f32 %v1633_v39, 1e-30 }
 0x440   : > { %v1629_v24 = vsub.f32 %v1549_v10, %v1613_v22  ;;  %2611 = vpow2.f32 %v1601_v57  ;;  %v2606_v45 = vpop.eup %2605  ;;  %vm1743_vm13 = vcmp.lt.s32.totalorder %v1727_v16, 8  ;;  %v1808_v42 = vadd.f32 %v1807_v21, %v3997_v52 }
 0x441   : > { %2613 = vpow2.f32 %v1535_v46  ;;  %v1607_v15 = vmul.f32 1.442695, %v1576_v2  ;;  %v2058_v48 = vsel %vm1743_vm13, 1.0, %v2809_v0 }
 0x442   : > { %2615 = vpow2.f32 %v1527_v51  ;;  %v1645_v3 = vmax.f32 %v1629_v24, 1e-30  ;;  %v1510_v51 = vsub.f32 %v3969_v49, %v3887_v31  ;;  %v1634_v24 = vsub.f32 %v1554_v38, %v4015_v62 }
 0x443   : > { %2617 = vpow2.f32 %v1597_v12  ;;  %v1711_v12 = vadd.s32 40, %v3958_v7  ;;  %v1712_v62 = vadd.s32 48, %v3958_v7 }
 0x444   : > { %v2608_v54 = vpop.eup %2607  ;;  %2619 = vlog2.f32 %v1645_v3  ;;  %v1620_v3 = vmul.f32 248.0, %v2606_v45 }
 0x445   : > { %v4033_v60 = vpop.eup %2609  ;;  %v1664_v17 = vmul.f32 0.6931472, %v2608_v54  ;;  %v1466_v58 = vpop.xlane.xlu2 %1465  ;;  %2621 = vpow2.f32 %v1603_v9  ;;  %v1728_v52 = vadd.s32 %v3962_v18, %v1711_v12  ;;  %v1539_v54 = vmul.f32 1.442695, %v1510_v51 }
 0x446   : > { %v2612_v40 = vpop.eup %2611  ;;  %v1550_v28 = vsub.f32 %v1466_v58, %v4013_v56  ;;  %2623 = vpow2.f32 %v1541_v53 }
 0x447   : > { %v2614_v57 = vpop.eup %2613  ;;  %v1692_v46 = vadd.f32 %v1664_v17, %v3867_v20  ;;  %v1469_v47 = vpop.xlane.xlu1 %1468  ;;  %2625 = vpow2.f32 %v1605_v11  ;;  %v1621_v55 = vmul.f32 248.0, %v2612_v40  ;;  %v1650_v17 = vmax.f32 %v1634_v24, 1e-30 }
 0x448   : > { %v2616_v35 = vpop.eup %2615  ;;  %v1630_v22 = vsub.f32 %v1550_v28, %v1614_v27  ;;  %v1551_v10 = vsub.f32 %v1469_v47, %v2604_v26  ;;  %vm1744_vm2 = vcmp.lt.s32.totalorder %v1728_v52, 8 }
 0x449   : > { %v2618_v56 = vpop.eup %2617  ;;  %v1790_v30 = vmul.f32 %v2057_v8, %v1692_v46  ;;  %v1714_v8 = vadd.s32 64, %v3958_v7 }
 0x44a   : > { %v2620_v59 = vpop.eup %2619  ;;  %v1646_v37 = vmax.f32 %v1630_v22, 1e-30  ;;  %v1631_v20 = vsub.f32 %v1551_v10, %v1615_v1  ;;  %v1619_v39 = vmul.f32 248.0, %v2618_v56  ;;  %v2059_v10 = vsel %vm1744_vm2, 1.0, %v2809_v0 }
 0x44b   : > { %v2622_v23 = vpop.eup %2621  ;;  %v1809_v44 = vsel %vm1803_vm14, %v1790_v30, 0.0  ;;  %v1666_v49 = vmul.f32 0.6931472, %v2620_v59  ;;  %v1713_v56 = vadd.s32 56, %v3958_v7 }
 0x44c   : > { %v1810_v34 = vadd.f32 %v1809_v44, %v1808_v42  ;;  %2627 = vlog2.f32 %v1646_v37  ;;  %v1647_v9 = vmax.f32 %v1631_v20, 1e-30  ;;  %v4054_v27 = vpop.eup %2623  ;;  %v4058_v58 = vmul.f32 248.0, %v2622_v23 }
 0x44d   : > { %2629 = vlog2.f32 %v1649_v29  ;;  %v1693_v26 = vadd.f32 %v1666_v49, %v3873_v5  ;;  %v1304_v63 = vpop.xlane.xlu2 %1303  ;;  %v2626_v45 = vpop.eup %2625 }
 0x44e   : > { %2631 = vlog2.f32 %v1647_v9  ;;  %v1512_v19 = vsub.f32 %v1304_v63, %v3923_v6 }
 0x44f   : > { %2633 = vpow2.f32 %v1533_v32  ;;  %v1791_v53 = vmul.f32 %v2058_v48, %v1693_v26  ;;  %v1484_v1 = vpop.xlane.xlu1 %1483  ;;  %v1472_v16 = vpop.xlane.xlu0 %1471  ;;  %v1729_v32 = vadd.s32 %v3962_v18, %v1712_v62 }
 0x450   : > { %v1556_v5 = vsub.f32 %v1484_v1, %v2614_v57  ;;  %2635 = vpow2.f32 %v1607_v15  ;;  %v1552_v2 = vsub.f32 %v1472_v16, %v2616_v35  ;;  %v1543_v38 = vmul.f32 1.442695, %v1512_v19 }
 0x451   : > { %v1811_v28 = vsel %vm1803_vm14, %v1791_v53, 0.0  ;;  %2637 = vpow2.f32 %v1539_v54  ;;  %v1715_v57 = vadd.s32 72, %v3958_v7  ;;  %v1623_v35 = vmul.f32 248.0, %v2626_v45 }
 0x452   : > { %v2628_v21 = vpop.eup %2627  ;;  %v1812_v40 = vadd.f32 %v1811_v28, %v1810_v34  ;;  %v1636_v46 = vsub.f32 %v1556_v5, %v1620_v3  ;;  %v1632_v51 = vsub.f32 %v1552_v2, %v4031_v13  ;;  %2639 = vlog2.f32 %v1650_v17 }
 0x453   : > { %v2630_v47 = vpop.eup %2629  ;;  %v1668_v11 = vmul.f32 0.6931472, %v2628_v21  ;;  %v1731_v15 = vadd.s32 %v3962_v18, %v1714_v8  ;;  %vm1745_vm3 = vcmp.lt.s32.totalorder %v1729_v32, 8  ;;  %2641 = vpow2.f32 %v1543_v38 }
 0x454   : > { %v2632_v22 = vpop.eup %2631  ;;  %v1648_v59 = vmax.f32 %v1632_v51, 1e-30  ;;  %v1652_v42 = vmax.f32 %v1636_v46, 1e-30  ;;  %v1674_v23 = vmul.f32 0.6931472, %v2630_v47  ;;  %v1732_v24 = vadd.s32 %v3962_v18, %v1715_v57 }
 0x455   : > { %v2634_v29 = vpop.eup %2633  ;;  %v1694_v30 = vadd.f32 %v1668_v11, %v3881_v14  ;;  %v1670_v12 = vmul.f32 0.6931472, %v2632_v22  ;;  %v1487_v37 = vpop.xlane.xlu2 %1486  ;;  %v1730_v14 = vadd.s32 %v3962_v18, %v1713_v56  ;;  %v2060_v3 = vsel %vm1745_vm3, 1.0, %v2809_v0 }
 0x456   : > { %v2636_v20 = vpop.eup %2635  ;;  %v1557_v13 = vsub.f32 %v1487_v37, %v4033_v60  ;;  %2643 = vlog2.f32 %v1648_v59  ;;  %vm1747_vm4 = vcmp.lt.s32.totalorder %v1731_v15, 8  ;;  %vm1748_vm5 = vcmp.lt.s32.totalorder %v1732_v24, 8 }
 0x457   : > { %v1792_v44 = vmul.f32 %v2059_v10, %v1694_v30  ;;  %v1493_v49 = vpop.xlane.xlu1 %1492  ;;  %v1695_v34 = vadd.f32 %v1670_v12, %v3889_v43  ;;  %v1481_v9 = vpop.xlane.xlu0 %1480  ;;  %2645 = vlog2.f32 %v1652_v42  ;;  %v1624_v1 = vmul.f32 248.0, %v2636_v20 }
 0x458   : > { %v1637_v48 = vsub.f32 %v1557_v13, %v1621_v55  ;;  %v1559_v26 = vsub.f32 %v1493_v49, %v4054_v27  ;;  %v2638_v52 = vpop.eup %2637  ;;  %v1555_v60 = vsub.f32 %v1481_v9, %v2634_v29  ;;  %v1717_v43 = vadd.s32 88, %v3958_v7 }
 0x459   : > { %v1813_v63 = vsel %vm1803_vm14, %v1792_v44, 0.0  ;;  %v2640_v62 = vpop.eup %2639  ;;  %v1716_v55 = vadd.s32 80, %v3958_v7  ;;  %v1697_v27 = vadd.f32 %v1674_v23, %v3837_v25  ;;  %v1793_v5 = vmul.f32 %v2060_v3, %v1695_v34 }
 0x45a   : > { %v1814_v19 = vadd.f32 %v1813_v63, %v1812_v40  ;;  %v1653_v54 = vmax.f32 %v1637_v48, 1e-30  ;;  %v1639_v53 = vsub.f32 %v1559_v26, %v1623_v35  ;;  %v1635_v17 = vsub.f32 %v1555_v60, %v1619_v39  ;;  %v2642_v16 = vpop.eup %2641 }
 0x45b   : > { %vm1746_vm6 = vcmp.lt.s32.totalorder %v1730_v14, 8  ;;  %v1676_v8 = vmul.f32 0.6931472, %v2640_v62  ;;  %v2062_v40 = vsel %vm1747_vm4, 1.0, %v2809_v0  ;;  %v1718_v38 = vadd.s32 96, %v3958_v7 }
 0x45c   : > { %v2644_v45 = vpop.eup %2643  ;;  %2647 = vlog2.f32 %v1653_v54  ;;  %v1651_v28 = vmax.f32 %v1635_v17, 1e-30  ;;  %v1655_v2 = vmax.f32 %v1639_v53, 1e-30  ;;  %v2061_v39 = vsel %vm1746_vm6, 1.0, %v2809_v0 }
 0x45d   : > { %v1496_v21 = vpop.xlane.xlu2 %1495  ;;  %v1672_v32 = vmul.f32 0.6931472, %v2644_v45  ;;  %v2646_v47 = vpop.eup %2645  ;;  %v1734_v25 = vadd.s32 %v3962_v18, %v1717_v43  ;;  %v1733_v57 = vadd.s32 %v3962_v18, %v1716_v55  ;;  %v2063_v11 = vsel %vm1748_vm5, 1.0, %v2809_v0 }
 0x45e   : > { %v1560_v46 = vsub.f32 %v1496_v21, %v2642_v16  ;;  %2649 = vlog2.f32 %v1651_v28  ;;  %v1815_v51 = vsel %vm1803_vm14, %v1793_v5, 0.0  ;;  %v1795_v35 = vmul.f32 %v2062_v40, %v1697_v27 }
 0x45f   : > { %v1696_v22 = vadd.f32 %v1672_v32, %v3905_v41  ;;  %v1490_v56 = vpop.xlane.xlu0 %1489  ;;  %v1698_v29 = vadd.f32 %v1676_v8, %v3851_v33  ;;  %2651 = vlog2.f32 %v1655_v2  ;;  %v1680_v59 = vmul.f32 0.6931472, %v2646_v47 }
 0x460   : > { %v1640_v10 = vsub.f32 %v1560_v46, %v1624_v1  ;;  %v1558_v30 = vsub.f32 %v1490_v56, %v2638_v52  ;;  %v1735_v42 = vadd.s32 %v3962_v18, %v1718_v38  ;;  %v1816_v15 = vadd.f32 %v1815_v51, %v1814_v19 }
 0x461   : > { %v1794_v12 = vmul.f32 %v2061_v39, %v1696_v22  ;;  %vm1750_vm7 = vcmp.lt.s32.totalorder %v1734_v25, 8  ;;  %vm1749_vm8 = vcmp.lt.s32.totalorder %v1733_v57, 8  ;;  %v1719_v23 = vadd.s32 104, %v3958_v7 }
 0x462   : > { %v1656_v37 = vmax.f32 %v1640_v10, 1e-30  ;;  %v2648_v20 = vpop.eup %2647  ;;  %v1638_v13 = vsub.f32 %v1558_v30, %v4058_v58  ;;  %v1720_v33 = vadd.s32 112, %v3958_v7  ;;  %v1796_v44 = vmul.f32 %v2063_v11, %v1698_v29 }
 0x463   : > { %v1817_v41 = vsel %vm1803_vm14, %v1794_v12, 0.0  ;;  %v1721_v14 = vadd.s32 120, %v3958_v7  ;;  %v1819_v48 = vsel %vm1803_vm14, %v1795_v35, 0.0  ;;  %v1700_v9 = vadd.f32 %v1680_v59, %v3865_v61 }
 0x464   : > { %2653 = vlog2.f32 %v1656_v37  ;;  %v2650_v24 = vpop.eup %2649  ;;  %v1818_v49 = vadd.f32 %v1817_v41, %v1816_v15  ;;  %v1654_v34 = vmax.f32 %v1638_v13, 1e-30  ;;  %v1682_v26 = vmul.f32 0.6931472, %v2648_v20  ;;  %v1844_v37 = vld [vmem:[%s2912_s18] sm:$0xff] }
 0x465   : > { %v1678_v52 = vmul.f32 0.6931472, %v2650_v24  ;;  %v2652_v58 = vpop.eup %2651  ;;  %v2065_v3 = vsel %vm1750_vm7, 1.0, %v2809_v0  ;;  %v2064_v60 = vsel %vm1749_vm8, 1.0, %v2809_v0  ;;  %vm1751_vm9 = vcmp.lt.s32.totalorder %v1735_v42, 8 }
 0x466   : > { %v1820_v63 = vadd.f32 %v1819_v48, %v1818_v49  ;;  %2655 = vlog2.f32 %v1654_v34  ;;  %v1736_v7 = vadd.s32 %v3962_v18, %v1719_v23  ;;  %v1737_v19 = vadd.s32 %v3962_v18, %v1720_v33 }
 0x467   : > { %v1699_v62 = vadd.f32 %v1678_v52, %v3863_v50  ;;  %v1821_v61 = vsel %vm1803_vm14, %v1796_v44, 0.0  ;;  %v1738_v54 = vadd.s32 %v3962_v18, %v1721_v14  ;;  %v1798_v1 = vmul.f32 %v2065_v3, %v1700_v9 }
 0x468   : > { %v1701_v43 = vadd.f32 %v1682_v26, %v3879_v4  ;;  %v1686_v17 = vmul.f32 0.6931472, %v2652_v58  ;;  %v2066_v16 = vsel %vm1751_vm9, 1.0, %v2809_v0  ;;  %v1822_v27 = vadd.f32 %v1821_v61, %v1820_v63 }
 0x469   : > { %v1797_v55 = vmul.f32 %v2064_v60, %v1699_v62  ;;  %vm1752_vm10 = vcmp.lt.s32.totalorder %v1736_v7, 8  ;;  %vm1753_vm11 = vcmp.lt.s32.totalorder %v1737_v19, 8  ;;  %vm1754_vm0 = vcmp.lt.s32.totalorder %v1738_v54, 8 }
 0x46a   : > { %v2654_v53 = vpop.eup %2653  ;;  %v1799_v28 = vmul.f32 %v2066_v16, %v1701_v43  ;;  %v1703_v18 = vadd.f32 %v1686_v17, %v3899_v36  ;;  %v1825_v21 = vsel %vm1803_vm14, %v1798_v1, 0.0  ;;  %v2067_v4 = vsel %vm1752_vm10, 1.0, %v2809_v0 }
 0x46b   : > { %v1823_v5 = vsel %vm1803_vm14, %v1797_v55, 0.0  ;;  %v1688_v50 = vmul.f32 0.6931472, %v2654_v53  ;;  %v2068_v40 = vsel %vm1753_vm11, 1.0, %v2809_v0  ;;  %v2069_v47 = vsel %vm1754_vm0, 1.0, %v2809_v0 }
 0x46c   : > { %v2656_v45 = vpop.eup %2655  ;;  %v1824_v8 = vadd.f32 %v1823_v5, %v1822_v27  ;;  %v1801_v25 = vmul.f32 %v2068_v40, %v1703_v18  ;;  %v1827_v57 = vsel %vm1803_vm14, %v1799_v28, 0.0 }
 0x46d   : > { %v1684_v2 = vmul.f32 0.6931472, %v2656_v45  ;;  %v1704_v46 = vadd.f32 %v1688_v50, %v3923_v6 }
 0x46e   : > { %v1826_v32 = vadd.f32 %v1825_v21, %v1824_v8  ;;  %v1831_v10 = vsel %vm1803_vm14, %v1801_v25, 0.0 }
 0x46f   : > { %v1702_v38 = vadd.f32 %v1684_v2, %v3887_v31  ;;  %v1802_v36 = vmul.f32 %v2069_v47, %v1704_v46 }
 0x470   : > { %v1828_v11 = vadd.f32 %v1827_v57, %v1826_v32 }
 0x471   : > { %v1800_v39 = vmul.f32 %v2067_v4, %v1702_v38  ;;  %v1833_v31 = vsel %vm1803_vm14, %v1802_v36, 0.0 }
 0x473   : > { %v1829_v51 = vsel %vm1803_vm14, %v1800_v39, 0.0 }
 0x474   : > { %v1830_v22 = vadd.f32 %v1829_v51, %v1828_v11 }
 0x476   : > { %v1832_v56 = vadd.f32 %v1831_v10, %v1830_v22 }
 0x478   : > { %v1834_v6 = vadd.f32 %v1833_v31, %v1832_v56 }
 0x47a   : > { %1835 = vadd.xlane.f32.xlu0 %v1834_v6 }
 0x4ed   : > { %v1836_v0 = vpop.xlane.xlu0 %1835 }
 0x4ee   : > { %v1837_v35 = vrot.slane %v1836_v0, 4 }
 0x4f0   : > { %v1838_v29 = vadd.f32 %v1837_v35, %v1836_v0 }
 0x4f2   : > { %v1839_v30 = vrot.slane %v1838_v29, 2 }
 0x4f4   : > { %v1840_v12 = vadd.f32 %v1839_v30, %v1838_v29 }
 0x4f6   : > { %v1841_v59 = vrot.slane %v1840_v12, 1 }
 0x4f8   : > { %v1842_v42 = vadd.f32 %v1841_v59, %v1840_v12 }
 0x4fa   : > { %2345 = vpush %v1842_v42 }
 0x52b   : > { %s2346_s6 = spop %2345 }
 0x52c   : > { %v1845_v20 = vstv %s2346_s6 }
 0x52d   : > { %v1846_v15 = vadd.f32 %v1845_v20, %v1844_v37 }
 0x52f   : > { %1847 = vst [vmem:[%s2912_s18] sm:$0xff] %v1846_v15 }
 0x530   : > { %2744 = shalt.err (!%p2741_p9)
}
 0x531   : > { %2355 = dma.vmem_to_hbm [thread:$0]  (%p2866_p4), %s1862_s4, 128, %s1864_s5, %s1849_s7  }
 0x532 PF: > { %p2372_p10 = scmp.ge.s32.totalorder %s2803_s14, 2  ;;  %s1875_s15 = sand.u32 1, %s2783_s9  }
 0x533   : > { %s1876_s18 = scalar_lea.sflag [#allocation6], %s1875_s15 }
 0x534   : > { %p2365_p11 = pnand %p2372_p10, %p2873_p8 }
 0x536   : > { %p2366_p12 = pneg %p2365_p11 }
 0x538   : > { %2778 = dma.done.wait (%p2366_p12), %s1876_s18, 128  }
 0x539   : > { %2780 = vsyncadd (%p2366_p12), %s1876_s18, 4294967168  ;;  %s17_s14 = sadd.s32 1, %s2803_s14   ;;  %s4226_s9 = smov %s2787_s10 }
 0x53a   : > { %p14_p13 = scmp.ge.s32.totalorder %s17_s14, 4   ;;  %s4227_s10 = smov %s2791_s11 }
 0x53b   : > { %s4228_s11 = smov %s2879_s22  ;;  %s4229_s12 = smov %s2799_s13 }
 0x53c   : > { %s4230_s13 = smov %s4232_s17  ;;  %16 = sbr.rel (!%p14_p13) target bundleno = 6 (0x6), region = 79 }
 0x541   :  { %1882 = vsyncpa [#allocation5], 1 }
 0x542   :  { %1884 = vsyncpa [#allocation5 + $0x1], 1 }
 0x543   :  { %1885 = vsyncpa [#allocation8], 1 }
 0x544   :  { %1886 = vsyncpa [#allocation6], 1 }
 0x545   :  { %1888 = vsyncpa [#allocation6 + $0x1], 1 }

</bundles_post_ra>
